<compile_context>
chip_gen: v5e
topology: v5e:2x2
jax: 0.10.0
libtpu: 0.0.40
codegen_flags: <defaults>
</compile_context>

<pallas_src>
import functools

import jax
import jax.numpy as jnp
from jax.experimental import pallas as pl
from jax.experimental.pallas import tpu as pltpu

LANE = 128  # padded channel / logits lane width


# ----------------------------------------------------------------------------
# Kernel 1: stride-1 2x2 conv (+bias+ReLU) over a space-to-depth input tile.
# One grid step = one image.  Patches are built in-kernel from contiguous
# slices; the conv is 4 shifted matmuls accumulated in f32.
# ----------------------------------------------------------------------------
def _conv2x2_kernel(x_ref, w_ref, b_ref, o_ref, *, ho_out, wo_out, cs):
    # x_ref: (Hs, Ws, Cs) bf16   (Hs = ho_out+1, Ws = wo_out+1)
    # w_ref: (4*Cs, 128) bf16    rows ordered (bh, bw, cs)
    # b_ref: (1, 128) f32
    # o_ref: (ho_out, wo_out, 128) bf16
    bias = b_ref[...]
    for ho in range(ho_out):
        acc = jnp.zeros((wo_out, LANE), jnp.float32)
        for bh in range(2):
            for bw in range(2):
                patch = x_ref[ho + bh, pl.ds(bw, wo_out), :]        # (Wo, Cs)
                wk = w_ref[pl.ds((bh * 2 + bw) * cs, cs), :]        # (Cs, 128)
                acc += jnp.dot(patch, wk, preferred_element_type=jnp.float32)
        o_ref[ho] = jnp.maximum(acc + bias, 0.0).astype(o_ref.dtype)


def conv2x2_s2d(xs, w_mat, b, *, ho_out, wo_out):
    """xs: (B, Hs, Ws, Cs) bf16; w_mat: (4*Cs, 128) bf16; b: (1, 128) f32."""
    B, Hs, Ws, Cs = xs.shape
    kern = functools.partial(_conv2x2_kernel, ho_out=ho_out, wo_out=wo_out, cs=Cs)
    return pl.pallas_call(
        kern,
        out_shape=jax.ShapeDtypeStruct((B, ho_out, wo_out, LANE), jnp.bfloat16),
        grid_spec=pltpu.PrefetchScalarGridSpec(
            num_scalar_prefetch=0,
            grid=(B,),
            in_specs=[
                pl.BlockSpec((None, Hs, Ws, Cs), lambda i: (i, 0, 0, 0)),
                # weight / bias stay VMEM-resident across the batch grid
                pl.BlockSpec((4 * Cs, LANE), lambda i: (0, 0)),
                pl.BlockSpec((1, LANE), lambda i: (0, 0)),
            ],
            out_specs=pl.BlockSpec((None, ho_out, wo_out, LANE),
                                   lambda i: (i, 0, 0, 0)),
        ),
        compiler_params=pltpu.CompilerParams(
            dimension_semantics=("parallel",)),
    )(xs, w_mat, b)


# ----------------------------------------------------------------------------
# Kernel 2: fused head  conv3(1x1 out, as matmul) -> ReLU -> fc1 -> ReLU -> fc2
# ----------------------------------------------------------------------------
def _head_kernel(x_ref, w3_ref, b3_ref, wf1_ref, bf1_ref, wf2_ref, bf2_ref, o_ref):
    h = jnp.dot(x_ref[...], w3_ref[...], preferred_element_type=jnp.float32)
    h = jnp.maximum(h + b3_ref[...], 0.0)                         # conv3 + ReLU
    h = jnp.dot(h.astype(wf1_ref.dtype), wf1_ref[...],
                preferred_element_type=jnp.float32)
    h = jnp.maximum(h + bf1_ref[...], 0.0)                        # fc1 + ReLU
    y = jnp.dot(h.astype(wf2_ref.dtype), wf2_ref[...],
                preferred_element_type=jnp.float32)
    o_ref[...] = (y + bf2_ref[...]).astype(o_ref.dtype)           # fc2 (padded)


def fused_head(x, w3, b3, wf1, bf1, wf2, bf2, *, tm_cap=512):
    M, K = x.shape
    H1 = wf1.shape[1]
    if M <= tm_cap:
        tm = M
        if M >= 256:  # v7x: give both TensorCores at least one block
            tm = ((-(-M // 2)) + 15) // 16 * 16
    else:
        tm = tm_cap
    grid = (pl.cdiv(M, tm),)
    return pl.pallas_call(
        _head_kernel,
        out_shape=jax.ShapeDtypeStruct((M, LANE), jnp.float32),
        grid_spec=pltpu.PrefetchScalarGridSpec(
            num_scalar_prefetch=0,
            grid=grid,
            in_specs=[
                pl.BlockSpec((tm, K), lambda i: (i, 0)),      # streamed activations
                pl.BlockSpec((K, LANE), lambda i: (0, 0)),    # resident conv3 weight
                pl.BlockSpec((1, LANE), lambda i: (0, 0)),
                pl.BlockSpec((LANE, H1), lambda i: (0, 0)),   # resident fc1 weight
                pl.BlockSpec((1, H1), lambda i: (0, 0)),
                pl.BlockSpec((H1, LANE), lambda i: (0, 0)),   # resident fc2 weight
                pl.BlockSpec((1, LANE), lambda i: (0, 0)),
            ],
            out_specs=pl.BlockSpec((tm, LANE), lambda i: (i, 0)),
        ),
        compiler_params=pltpu.CompilerParams(
            dimension_semantics=("parallel",)),
    )(x, w3, b3, wf1, bf1, wf2, bf2)


# ----------------------------------------------------------------------------
# One-time weight preparation: torch layouts -> matmul-ready, lane-padded.
# ----------------------------------------------------------------------------
def _conv_out_hw(h, w, k, s):
    return (h - k) // s + 1, (w - k) // s + 1


def prepare_params(params, input_shape):
    Cin, H, W = input_shape
    C1, C2, C3 = 32, 64, 64
    h1, w1 = _conv_out_hw(H, W, 8, 4)
    h2, w2 = _conv_out_hw(h1, w1, 4, 2)
    h3, w3 = _conv_out_hw(h2, w2, 3, 1)
    assert h3 == 1 and w3 == 1, "fused head assumes a 1x1 conv3 output"
    # TODO(synk): generalize the fused conv3+fc head to conv3 outputs > 1x1
    #             (e.g. 84x84 Atari inputs) via a per-position accumulation.

    def pad_lane(a):
        return jnp.pad(a, ((0, 0), (0, LANE - a.shape[1])))

    # conv1 (k=8, s=4) -> 2x2 conv over space-to-depth(4) input.
    w = params["w1"].reshape(C1, Cin, 2, 4, 2, 4)          # (O, C, bh, ih, bw, iw)
    w = jnp.transpose(w, (2, 4, 3, 5, 1, 0)).reshape(4 * 16 * Cin, C1)
    w1m = pad_lane(w).astype(jnp.bfloat16)                  # (64*Cin, 128)
    b1 = jnp.pad(params["b1"], (0, LANE - C1)).astype(jnp.float32).reshape(1, LANE)

    # conv2 (k=4, s=2) -> 2x2 conv over space-to-depth(2) of the padded conv1 out.
    w = jnp.pad(params["w2"], ((0, 0), (0, LANE - C1), (0, 0), (0, 0)))
    w = w.reshape(C2, LANE, 2, 2, 2, 2)                     # (O, C, bh, ih, bw, iw)
    w = jnp.transpose(w, (2, 4, 3, 5, 1, 0)).reshape(4 * 4 * LANE, C2)
    w2m = pad_lane(w).astype(jnp.bfloat16)                  # (2048, 128)
    b2 = jnp.pad(params["b2"], (0, LANE - C2)).astype(jnp.float32).reshape(1, LANE)

    # conv3 (output 1x1) -> plain matmul over the flattened (h2*w2*128) conv2 out.
    w = jnp.pad(params["w3"], ((0, 0), (0, LANE - C2), (0, 0), (0, 0)))
    w = jnp.transpose(w, (2, 3, 1, 0)).reshape(h2 * w2 * LANE, C3)
    w3m = pad_lane(w).astype(jnp.bfloat16)                  # (1152, 128)
    b3 = jnp.pad(params["b3"], (0, LANE - C3)).astype(jnp.float32).reshape(1, LANE)

    # fc1: torch (512, feat=64); pad the input side to the 128 padded channels.
    wf1 = pad_lane(params["wfc1"]).T.astype(jnp.bfloat16)   # (128, 512)
    bf1 = params["bfc1"].astype(jnp.float32).reshape(1, -1)

    # fc2: torch (num_actions, 512); pad the logits to 128 lanes.
    wf2 = pad_lane(params["wfc2"].T).astype(jnp.bfloat16)   # (512, 128)
    bf2 = jnp.pad(params["bfc2"], (0, LANE - params["bfc2"].shape[0]))
    bf2 = bf2.astype(jnp.float32).reshape(1, LANE)

    return dict(w1=w1m, b1=b1, w2=w2m, b2=b2, w3=w3m, b3=b3,
                wf1=wf1, bf1=bf1, wf2=wf2, bf2=bf2)


# ----------------------------------------------------------------------------
# Forward (expects NCHW input like the torch module).
# ----------------------------------------------------------------------------
def dqn_cnn_forward(x, prepared, num_actions):
    B, Cin, H, W = x.shape
    assert H % 4 == 0 and W % 4 == 0 and (H // 4 - 1) % 2 == 0 and (W // 4 - 1) % 2 == 0

    # NCHW f32 -> space-to-depth(4) NHWC bf16 in one pass (channel order (ih,iw,c));
    # no lane-width-4 intermediate and no im2col duplication in HBM.
    xs1 = x.reshape(B, Cin, H // 4, 4, W // 4, 4)
    xs1 = jnp.transpose(xs1, (0, 2, 4, 3, 5, 1))
    xs1 = xs1.reshape(B, H // 4, W // 4, 16 * Cin).astype(jnp.bfloat16)
    h1o, w1o = H // 4 - 1, W // 4 - 1

    y1 = conv2x2_s2d(xs1, prepared["w1"], prepared["b1"], ho_out=h1o, wo_out=w1o)

    # space-to-depth(2) of the 128-lane conv1 output for the stride-2 conv2.
    xs2 = y1.reshape(B, h1o // 2, 2, w1o // 2, 2, LANE)
    xs2 = jnp.transpose(xs2, (0, 1, 3, 2, 4, 5))
    xs2 = xs2.reshape(B, h1o // 2, w1o // 2, 4 * LANE)
    h2o, w2o = h1o // 2 - 1, w1o // 2 - 1

    y2 = conv2x2_s2d(xs2, prepared["w2"], prepared["b2"], ho_out=h2o, wo_out=w2o)

    # conv3 + flatten + fc1 + fc2 fused; flatten is a free row-major reshape.
    xh = y2.reshape(B, h2o * w2o * LANE)
    logits = fused_head(xh, prepared["w3"], prepared["b3"],
                        prepared["wf1"], prepared["bf1"],
                        prepared["wf2"], prepared["bf2"])
    return logits[:, :num_actions]


# ----------------------------------------------------------------------------
# Parameter init (torch layouts) and pure-JAX f32 reference.
# ----------------------------------------------------------------------------
def init_params(key, input_shape, num_actions):
    Cin, H, W = input_shape
    h1, w1 = _conv_out_hw(H, W, 8, 4)
    h2, w2 = _conv_out_hw(h1, w1, 4, 2)
    h3, w3 = _conv_out_hw(h2, w2, 3, 1)
    feat = 64 * h3 * w3
    ks = jax.random.split(key, 10)
    s = 0.05
    return {
        "w1": jax.random.normal(ks[0], (32, Cin, 8, 8), jnp.float32) * s,
        "b1": jax.random.normal(ks[1], (32,), jnp.float32) * s,
        "w2": jax.random.normal(ks[2], (64, 32, 4, 4), jnp.float32) * s,
        "b2": jax.random.normal(ks[3], (64,), jnp.float32) * s,
        "w3": jax.random.normal(ks[4], (64, 64, 3, 3), jnp.float32) * s,
        "b3": jax.random.normal(ks[5], (64,), jnp.float32) * s,
        "wfc1": jax.random.normal(ks[6], (512, feat), jnp.float32) * s,
        "bfc1": jax.random.normal(ks[7], (512,), jnp.float32) * s,
        "wfc2": jax.random.normal(ks[8], (num_actions, 512), jnp.float32) * s,
        "bfc2": jax.random.normal(ks[9], (num_actions,), jnp.float32) * s,
    }


def _conv_ref(x, w, b, stride):
    y = jax.lax.conv_general_dilated(
        x, w, (stride, stride), "VALID",
        dimension_numbers=("NCHW", "OIHW", "NCHW"))
    return jax.nn.relu(y + b[None, :, None, None])


def dqn_cnn_ref(x, params):
    x = _conv_ref(x, params["w1"], params["b1"], 4)
    x = _conv_ref(x, params["w2"], params["b2"], 2)
    x = _conv_ref(x, params["w3"], params["b3"], 1)
    x = x.reshape(x.shape[0], -1)
    x = jax.nn.relu(x @ params["wfc1"].T + params["bfc1"])
    return x @ params["wfc2"].T + params["bfc2"]


if __name__ == "__main__":
    # input_shape=(4, 36, 36): conv outputs 8x8 -> 3x3 -> 1x1, feature_size = 64.
    input_shape = (4, 36, 36)
    num_actions = 6
    batch = 2

    key = jax.random.PRNGKey(0)
    kx, kp = jax.random.split(key)
    x = jax.random.normal(kx, (batch,) + input_shape, jnp.float32)
    params = init_params(kp, input_shape, num_actions)

    prepared = prepare_params(params, input_shape)           # one-time weight prep
    fwd = jax.jit(functools.partial(dqn_cnn_forward, num_actions=num_actions))

    out = jax.block_until_ready(fwd(x, prepared))
    ref = dqn_cnn_ref(x, params)

    assert out.shape == (batch, num_actions), out.shape
    # bf16 MXU with f32 accumulation -> loosened tolerance vs the f32 reference.
    assert jnp.allclose(out, ref, atol=1e-2, rtol=1e-2), (
        float(jnp.max(jnp.abs(out - ref))))
    print("KERNEL_OK")
</pallas_src>

<mosaic_0001>
module attributes {stable_mosaic.version = 11 : i64} {
  func.func @_conv2x2_kernel(%arg0: i32, %arg1: memref<1x9x9x64xbf16, #tpu.memory_space<vmem>>, %arg2: memref<256x128xbf16, #tpu.memory_space<vmem>>, %arg3: memref<1x128xf32, #tpu.memory_space<vmem>>, %arg4: memref<1x8x8x128xbf16, #tpu.memory_space<vmem>>) attributes {dimension_semantics = [#tpu.dimension_semantics<parallel>], iteration_bounds = array<i64: 2>, scalar_prefetch = 0 : i64, scratch_operands = 0 : i64, tpu.core_type = #tpu.core_type<tc>, window_params = [{transform_indices = @transform_0, window_bounds = array<i64: 1, 9, 9, 64>}, {pipeline_mode = #tpu.pipeline_mode<synchronous>, transform_indices = @transform_1, window_bounds = array<i64: 256, 128>}, {pipeline_mode = #tpu.pipeline_mode<synchronous>, transform_indices = @transform_2, window_bounds = array<i64: 1, 128>}, {transform_indices = @transform_3, window_bounds = array<i64: 1, 8, 8, 128>}]} {
    %c0 = arith.constant 0 : index
    %c0_0 = arith.constant 0 : index
    %0 = vector.load %arg3[%c0, %c0_0] : memref<1x128xf32, #tpu.memory_space<vmem>>, vector<1x128xf32>
    %cst = arith.constant 0.000000e+00 : f32
    %1 = vector.broadcast %cst : f32 to vector<8x128xf32>
    %c0_1 = arith.constant 0 : index
    %c0_2 = arith.constant 0 : index
    %c0_3 = arith.constant 0 : index
    %c0_4 = arith.constant 0 : index
    %2 = vector.load %arg1[%c0_1, %c0_2, %c0_3, %c0_4] : memref<1x9x9x64xbf16, #tpu.memory_space<vmem>>, vector<1x1x8x64xbf16>
    %3 = vector.shape_cast %2 : vector<1x1x8x64xbf16> to vector<8x64xbf16>
    %c0_5 = arith.constant 0 : index
    %c0_6 = arith.constant 0 : index
    %4 = vector.load %arg2[%c0_5, %c0_6] : memref<256x128xbf16, #tpu.memory_space<vmem>>, vector<64x128xbf16>
    %cst_7 = arith.constant dense<0.000000e+00> : vector<8x128xf32>
    %5 = tpu.matmul %3, %4, %cst_7 {dimension_numbers = #tpu.dot_dimension_numbers<[1], [0], [0], [1], [0, 0, 1, 1], [], []>} : vector<8x64xbf16>, vector<64x128xbf16>, vector<8x128xf32> -> vector<8x128xf32>
    %6 = arith.addf %1, %5 : vector<8x128xf32>
    %c0_8 = arith.constant 0 : index
    %c0_9 = arith.constant 0 : index
    %c1 = arith.constant 1 : index
    %c0_10 = arith.constant 0 : index
    %7 = vector.load %arg1[%c0_8, %c0_9, %c1, %c0_10] : memref<1x9x9x64xbf16, #tpu.memory_space<vmem>>, vector<1x1x8x64xbf16>
    %8 = vector.shape_cast %7 : vector<1x1x8x64xbf16> to vector<8x64xbf16>
    %c64 = arith.constant 64 : index
    %c0_11 = arith.constant 0 : index
    %9 = vector.load %arg2[%c64, %c0_11] : memref<256x128xbf16, #tpu.memory_space<vmem>>, vector<64x128xbf16>
    %cst_12 = arith.constant dense<0.000000e+00> : vector<8x128xf32>
    %10 = tpu.matmul %8, %9, %cst_12 {dimension_numbers = #tpu.dot_dimension_numbers<[1], [0], [0], [1], [0, 0, 1, 1], [], []>} : vector<8x64xbf16>, vector<64x128xbf16>, vector<8x128xf32> -> vector<8x128xf32>
    %11 = arith.addf %6, %10 : vector<8x128xf32>
    %c0_13 = arith.constant 0 : index
    %c1_14 = arith.constant 1 : index
    %c0_15 = arith.constant 0 : index
    %c0_16 = arith.constant 0 : index
    %12 = vector.load %arg1[%c0_13, %c1_14, %c0_15, %c0_16] : memref<1x9x9x64xbf16, #tpu.memory_space<vmem>>, vector<1x1x8x64xbf16>
    %13 = vector.shape_cast %12 : vector<1x1x8x64xbf16> to vector<8x64xbf16>
    %c128 = arith.constant 128 : index
    %c0_17 = arith.constant 0 : index
    %14 = vector.load %arg2[%c128, %c0_17] : memref<256x128xbf16, #tpu.memory_space<vmem>>, vector<64x128xbf16>
    %cst_18 = arith.constant dense<0.000000e+00> : vector<8x128xf32>
    %15 = tpu.matmul %13, %14, %cst_18 {dimension_numbers = #tpu.dot_dimension_numbers<[1], [0], [0], [1], [0, 0, 1, 1], [], []>} : vector<8x64xbf16>, vector<64x128xbf16>, vector<8x128xf32> -> vector<8x128xf32>
    %16 = arith.addf %11, %15 : vector<8x128xf32>
    %c0_19 = arith.constant 0 : index
    %c1_20 = arith.constant 1 : index
    %c1_21 = arith.constant 1 : index
    %c0_22 = arith.constant 0 : index
    %17 = vector.load %arg1[%c0_19, %c1_20, %c1_21, %c0_22] : memref<1x9x9x64xbf16, #tpu.memory_space<vmem>>, vector<1x1x8x64xbf16>
    %18 = vector.shape_cast %17 : vector<1x1x8x64xbf16> to vector<8x64xbf16>
    %c192 = arith.constant 192 : index
    %c0_23 = arith.constant 0 : index
    %19 = vector.load %arg2[%c192, %c0_23] : memref<256x128xbf16, #tpu.memory_space<vmem>>, vector<64x128xbf16>
    %cst_24 = arith.constant dense<0.000000e+00> : vector<8x128xf32>
    %20 = tpu.matmul %18, %19, %cst_24 {dimension_numbers = #tpu.dot_dimension_numbers<[1], [0], [0], [1], [0, 0, 1, 1], [], []>} : vector<8x64xbf16>, vector<64x128xbf16>, vector<8x128xf32> -> vector<8x128xf32>
    %21 = arith.addf %16, %20 : vector<8x128xf32>
    %22 = vector.broadcast %0 : vector<1x128xf32> to vector<8x128xf32>
    %23 = arith.addf %21, %22 : vector<8x128xf32>
    %cst_25 = arith.constant 0.000000e+00 : f32
    %24 = vector.broadcast %cst_25 : f32 to vector<8x128xf32>
    %25 = arith.maximumf %23, %24 : vector<8x128xf32>
    %26 = arith.truncf %25 : vector<8x128xf32> to vector<8x128xbf16>
    %c0_26 = arith.constant 0 : index
    %c0_27 = arith.constant 0 : index
    %c0_28 = arith.constant 0 : index
    %c0_29 = arith.constant 0 : index
    %27 = vector.load %arg4[%c0_26, %c0_27, %c0_28, %c0_29] : memref<1x8x8x128xbf16, #tpu.memory_space<vmem>>, vector<1x1x8x128xbf16>
    %28 = vector.shape_cast %27 : vector<1x1x8x128xbf16> to vector<8x128xbf16>
    %29 = vector.shape_cast %26 : vector<8x128xbf16> to vector<1x1x8x128xbf16>
    tpu.vector_store %arg4[%c0_26, %c0_27, %c0_28, %c0_29], %29 {strides = array<i32>} : memref<1x8x8x128xbf16, #tpu.memory_space<vmem>>, vector<1x1x8x128xbf16>,
    %cst_30 = arith.constant 0.000000e+00 : f32
    %30 = vector.broadcast %cst_30 : f32 to vector<8x128xf32>
    %c0_31 = arith.constant 0 : index
    %c1_32 = arith.constant 1 : index
    %c0_33 = arith.constant 0 : index
    %c0_34 = arith.constant 0 : index
    %31 = vector.load %arg1[%c0_31, %c1_32, %c0_33, %c0_34] : memref<1x9x9x64xbf16, #tpu.memory_space<vmem>>, vector<1x1x8x64xbf16>
    %32 = vector.shape_cast %31 : vector<1x1x8x64xbf16> to vector<8x64xbf16>
    %c0_35 = arith.constant 0 : index
    %c0_36 = arith.constant 0 : index
    %33 = vector.load %arg2[%c0_35, %c0_36] : memref<256x128xbf16, #tpu.memory_space<vmem>>, vector<64x128xbf16>
    %cst_37 = arith.constant dense<0.000000e+00> : vector<8x128xf32>
    %34 = tpu.matmul %32, %33, %cst_37 {dimension_numbers = #tpu.dot_dimension_numbers<[1], [0], [0], [1], [0, 0, 1, 1], [], []>} : vector<8x64xbf16>, vector<64x128xbf16>, vector<8x128xf32> -> vector<8x128xf32>
    %35 = arith.addf %30, %34 : vector<8x128xf32>
    %c0_38 = arith.constant 0 : index
    %c1_39 = arith.constant 1 : index
    %c1_40 = arith.constant 1 : index
    %c0_41 = arith.constant 0 : index
    %36 = vector.load %arg1[%c0_38, %c1_39, %c1_40, %c0_41] : memref<1x9x9x64xbf16, #tpu.memory_space<vmem>>, vector<1x1x8x64xbf16>
    %37 = vector.shape_cast %36 : vector<1x1x8x64xbf16> to vector<8x64xbf16>
    %c64_42 = arith.constant 64 : index
    %c0_43 = arith.constant 0 : index
    %38 = vector.load %arg2[%c64_42, %c0_43] : memref<256x128xbf16, #tpu.memory_space<vmem>>, vector<64x128xbf16>
    %cst_44 = arith.constant dense<0.000000e+00> : vector<8x128xf32>
    %39 = tpu.matmul %37, %38, %cst_44 {dimension_numbers = #tpu.dot_dimension_numbers<[1], [0], [0], [1], [0, 0, 1, 1], [], []>} : vector<8x64xbf16>, vector<64x128xbf16>, vector<8x128xf32> -> vector<8x128xf32>
    %40 = arith.addf %35, %39 : vector<8x128xf32>
    %c0_45 = arith.constant 0 : index
    %c2 = arith.constant 2 : index
    %c0_46 = arith.constant 0 : index
    %c0_47 = arith.constant 0 : index
    %41 = vector.load %arg1[%c0_45, %c2, %c0_46, %c0_47] : memref<1x9x9x64xbf16, #tpu.memory_space<vmem>>, vector<1x1x8x64xbf16>
    %42 = vector.shape_cast %41 : vector<1x1x8x64xbf16> to vector<8x64xbf16>
    %c128_48 = arith.constant 128 : index
    %c0_49 = arith.constant 0 : index
    %43 = vector.load %arg2[%c128_48, %c0_49] : memref<256x128xbf16, #tpu.memory_space<vmem>>, vector<64x128xbf16>
    %cst_50 = arith.constant dense<0.000000e+00> : vector<8x128xf32>
    %44 = tpu.matmul %42, %43, %cst_50 {dimension_numbers = #tpu.dot_dimension_numbers<[1], [0], [0], [1], [0, 0, 1, 1], [], []>} : vector<8x64xbf16>, vector<64x128xbf16>, vector<8x128xf32> -> vector<8x128xf32>
    %45 = arith.addf %40, %44 : vector<8x128xf32>
    %c0_51 = arith.constant 0 : index
    %c2_52 = arith.constant 2 : index
    %c1_53 = arith.constant 1 : index
    %c0_54 = arith.constant 0 : index
    %46 = vector.load %arg1[%c0_51, %c2_52, %c1_53, %c0_54] : memref<1x9x9x64xbf16, #tpu.memory_space<vmem>>, vector<1x1x8x64xbf16>
    %47 = vector.shape_cast %46 : vector<1x1x8x64xbf16> to vector<8x64xbf16>
    %c192_55 = arith.constant 192 : index
    %c0_56 = arith.constant 0 : index
    %48 = vector.load %arg2[%c192_55, %c0_56] : memref<256x128xbf16, #tpu.memory_space<vmem>>, vector<64x128xbf16>
    %cst_57 = arith.constant dense<0.000000e+00> : vector<8x128xf32>
    %49 = tpu.matmul %47, %48, %cst_57 {dimension_numbers = #tpu.dot_dimension_numbers<[1], [0], [0], [1], [0, 0, 1, 1], [], []>} : vector<8x64xbf16>, vector<64x128xbf16>, vector<8x128xf32> -> vector<8x128xf32>
    %50 = arith.addf %45, %49 : vector<8x128xf32>
    %51 = vector.broadcast %0 : vector<1x128xf32> to vector<8x128xf32>
    %52 = arith.addf %50, %51 : vector<8x128xf32>
    %cst_58 = arith.constant 0.000000e+00 : f32
    %53 = vector.broadcast %cst_58 : f32 to vector<8x128xf32>
    %54 = arith.maximumf %52, %53 : vector<8x128xf32>
    %55 = arith.truncf %54 : vector<8x128xf32> to vector<8x128xbf16>
    %c0_59 = arith.constant 0 : index
    %c1_60 = arith.constant 1 : index
    %c0_61 = arith.constant 0 : index
    %c0_62 = arith.constant 0 : index
    %56 = vector.load %arg4[%c0_59, %c1_60, %c0_61, %c0_62] : memref<1x8x8x128xbf16, #tpu.memory_space<vmem>>, vector<1x1x8x128xbf16>
    %57 = vector.shape_cast %56 : vector<1x1x8x128xbf16> to vector<8x128xbf16>
    %58 = vector.shape_cast %55 : vector<8x128xbf16> to vector<1x1x8x128xbf16>
    tpu.vector_store %arg4[%c0_59, %c1_60, %c0_61, %c0_62], %58 {strides = array<i32>} : memref<1x8x8x128xbf16, #tpu.memory_space<vmem>>, vector<1x1x8x128xbf16>,
    %cst_63 = arith.constant 0.000000e+00 : f32
    %59 = vector.broadcast %cst_63 : f32 to vector<8x128xf32>
    %c0_64 = arith.constant 0 : index
    %c2_65 = arith.constant 2 : index
    %c0_66 = arith.constant 0 : index
    %c0_67 = arith.constant 0 : index
    %60 = vector.load %arg1[%c0_64, %c2_65, %c0_66, %c0_67] : memref<1x9x9x64xbf16, #tpu.memory_space<vmem>>, vector<1x1x8x64xbf16>
    %61 = vector.shape_cast %60 : vector<1x1x8x64xbf16> to vector<8x64xbf16>
    %c0_68 = arith.constant 0 : index
    %c0_69 = arith.constant 0 : index
    %62 = vector.load %arg2[%c0_68, %c0_69] : memref<256x128xbf16, #tpu.memory_space<vmem>>, vector<64x128xbf16>
    %cst_70 = arith.constant dense<0.000000e+00> : vector<8x128xf32>
    %63 = tpu.matmul %61, %62, %cst_70 {dimension_numbers = #tpu.dot_dimension_numbers<[1], [0], [0], [1], [0, 0, 1, 1], [], []>} : vector<8x64xbf16>, vector<64x128xbf16>, vector<8x128xf32> -> vector<8x128xf32>
    %64 = arith.addf %59, %63 : vector<8x128xf32>
    %c0_71 = arith.constant 0 : index
    %c2_72 = arith.constant 2 : index
    %c1_73 = arith.constant 1 : index
    %c0_74 = arith.constant 0 : index
    %65 = vector.load %arg1[%c0_71, %c2_72, %c1_73, %c0_74] : memref<1x9x9x64xbf16, #tpu.memory_space<vmem>>, vector<1x1x8x64xbf16>
    %66 = vector.shape_cast %65 : vector<1x1x8x64xbf16> to vector<8x64xbf16>
    %c64_75 = arith.constant 64 : index
    %c0_76 = arith.constant 0 : index
    %67 = vector.load %arg2[%c64_75, %c0_76] : memref<256x128xbf16, #tpu.memory_space<vmem>>, vector<64x128xbf16>
    %cst_77 = arith.constant dense<0.000000e+00> : vector<8x128xf32>
    %68 = tpu.matmul %66, %67, %cst_77 {dimension_numbers = #tpu.dot_dimension_numbers<[1], [0], [0], [1], [0, 0, 1, 1], [], []>} : vector<8x64xbf16>, vector<64x128xbf16>, vector<8x128xf32> -> vector<8x128xf32>
    %69 = arith.addf %64, %68 : vector<8x128xf32>
    %c0_78 = arith.constant 0 : index
    %c3 = arith.constant 3 : index
    %c0_79 = arith.constant 0 : index
    %c0_80 = arith.constant 0 : index
    %70 = vector.load %arg1[%c0_78, %c3, %c0_79, %c0_80] : memref<1x9x9x64xbf16, #tpu.memory_space<vmem>>, vector<1x1x8x64xbf16>
    %71 = vector.shape_cast %70 : vector<1x1x8x64xbf16> to vector<8x64xbf16>
    %c128_81 = arith.constant 128 : index
    %c0_82 = arith.constant 0 : index
    %72 = vector.load %arg2[%c128_81, %c0_82] : memref<256x128xbf16, #tpu.memory_space<vmem>>, vector<64x128xbf16>
    %cst_83 = arith.constant dense<0.000000e+00> : vector<8x128xf32>
    %73 = tpu.matmul %71, %72, %cst_83 {dimension_numbers = #tpu.dot_dimension_numbers<[1], [0], [0], [1], [0, 0, 1, 1], [], []>} : vector<8x64xbf16>, vector<64x128xbf16>, vector<8x128xf32> -> vector<8x128xf32>
    %74 = arith.addf %69, %73 : vector<8x128xf32>
    %c0_84 = arith.constant 0 : index
    %c3_85 = arith.constant 3 : index
    %c1_86 = arith.constant 1 : index
    %c0_87 = arith.constant 0 : index
    %75 = vector.load %arg1[%c0_84, %c3_85, %c1_86, %c0_87] : memref<1x9x9x64xbf16, #tpu.memory_space<vmem>>, vector<1x1x8x64xbf16>
    %76 = vector.shape_cast %75 : vector<1x1x8x64xbf16> to vector<8x64xbf16>
    %c192_88 = arith.constant 192 : index
    %c0_89 = arith.constant 0 : index
    %77 = vector.load %arg2[%c192_88, %c0_89] : memref<256x128xbf16, #tpu.memory_space<vmem>>, vector<64x128xbf16>
    %cst_90 = arith.constant dense<0.000000e+00> : vector<8x128xf32>
    %78 = tpu.matmul %76, %77, %cst_90 {dimension_numbers = #tpu.dot_dimension_numbers<[1], [0], [0], [1], [0, 0, 1, 1], [], []>} : vector<8x64xbf16>, vector<64x128xbf16>, vector<8x128xf32> -> vector<8x128xf32>
    %79 = arith.addf %74, %78 : vector<8x128xf32>
    %80 = vector.broadcast %0 : vector<1x128xf32> to vector<8x128xf32>
    %81 = arith.addf %79, %80 : vector<8x128xf32>
    %cst_91 = arith.constant 0.000000e+00 : f32
    %82 = vector.broadcast %cst_91 : f32 to vector<8x128xf32>
    %83 = arith.maximumf %81, %82 : vector<8x128xf32>
    %84 = arith.truncf %83 : vector<8x128xf32> to vector<8x128xbf16>
    %c0_92 = arith.constant 0 : index
    %c2_93 = arith.constant 2 : index
    %c0_94 = arith.constant 0 : index
    %c0_95 = arith.constant 0 : index
    %85 = vector.load %arg4[%c0_92, %c2_93, %c0_94, %c0_95] : memref<1x8x8x128xbf16, #tpu.memory_space<vmem>>, vector<1x1x8x128xbf16>
    %86 = vector.shape_cast %85 : vector<1x1x8x128xbf16> to vector<8x128xbf16>
    %87 = vector.shape_cast %84 : vector<8x128xbf16> to vector<1x1x8x128xbf16>
    tpu.vector_store %arg4[%c0_92, %c2_93, %c0_94, %c0_95], %87 {strides = array<i32>} : memref<1x8x8x128xbf16, #tpu.memory_space<vmem>>, vector<1x1x8x128xbf16>,
    %cst_96 = arith.constant 0.000000e+00 : f32
    %88 = vector.broadcast %cst_96 : f32 to vector<8x128xf32>
    %c0_97 = arith.constant 0 : index
    %c3_98 = arith.constant 3 : index
    %c0_99 = arith.constant 0 : index
    %c0_100 = arith.constant 0 : index
    %89 = vector.load %arg1[%c0_97, %c3_98, %c0_99, %c0_100] : memref<1x9x9x64xbf16, #tpu.memory_space<vmem>>, vector<1x1x8x64xbf16>
    %90 = vector.shape_cast %89 : vector<1x1x8x64xbf16> to vector<8x64xbf16>
    %c0_101 = arith.constant 0 : index
    %c0_102 = arith.constant 0 : index
    %91 = vector.load %arg2[%c0_101, %c0_102] : memref<256x128xbf16, #tpu.memory_space<vmem>>, vector<64x128xbf16>
    %cst_103 = arith.constant dense<0.000000e+00> : vector<8x128xf32>
    %92 = tpu.matmul %90, %91, %cst_103 {dimension_numbers = #tpu.dot_dimension_numbers<[1], [0], [0], [1], [0, 0, 1, 1], [], []>} : vector<8x64xbf16>, vector<64x128xbf16>, vector<8x128xf32> -> vector<8x128xf32>
    %93 = arith.addf %88, %92 : vector<8x128xf32>
    %c0_104 = arith.constant 0 : index
    %c3_105 = arith.constant 3 : index
    %c1_106 = arith.constant 1 : index
    %c0_107 = arith.constant 0 : index
    %94 = vector.load %arg1[%c0_104, %c3_105, %c1_106, %c0_107] : memref<1x9x9x64xbf16, #tpu.memory_space<vmem>>, vector<1x1x8x64xbf16>
    %95 = vector.shape_cast %94 : vector<1x1x8x64xbf16> to vector<8x64xbf16>
    %c64_108 = arith.constant 64 : index
    %c0_109 = arith.constant 0 : index
    %96 = vector.load %arg2[%c64_108, %c0_109] : memref<256x128xbf16, #tpu.memory_space<vmem>>, vector<64x128xbf16>
    %cst_110 = arith.constant dense<0.000000e+00> : vector<8x128xf32>
    %97 = tpu.matmul %95, %96, %cst_110 {dimension_numbers = #tpu.dot_dimension_numbers<[1], [0], [0], [1], [0, 0, 1, 1], [], []>} : vector<8x64xbf16>, vector<64x128xbf16>, vector<8x128xf32> -> vector<8x128xf32>
    %98 = arith.addf %93, %97 : vector<8x128xf32>
    %c0_111 = arith.constant 0 : index
    %c4 = arith.constant 4 : index
    %c0_112 = arith.constant 0 : index
    %c0_113 = arith.constant 0 : index
    %99 = vector.load %arg1[%c0_111, %c4, %c0_112, %c0_113] : memref<1x9x9x64xbf16, #tpu.memory_space<vmem>>, vector<1x1x8x64xbf16>
    %100 = vector.shape_cast %99 : vector<1x1x8x64xbf16> to vector<8x64xbf16>
    %c128_114 = arith.constant 128 : index
    %c0_115 = arith.constant 0 : index
    %101 = vector.load %arg2[%c128_114, %c0_115] : memref<256x128xbf16, #tpu.memory_space<vmem>>, vector<64x128xbf16>
    %cst_116 = arith.constant dense<0.000000e+00> : vector<8x128xf32>
    %102 = tpu.matmul %100, %101, %cst_116 {dimension_numbers = #tpu.dot_dimension_numbers<[1], [0], [0], [1], [0, 0, 1, 1], [], []>} : vector<8x64xbf16>, vector<64x128xbf16>, vector<8x128xf32> -> vector<8x128xf32>
    %103 = arith.addf %98, %102 : vector<8x128xf32>
    %c0_117 = arith.constant 0 : index
    %c4_118 = arith.constant 4 : index
    %c1_119 = arith.constant 1 : index
    %c0_120 = arith.constant 0 : index
    %104 = vector.load %arg1[%c0_117, %c4_118, %c1_119, %c0_120] : memref<1x9x9x64xbf16, #tpu.memory_space<vmem>>, vector<1x1x8x64xbf16>
    %105 = vector.shape_cast %104 : vector<1x1x8x64xbf16> to vector<8x64xbf16>
    %c192_121 = arith.constant 192 : index
    %c0_122 = arith.constant 0 : index
    %106 = vector.load %arg2[%c192_121, %c0_122] : memref<256x128xbf16, #tpu.memory_space<vmem>>, vector<64x128xbf16>
    %cst_123 = arith.constant dense<0.000000e+00> : vector<8x128xf32>
    %107 = tpu.matmul %105, %106, %cst_123 {dimension_numbers = #tpu.dot_dimension_numbers<[1], [0], [0], [1], [0, 0, 1, 1], [], []>} : vector<8x64xbf16>, vector<64x128xbf16>, vector<8x128xf32> -> vector<8x128xf32>
    %108 = arith.addf %103, %107 : vector<8x128xf32>
    %109 = vector.broadcast %0 : vector<1x128xf32> to vector<8x128xf32>
    %110 = arith.addf %108, %109 : vector<8x128xf32>
    %cst_124 = arith.constant 0.000000e+00 : f32
    %111 = vector.broadcast %cst_124 : f32 to vector<8x128xf32>
    %112 = arith.maximumf %110, %111 : vector<8x128xf32>
    %113 = arith.truncf %112 : vector<8x128xf32> to vector<8x128xbf16>
    %c0_125 = arith.constant 0 : index
    %c3_126 = arith.constant 3 : index
    %c0_127 = arith.constant 0 : index
    %c0_128 = arith.constant 0 : index
    %114 = vector.load %arg4[%c0_125, %c3_126, %c0_127, %c0_128] : memref<1x8x8x128xbf16, #tpu.memory_space<vmem>>, vector<1x1x8x128xbf16>
    %115 = vector.shape_cast %114 : vector<1x1x8x128xbf16> to vector<8x128xbf16>
    %116 = vector.shape_cast %113 : vector<8x128xbf16> to vector<1x1x8x128xbf16>
    tpu.vector_store %arg4[%c0_125, %c3_126, %c0_127, %c0_128], %116 {strides = array<i32>} : memref<1x8x8x128xbf16, #tpu.memory_space<vmem>>, vector<1x1x8x128xbf16>,
    %cst_129 = arith.constant 0.000000e+00 : f32
    %117 = vector.broadcast %cst_129 : f32 to vector<8x128xf32>
    %c0_130 = arith.constant 0 : index
    %c4_131 = arith.constant 4 : index
    %c0_132 = arith.constant 0 : index
    %c0_133 = arith.constant 0 : index
    %118 = vector.load %arg1[%c0_130, %c4_131, %c0_132, %c0_133] : memref<1x9x9x64xbf16, #tpu.memory_space<vmem>>, vector<1x1x8x64xbf16>
    %119 = vector.shape_cast %118 : vector<1x1x8x64xbf16> to vector<8x64xbf16>
    %c0_134 = arith.constant 0 : index
    %c0_135 = arith.constant 0 : index
    %120 = vector.load %arg2[%c0_134, %c0_135] : memref<256x128xbf16, #tpu.memory_space<vmem>>, vector<64x128xbf16>
    %cst_136 = arith.constant dense<0.000000e+00> : vector<8x128xf32>
    %121 = tpu.matmul %119, %120, %cst_136 {dimension_numbers = #tpu.dot_dimension_numbers<[1], [0], [0], [1], [0, 0, 1, 1], [], []>} : vector<8x64xbf16>, vector<64x128xbf16>, vector<8x128xf32> -> vector<8x128xf32>
    %122 = arith.addf %117, %121 : vector<8x128xf32>
    %c0_137 = arith.constant 0 : index
    %c4_138 = arith.constant 4 : index
    %c1_139 = arith.constant 1 : index
    %c0_140 = arith.constant 0 : index
    %123 = vector.load %arg1[%c0_137, %c4_138, %c1_139, %c0_140] : memref<1x9x9x64xbf16, #tpu.memory_space<vmem>>, vector<1x1x8x64xbf16>
    %124 = vector.shape_cast %123 : vector<1x1x8x64xbf16> to vector<8x64xbf16>
    %c64_141 = arith.constant 64 : index
    %c0_142 = arith.constant 0 : index
    %125 = vector.load %arg2[%c64_141, %c0_142] : memref<256x128xbf16, #tpu.memory_space<vmem>>, vector<64x128xbf16>
    %cst_143 = arith.constant dense<0.000000e+00> : vector<8x128xf32>
    %126 = tpu.matmul %124, %125, %cst_143 {dimension_numbers = #tpu.dot_dimension_numbers<[1], [0], [0], [1], [0, 0, 1, 1], [], []>} : vector<8x64xbf16>, vector<64x128xbf16>, vector<8x128xf32> -> vector<8x128xf32>
    %127 = arith.addf %122, %126 : vector<8x128xf32>
    %c0_144 = arith.constant 0 : index
    %c5 = arith.constant 5 : index
    %c0_145 = arith.constant 0 : index
    %c0_146 = arith.constant 0 : index
    %128 = vector.load %arg1[%c0_144, %c5, %c0_145, %c0_146] : memref<1x9x9x64xbf16, #tpu.memory_space<vmem>>, vector<1x1x8x64xbf16>
    %129 = vector.shape_cast %128 : vector<1x1x8x64xbf16> to vector<8x64xbf16>
    %c128_147 = arith.constant 128 : index
    %c0_148 = arith.constant 0 : index
    %130 = vector.load %arg2[%c128_147, %c0_148] : memref<256x128xbf16, #tpu.memory_space<vmem>>, vector<64x128xbf16>
    %cst_149 = arith.constant dense<0.000000e+00> : vector<8x128xf32>
    %131 = tpu.matmul %129, %130, %cst_149 {dimension_numbers = #tpu.dot_dimension_numbers<[1], [0], [0], [1], [0, 0, 1, 1], [], []>} : vector<8x64xbf16>, vector<64x128xbf16>, vector<8x128xf32> -> vector<8x128xf32>
    %132 = arith.addf %127, %131 : vector<8x128xf32>
    %c0_150 = arith.constant 0 : index
    %c5_151 = arith.constant 5 : index
    %c1_152 = arith.constant 1 : index
    %c0_153 = arith.constant 0 : index
    %133 = vector.load %arg1[%c0_150, %c5_151, %c1_152, %c0_153] : memref<1x9x9x64xbf16, #tpu.memory_space<vmem>>, vector<1x1x8x64xbf16>
    %134 = vector.shape_cast %133 : vector<1x1x8x64xbf16> to vector<8x64xbf16>
    %c192_154 = arith.constant 192 : index
    %c0_155 = arith.constant 0 : index
    %135 = vector.load %arg2[%c192_154, %c0_155] : memref<256x128xbf16, #tpu.memory_space<vmem>>, vector<64x128xbf16>
    %cst_156 = arith.constant dense<0.000000e+00> : vector<8x128xf32>
    %136 = tpu.matmul %134, %135, %cst_156 {dimension_numbers = #tpu.dot_dimension_numbers<[1], [0], [0], [1], [0, 0, 1, 1], [], []>} : vector<8x64xbf16>, vector<64x128xbf16>, vector<8x128xf32> -> vector<8x128xf32>
    %137 = arith.addf %132, %136 : vector<8x128xf32>
    %138 = vector.broadcast %0 : vector<1x128xf32> to vector<8x128xf32>
    %139 = arith.addf %137, %138 : vector<8x128xf32>
    %cst_157 = arith.constant 0.000000e+00 : f32
    %140 = vector.broadcast %cst_157 : f32 to vector<8x128xf32>
    %141 = arith.maximumf %139, %140 : vector<8x128xf32>
    %142 = arith.truncf %141 : vector<8x128xf32> to vector<8x128xbf16>
    %c0_158 = arith.constant 0 : index
    %c4_159 = arith.constant 4 : index
    %c0_160 = arith.constant 0 : index
    %c0_161 = arith.constant 0 : index
    %143 = vector.load %arg4[%c0_158, %c4_159, %c0_160, %c0_161] : memref<1x8x8x128xbf16, #tpu.memory_space<vmem>>, vector<1x1x8x128xbf16>
    %144 = vector.shape_cast %143 : vector<1x1x8x128xbf16> to vector<8x128xbf16>
    %145 = vector.shape_cast %142 : vector<8x128xbf16> to vector<1x1x8x128xbf16>
    tpu.vector_store %arg4[%c0_158, %c4_159, %c0_160, %c0_161], %145 {strides = array<i32>} : memref<1x8x8x128xbf16, #tpu.memory_space<vmem>>, vector<1x1x8x128xbf16>,
    %cst_162 = arith.constant 0.000000e+00 : f32
    %146 = vector.broadcast %cst_162 : f32 to vector<8x128xf32>
    %c0_163 = arith.constant 0 : index
    %c5_164 = arith.constant 5 : index
    %c0_165 = arith.constant 0 : index
    %c0_166 = arith.constant 0 : index
    %147 = vector.load %arg1[%c0_163, %c5_164, %c0_165, %c0_166] : memref<1x9x9x64xbf16, #tpu.memory_space<vmem>>, vector<1x1x8x64xbf16>
    %148 = vector.shape_cast %147 : vector<1x1x8x64xbf16> to vector<8x64xbf16>
    %c0_167 = arith.constant 0 : index
    %c0_168 = arith.constant 0 : index
    %149 = vector.load %arg2[%c0_167, %c0_168] : memref<256x128xbf16, #tpu.memory_space<vmem>>, vector<64x128xbf16>
    %cst_169 = arith.constant dense<0.000000e+00> : vector<8x128xf32>
    %150 = tpu.matmul %148, %149, %cst_169 {dimension_numbers = #tpu.dot_dimension_numbers<[1], [0], [0], [1], [0, 0, 1, 1], [], []>} : vector<8x64xbf16>, vector<64x128xbf16>, vector<8x128xf32> -> vector<8x128xf32>
    %151 = arith.addf %146, %150 : vector<8x128xf32>
    %c0_170 = arith.constant 0 : index
    %c5_171 = arith.constant 5 : index
    %c1_172 = arith.constant 1 : index
    %c0_173 = arith.constant 0 : index
    %152 = vector.load %arg1[%c0_170, %c5_171, %c1_172, %c0_173] : memref<1x9x9x64xbf16, #tpu.memory_space<vmem>>, vector<1x1x8x64xbf16>
    %153 = vector.shape_cast %152 : vector<1x1x8x64xbf16> to vector<8x64xbf16>
    %c64_174 = arith.constant 64 : index
    %c0_175 = arith.constant 0 : index
    %154 = vector.load %arg2[%c64_174, %c0_175] : memref<256x128xbf16, #tpu.memory_space<vmem>>, vector<64x128xbf16>
    %cst_176 = arith.constant dense<0.000000e+00> : vector<8x128xf32>
    %155 = tpu.matmul %153, %154, %cst_176 {dimension_numbers = #tpu.dot_dimension_numbers<[1], [0], [0], [1], [0, 0, 1, 1], [], []>} : vector<8x64xbf16>, vector<64x128xbf16>, vector<8x128xf32> -> vector<8x128xf32>
    %156 = arith.addf %151, %155 : vector<8x128xf32>
    %c0_177 = arith.constant 0 : index
    %c6 = arith.constant 6 : index
    %c0_178 = arith.constant 0 : index
    %c0_179 = arith.constant 0 : index
    %157 = vector.load %arg1[%c0_177, %c6, %c0_178, %c0_179] : memref<1x9x9x64xbf16, #tpu.memory_space<vmem>>, vector<1x1x8x64xbf16>
    %158 = vector.shape_cast %157 : vector<1x1x8x64xbf16> to vector<8x64xbf16>
    %c128_180 = arith.constant 128 : index
    %c0_181 = arith.constant 0 : index
    %159 = vector.load %arg2[%c128_180, %c0_181] : memref<256x128xbf16, #tpu.memory_space<vmem>>, vector<64x128xbf16>
    %cst_182 = arith.constant dense<0.000000e+00> : vector<8x128xf32>
    %160 = tpu.matmul %158, %159, %cst_182 {dimension_numbers = #tpu.dot_dimension_numbers<[1], [0], [0], [1], [0, 0, 1, 1], [], []>} : vector<8x64xbf16>, vector<64x128xbf16>, vector<8x128xf32> -> vector<8x128xf32>
    %161 = arith.addf %156, %160 : vector<8x128xf32>
    %c0_183 = arith.constant 0 : index
    %c6_184 = arith.constant 6 : index
    %c1_185 = arith.constant 1 : index
    %c0_186 = arith.constant 0 : index
    %162 = vector.load %arg1[%c0_183, %c6_184, %c1_185, %c0_186] : memref<1x9x9x64xbf16, #tpu.memory_space<vmem>>, vector<1x1x8x64xbf16>
    %163 = vector.shape_cast %162 : vector<1x1x8x64xbf16> to vector<8x64xbf16>
    %c192_187 = arith.constant 192 : index
    %c0_188 = arith.constant 0 : index
    %164 = vector.load %arg2[%c192_187, %c0_188] : memref<256x128xbf16, #tpu.memory_space<vmem>>, vector<64x128xbf16>
    %cst_189 = arith.constant dense<0.000000e+00> : vector<8x128xf32>
    %165 = tpu.matmul %163, %164, %cst_189 {dimension_numbers = #tpu.dot_dimension_numbers<[1], [0], [0], [1], [0, 0, 1, 1], [], []>} : vector<8x64xbf16>, vector<64x128xbf16>, vector<8x128xf32> -> vector<8x128xf32>
    %166 = arith.addf %161, %165 : vector<8x128xf32>
    %167 = vector.broadcast %0 : vector<1x128xf32> to vector<8x128xf32>
    %168 = arith.addf %166, %167 : vector<8x128xf32>
    %cst_190 = arith.constant 0.000000e+00 : f32
    %169 = vector.broadcast %cst_190 : f32 to vector<8x128xf32>
    %170 = arith.maximumf %168, %169 : vector<8x128xf32>
    %171 = arith.truncf %170 : vector<8x128xf32> to vector<8x128xbf16>
    %c0_191 = arith.constant 0 : index
    %c5_192 = arith.constant 5 : index
    %c0_193 = arith.constant 0 : index
    %c0_194 = arith.constant 0 : index
    %172 = vector.load %arg4[%c0_191, %c5_192, %c0_193, %c0_194] : memref<1x8x8x128xbf16, #tpu.memory_space<vmem>>, vector<1x1x8x128xbf16>
    %173 = vector.shape_cast %172 : vector<1x1x8x128xbf16> to vector<8x128xbf16>
    %174 = vector.shape_cast %171 : vector<8x128xbf16> to vector<1x1x8x128xbf16>
    tpu.vector_store %arg4[%c0_191, %c5_192, %c0_193, %c0_194], %174 {strides = array<i32>} : memref<1x8x8x128xbf16, #tpu.memory_space<vmem>>, vector<1x1x8x128xbf16>,
    %cst_195 = arith.constant 0.000000e+00 : f32
    %175 = vector.broadcast %cst_195 : f32 to vector<8x128xf32>
    %c0_196 = arith.constant 0 : index
    %c6_197 = arith.constant 6 : index
    %c0_198 = arith.constant 0 : index
    %c0_199 = arith.constant 0 : index
    %176 = vector.load %arg1[%c0_196, %c6_197, %c0_198, %c0_199] : memref<1x9x9x64xbf16, #tpu.memory_space<vmem>>, vector<1x1x8x64xbf16>
    %177 = vector.shape_cast %176 : vector<1x1x8x64xbf16> to vector<8x64xbf16>
    %c0_200 = arith.constant 0 : index
    %c0_201 = arith.constant 0 : index
    %178 = vector.load %arg2[%c0_200, %c0_201] : memref<256x128xbf16, #tpu.memory_space<vmem>>, vector<64x128xbf16>
    %cst_202 = arith.constant dense<0.000000e+00> : vector<8x128xf32>
    %179 = tpu.matmul %177, %178, %cst_202 {dimension_numbers = #tpu.dot_dimension_numbers<[1], [0], [0], [1], [0, 0, 1, 1], [], []>} : vector<8x64xbf16>, vector<64x128xbf16>, vector<8x128xf32> -> vector<8x128xf32>
    %180 = arith.addf %175, %179 : vector<8x128xf32>
    %c0_203 = arith.constant 0 : index
    %c6_204 = arith.constant 6 : index
    %c1_205 = arith.constant 1 : index
    %c0_206 = arith.constant 0 : index
    %181 = vector.load %arg1[%c0_203, %c6_204, %c1_205, %c0_206] : memref<1x9x9x64xbf16, #tpu.memory_space<vmem>>, vector<1x1x8x64xbf16>
    %182 = vector.shape_cast %181 : vector<1x1x8x64xbf16> to vector<8x64xbf16>
    %c64_207 = arith.constant 64 : index
    %c0_208 = arith.constant 0 : index
    %183 = vector.load %arg2[%c64_207, %c0_208] : memref<256x128xbf16, #tpu.memory_space<vmem>>, vector<64x128xbf16>
    %cst_209 = arith.constant dense<0.000000e+00> : vector<8x128xf32>
    %184 = tpu.matmul %182, %183, %cst_209 {dimension_numbers = #tpu.dot_dimension_numbers<[1], [0], [0], [1], [0, 0, 1, 1], [], []>} : vector<8x64xbf16>, vector<64x128xbf16>, vector<8x128xf32> -> vector<8x128xf32>
    %185 = arith.addf %180, %184 : vector<8x128xf32>
    %c0_210 = arith.constant 0 : index
    %c7 = arith.constant 7 : index
    %c0_211 = arith.constant 0 : index
    %c0_212 = arith.constant 0 : index
    %186 = vector.load %arg1[%c0_210, %c7, %c0_211, %c0_212] : memref<1x9x9x64xbf16, #tpu.memory_space<vmem>>, vector<1x1x8x64xbf16>
    %187 = vector.shape_cast %186 : vector<1x1x8x64xbf16> to vector<8x64xbf16>
    %c128_213 = arith.constant 128 : index
    %c0_214 = arith.constant 0 : index
    %188 = vector.load %arg2[%c128_213, %c0_214] : memref<256x128xbf16, #tpu.memory_space<vmem>>, vector<64x128xbf16>
    %cst_215 = arith.constant dense<0.000000e+00> : vector<8x128xf32>
    %189 = tpu.matmul %187, %188, %cst_215 {dimension_numbers = #tpu.dot_dimension_numbers<[1], [0], [0], [1], [0, 0, 1, 1], [], []>} : vector<8x64xbf16>, vector<64x128xbf16>, vector<8x128xf32> -> vector<8x128xf32>
    %190 = arith.addf %185, %189 : vector<8x128xf32>
    %c0_216 = arith.constant 0 : index
    %c7_217 = arith.constant 7 : index
    %c1_218 = arith.constant 1 : index
    %c0_219 = arith.constant 0 : index
    %191 = vector.load %arg1[%c0_216, %c7_217, %c1_218, %c0_219] : memref<1x9x9x64xbf16, #tpu.memory_space<vmem>>, vector<1x1x8x64xbf16>
    %192 = vector.shape_cast %191 : vector<1x1x8x64xbf16> to vector<8x64xbf16>
    %c192_220 = arith.constant 192 : index
    %c0_221 = arith.constant 0 : index
    %193 = vector.load %arg2[%c192_220, %c0_221] : memref<256x128xbf16, #tpu.memory_space<vmem>>, vector<64x128xbf16>
    %cst_222 = arith.constant dense<0.000000e+00> : vector<8x128xf32>
    %194 = tpu.matmul %192, %193, %cst_222 {dimension_numbers = #tpu.dot_dimension_numbers<[1], [0], [0], [1], [0, 0, 1, 1], [], []>} : vector<8x64xbf16>, vector<64x128xbf16>, vector<8x128xf32> -> vector<8x128xf32>
    %195 = arith.addf %190, %194 : vector<8x128xf32>
    %196 = vector.broadcast %0 : vector<1x128xf32> to vector<8x128xf32>
    %197 = arith.addf %195, %196 : vector<8x128xf32>
    %cst_223 = arith.constant 0.000000e+00 : f32
    %198 = vector.broadcast %cst_223 : f32 to vector<8x128xf32>
    %199 = arith.maximumf %197, %198 : vector<8x128xf32>
    %200 = arith.truncf %199 : vector<8x128xf32> to vector<8x128xbf16>
    %c0_224 = arith.constant 0 : index
    %c6_225 = arith.constant 6 : index
    %c0_226 = arith.constant 0 : index
    %c0_227 = arith.constant 0 : index
    %201 = vector.load %arg4[%c0_224, %c6_225, %c0_226, %c0_227] : memref<1x8x8x128xbf16, #tpu.memory_space<vmem>>, vector<1x1x8x128xbf16>
    %202 = vector.shape_cast %201 : vector<1x1x8x128xbf16> to vector<8x128xbf16>
    %203 = vector.shape_cast %200 : vector<8x128xbf16> to vector<1x1x8x128xbf16>
    tpu.vector_store %arg4[%c0_224, %c6_225, %c0_226, %c0_227], %203 {strides = array<i32>} : memref<1x8x8x128xbf16, #tpu.memory_space<vmem>>, vector<1x1x8x128xbf16>,
    %cst_228 = arith.constant 0.000000e+00 : f32
    %204 = vector.broadcast %cst_228 : f32 to vector<8x128xf32>
    %c0_229 = arith.constant 0 : index
    %c7_230 = arith.constant 7 : index
    %c0_231 = arith.constant 0 : index
    %c0_232 = arith.constant 0 : index
    %205 = vector.load %arg1[%c0_229, %c7_230, %c0_231, %c0_232] : memref<1x9x9x64xbf16, #tpu.memory_space<vmem>>, vector<1x1x8x64xbf16>
    %206 = vector.shape_cast %205 : vector<1x1x8x64xbf16> to vector<8x64xbf16>
    %c0_233 = arith.constant 0 : index
    %c0_234 = arith.constant 0 : index
    %207 = vector.load %arg2[%c0_233, %c0_234] : memref<256x128xbf16, #tpu.memory_space<vmem>>, vector<64x128xbf16>
    %cst_235 = arith.constant dense<0.000000e+00> : vector<8x128xf32>
    %208 = tpu.matmul %206, %207, %cst_235 {dimension_numbers = #tpu.dot_dimension_numbers<[1], [0], [0], [1], [0, 0, 1, 1], [], []>} : vector<8x64xbf16>, vector<64x128xbf16>, vector<8x128xf32> -> vector<8x128xf32>
    %209 = arith.addf %204, %208 : vector<8x128xf32>
    %c0_236 = arith.constant 0 : index
    %c7_237 = arith.constant 7 : index
    %c1_238 = arith.constant 1 : index
    %c0_239 = arith.constant 0 : index
    %210 = vector.load %arg1[%c0_236, %c7_237, %c1_238, %c0_239] : memref<1x9x9x64xbf16, #tpu.memory_space<vmem>>, vector<1x1x8x64xbf16>
    %211 = vector.shape_cast %210 : vector<1x1x8x64xbf16> to vector<8x64xbf16>
    %c64_240 = arith.constant 64 : index
    %c0_241 = arith.constant 0 : index
    %212 = vector.load %arg2[%c64_240, %c0_241] : memref<256x128xbf16, #tpu.memory_space<vmem>>, vector<64x128xbf16>
    %cst_242 = arith.constant dense<0.000000e+00> : vector<8x128xf32>
    %213 = tpu.matmul %211, %212, %cst_242 {dimension_numbers = #tpu.dot_dimension_numbers<[1], [0], [0], [1], [0, 0, 1, 1], [], []>} : vector<8x64xbf16>, vector<64x128xbf16>, vector<8x128xf32> -> vector<8x128xf32>
    %214 = arith.addf %209, %213 : vector<8x128xf32>
    %c0_243 = arith.constant 0 : index
    %c8 = arith.constant 8 : index
    %c0_244 = arith.constant 0 : index
    %c0_245 = arith.constant 0 : index
    %215 = vector.load %arg1[%c0_243, %c8, %c0_244, %c0_245] : memref<1x9x9x64xbf16, #tpu.memory_space<vmem>>, vector<1x1x8x64xbf16>
    %216 = vector.shape_cast %215 : vector<1x1x8x64xbf16> to vector<8x64xbf16>
    %c128_246 = arith.constant 128 : index
    %c0_247 = arith.constant 0 : index
    %217 = vector.load %arg2[%c128_246, %c0_247] : memref<256x128xbf16, #tpu.memory_space<vmem>>, vector<64x128xbf16>
    %cst_248 = arith.constant dense<0.000000e+00> : vector<8x128xf32>
    %218 = tpu.matmul %216, %217, %cst_248 {dimension_numbers = #tpu.dot_dimension_numbers<[1], [0], [0], [1], [0, 0, 1, 1], [], []>} : vector<8x64xbf16>, vector<64x128xbf16>, vector<8x128xf32> -> vector<8x128xf32>
    %219 = arith.addf %214, %218 : vector<8x128xf32>
    %c0_249 = arith.constant 0 : index
    %c8_250 = arith.constant 8 : index
    %c1_251 = arith.constant 1 : index
    %c0_252 = arith.constant 0 : index
    %220 = vector.load %arg1[%c0_249, %c8_250, %c1_251, %c0_252] : memref<1x9x9x64xbf16, #tpu.memory_space<vmem>>, vector<1x1x8x64xbf16>
    %221 = vector.shape_cast %220 : vector<1x1x8x64xbf16> to vector<8x64xbf16>
    %c192_253 = arith.constant 192 : index
    %c0_254 = arith.constant 0 : index
    %222 = vector.load %arg2[%c192_253, %c0_254] : memref<256x128xbf16, #tpu.memory_space<vmem>>, vector<64x128xbf16>
    %cst_255 = arith.constant dense<0.000000e+00> : vector<8x128xf32>
    %223 = tpu.matmul %221, %222, %cst_255 {dimension_numbers = #tpu.dot_dimension_numbers<[1], [0], [0], [1], [0, 0, 1, 1], [], []>} : vector<8x64xbf16>, vector<64x128xbf16>, vector<8x128xf32> -> vector<8x128xf32>
    %224 = arith.addf %219, %223 : vector<8x128xf32>
    %225 = vector.broadcast %0 : vector<1x128xf32> to vector<8x128xf32>
    %226 = arith.addf %224, %225 : vector<8x128xf32>
    %cst_256 = arith.constant 0.000000e+00 : f32
    %227 = vector.broadcast %cst_256 : f32 to vector<8x128xf32>
    %228 = arith.maximumf %226, %227 : vector<8x128xf32>
    %229 = arith.truncf %228 : vector<8x128xf32> to vector<8x128xbf16>
    %c0_257 = arith.constant 0 : index
    %c7_258 = arith.constant 7 : index
    %c0_259 = arith.constant 0 : index
    %c0_260 = arith.constant 0 : index
    %230 = vector.load %arg4[%c0_257, %c7_258, %c0_259, %c0_260] : memref<1x8x8x128xbf16, #tpu.memory_space<vmem>>, vector<1x1x8x128xbf16>
    %231 = vector.shape_cast %230 : vector<1x1x8x128xbf16> to vector<8x128xbf16>
    %232 = vector.shape_cast %229 : vector<8x128xbf16> to vector<1x1x8x128xbf16>
    tpu.vector_store %arg4[%c0_257, %c7_258, %c0_259, %c0_260], %232 {strides = array<i32>} : memref<1x8x8x128xbf16, #tpu.memory_space<vmem>>, vector<1x1x8x128xbf16>,
    return
  }
  func.func @transform_0(%arg0: i32) -> (i32, i32, i32, i32) {
    %c0_i32 = arith.constant 0 : i32
    %c0_i32_0 = arith.constant 0 : i32
    %c0_i32_1 = arith.constant 0 : i32
    %c0_i32_2 = arith.constant 0 : i32
    return %arg0, %c0_i32, %c0_i32_0, %c0_i32_1 : i32, i32, i32, i32
  }
  func.func @transform_1(%arg0: i32) -> (i32, i32) {
    %c0_i32 = arith.constant 0 : i32
    %c0_i32_0 = arith.constant 0 : i32
    %c0_i32_1 = arith.constant 0 : i32
    return %c0_i32, %c0_i32_0 : i32, i32
  }
  func.func @transform_2(%arg0: i32) -> (i32, i32) {
    %c0_i32 = arith.constant 0 : i32
    %c0_i32_0 = arith.constant 0 : i32
    %c0_i32_1 = arith.constant 0 : i32
    return %c0_i32, %c0_i32_0 : i32, i32
  }
  func.func @transform_3(%arg0: i32) -> (i32, i32, i32, i32) {
    %c0_i32 = arith.constant 0 : i32
    %c0_i32_0 = arith.constant 0 : i32
    %c0_i32_1 = arith.constant 0 : i32
    %c0_i32_2 = arith.constant 0 : i32
    return %arg0, %c0_i32, %c0_i32_0, %c0_i32_1 : i32, i32, i32, i32
  }
}

module attributes {stable_mosaic.version = 11 : i64} {
  func.func @_conv2x2_kernel(%arg0: i32, %arg1: memref<1x4x4x512xbf16, #tpu.memory_space<vmem>>, %arg2: memref<2048x128xbf16, #tpu.memory_space<vmem>>, %arg3: memref<1x128xf32, #tpu.memory_space<vmem>>, %arg4: memref<1x3x3x128xbf16, #tpu.memory_space<vmem>>) attributes {dimension_semantics = [#tpu.dimension_semantics<parallel>], iteration_bounds = array<i64: 2>, scalar_prefetch = 0 : i64, scratch_operands = 0 : i64, tpu.core_type = #tpu.core_type<tc>, window_params = [{transform_indices = @transform_0, window_bounds = array<i64: 1, 4, 4, 512>}, {pipeline_mode = #tpu.pipeline_mode<synchronous>, transform_indices = @transform_1, window_bounds = array<i64: 2048, 128>}, {pipeline_mode = #tpu.pipeline_mode<synchronous>, transform_indices = @transform_2, window_bounds = array<i64: 1, 128>}, {transform_indices = @transform_3, window_bounds = array<i64: 1, 3, 3, 128>}]} {
    %c0 = arith.constant 0 : index
    %c0_0 = arith.constant 0 : index
    %0 = vector.load %arg3[%c0, %c0_0] : memref<1x128xf32, #tpu.memory_space<vmem>>, vector<1x128xf32>
    %cst = arith.constant 0.000000e+00 : f32
    %1 = vector.broadcast %cst : f32 to vector<3x128xf32>
    %c0_1 = arith.constant 0 : index
    %c0_2 = arith.constant 0 : index
    %c0_3 = arith.constant 0 : index
    %c0_4 = arith.constant 0 : index
    %2 = vector.load %arg1[%c0_1, %c0_2, %c0_3, %c0_4] : memref<1x4x4x512xbf16, #tpu.memory_space<vmem>>, vector<1x1x3x512xbf16>
    %3 = vector.shape_cast %2 : vector<1x1x3x512xbf16> to vector<3x512xbf16>
    %c0_5 = arith.constant 0 : index
    %c0_6 = arith.constant 0 : index
    %4 = vector.load %arg2[%c0_5, %c0_6] : memref<2048x128xbf16, #tpu.memory_space<vmem>>, vector<512x128xbf16>
    %cst_7 = arith.constant dense<0.000000e+00> : vector<3x128xf32>
    %5 = tpu.matmul %3, %4, %cst_7 {dimension_numbers = #tpu.dot_dimension_numbers<[1], [0], [0], [1], [0, 0, 1, 1], [], []>} : vector<3x512xbf16>, vector<512x128xbf16>, vector<3x128xf32> -> vector<3x128xf32>
    %6 = arith.addf %1, %5 : vector<3x128xf32>
    %c0_8 = arith.constant 0 : index
    %c0_9 = arith.constant 0 : index
    %c1 = arith.constant 1 : index
    %c0_10 = arith.constant 0 : index
    %7 = vector.load %arg1[%c0_8, %c0_9, %c1, %c0_10] : memref<1x4x4x512xbf16, #tpu.memory_space<vmem>>, vector<1x1x3x512xbf16>
    %8 = vector.shape_cast %7 : vector<1x1x3x512xbf16> to vector<3x512xbf16>
    %c512 = arith.constant 512 : index
    %c0_11 = arith.constant 0 : index
    %9 = vector.load %arg2[%c512, %c0_11] : memref<2048x128xbf16, #tpu.memory_space<vmem>>, vector<512x128xbf16>
    %cst_12 = arith.constant dense<0.000000e+00> : vector<3x128xf32>
    %10 = tpu.matmul %8, %9, %cst_12 {dimension_numbers = #tpu.dot_dimension_numbers<[1], [0], [0], [1], [0, 0, 1, 1], [], []>} : vector<3x512xbf16>, vector<512x128xbf16>, vector<3x128xf32> -> vector<3x128xf32>
    %11 = arith.addf %6, %10 : vector<3x128xf32>
    %c0_13 = arith.constant 0 : index
    %c1_14 = arith.constant 1 : index
    %c0_15 = arith.constant 0 : index
    %c0_16 = arith.constant 0 : index
    %12 = vector.load %arg1[%c0_13, %c1_14, %c0_15, %c0_16] : memref<1x4x4x512xbf16, #tpu.memory_space<vmem>>, vector<1x1x3x512xbf16>
    %13 = vector.shape_cast %12 : vector<1x1x3x512xbf16> to vector<3x512xbf16>
    %c1024 = arith.constant 1024 : index
    %c0_17 = arith.constant 0 : index
    %14 = vector.load %arg2[%c1024, %c0_17] : memref<2048x128xbf16, #tpu.memory_space<vmem>>, vector<512x128xbf16>
    %cst_18 = arith.constant dense<0.000000e+00> : vector<3x128xf32>
    %15 = tpu.matmul %13, %14, %cst_18 {dimension_numbers = #tpu.dot_dimension_numbers<[1], [0], [0], [1], [0, 0, 1, 1], [], []>} : vector<3x512xbf16>, vector<512x128xbf16>, vector<3x128xf32> -> vector<3x128xf32>
    %16 = arith.addf %11, %15 : vector<3x128xf32>
    %c0_19 = arith.constant 0 : index
    %c1_20 = arith.constant 1 : index
    %c1_21 = arith.constant 1 : index
    %c0_22 = arith.constant 0 : index
    %17 = vector.load %arg1[%c0_19, %c1_20, %c1_21, %c0_22] : memref<1x4x4x512xbf16, #tpu.memory_space<vmem>>, vector<1x1x3x512xbf16>
    %18 = vector.shape_cast %17 : vector<1x1x3x512xbf16> to vector<3x512xbf16>
    %c1536 = arith.constant 1536 : index
    %c0_23 = arith.constant 0 : index
    %19 = vector.load %arg2[%c1536, %c0_23] : memref<2048x128xbf16, #tpu.memory_space<vmem>>, vector<512x128xbf16>
    %cst_24 = arith.constant dense<0.000000e+00> : vector<3x128xf32>
    %20 = tpu.matmul %18, %19, %cst_24 {dimension_numbers = #tpu.dot_dimension_numbers<[1], [0], [0], [1], [0, 0, 1, 1], [], []>} : vector<3x512xbf16>, vector<512x128xbf16>, vector<3x128xf32> -> vector<3x128xf32>
    %21 = arith.addf %16, %20 : vector<3x128xf32>
    %22 = vector.broadcast %0 : vector<1x128xf32> to vector<3x128xf32>
    %23 = arith.addf %21, %22 : vector<3x128xf32>
    %cst_25 = arith.constant 0.000000e+00 : f32
    %24 = vector.broadcast %cst_25 : f32 to vector<3x128xf32>
    %25 = arith.maximumf %23, %24 : vector<3x128xf32>
    %26 = arith.truncf %25 : vector<3x128xf32> to vector<3x128xbf16>
    %c0_26 = arith.constant 0 : index
    %c0_27 = arith.constant 0 : index
    %c0_28 = arith.constant 0 : index
    %c0_29 = arith.constant 0 : index
    %27 = vector.load %arg4[%c0_26, %c0_27, %c0_28, %c0_29] : memref<1x3x3x128xbf16, #tpu.memory_space<vmem>>, vector<1x1x3x128xbf16>
    %28 = vector.shape_cast %27 : vector<1x1x3x128xbf16> to vector<3x128xbf16>
    %29 = vector.shape_cast %26 : vector<3x128xbf16> to vector<1x1x3x128xbf16>
    tpu.vector_store %arg4[%c0_26, %c0_27, %c0_28, %c0_29], %29 {strides = array<i32>} : memref<1x3x3x128xbf16, #tpu.memory_space<vmem>>, vector<1x1x3x128xbf16>,
    %cst_30 = arith.constant 0.000000e+00 : f32
    %30 = vector.broadcast %cst_30 : f32 to vector<3x128xf32>
    %c0_31 = arith.constant 0 : index
    %c1_32 = arith.constant 1 : index
    %c0_33 = arith.constant 0 : index
    %c0_34 = arith.constant 0 : index
    %31 = vector.load %arg1[%c0_31, %c1_32, %c0_33, %c0_34] : memref<1x4x4x512xbf16, #tpu.memory_space<vmem>>, vector<1x1x3x512xbf16>
    %32 = vector.shape_cast %31 : vector<1x1x3x512xbf16> to vector<3x512xbf16>
    %c0_35 = arith.constant 0 : index
    %c0_36 = arith.constant 0 : index
    %33 = vector.load %arg2[%c0_35, %c0_36] : memref<2048x128xbf16, #tpu.memory_space<vmem>>, vector<512x128xbf16>
    %cst_37 = arith.constant dense<0.000000e+00> : vector<3x128xf32>
    %34 = tpu.matmul %32, %33, %cst_37 {dimension_numbers = #tpu.dot_dimension_numbers<[1], [0], [0], [1], [0, 0, 1, 1], [], []>} : vector<3x512xbf16>, vector<512x128xbf16>, vector<3x128xf32> -> vector<3x128xf32>
    %35 = arith.addf %30, %34 : vector<3x128xf32>
    %c0_38 = arith.constant 0 : index
    %c1_39 = arith.constant 1 : index
    %c1_40 = arith.constant 1 : index
    %c0_41 = arith.constant 0 : index
    %36 = vector.load %arg1[%c0_38, %c1_39, %c1_40, %c0_41] : memref<1x4x4x512xbf16, #tpu.memory_space<vmem>>, vector<1x1x3x512xbf16>
    %37 = vector.shape_cast %36 : vector<1x1x3x512xbf16> to vector<3x512xbf16>
    %c512_42 = arith.constant 512 : index
    %c0_43 = arith.constant 0 : index
    %38 = vector.load %arg2[%c512_42, %c0_43] : memref<2048x128xbf16, #tpu.memory_space<vmem>>, vector<512x128xbf16>
    %cst_44 = arith.constant dense<0.000000e+00> : vector<3x128xf32>
    %39 = tpu.matmul %37, %38, %cst_44 {dimension_numbers = #tpu.dot_dimension_numbers<[1], [0], [0], [1], [0, 0, 1, 1], [], []>} : vector<3x512xbf16>, vector<512x128xbf16>, vector<3x128xf32> -> vector<3x128xf32>
    %40 = arith.addf %35, %39 : vector<3x128xf32>
    %c0_45 = arith.constant 0 : index
    %c2 = arith.constant 2 : index
    %c0_46 = arith.constant 0 : index
    %c0_47 = arith.constant 0 : index
    %41 = vector.load %arg1[%c0_45, %c2, %c0_46, %c0_47] : memref<1x4x4x512xbf16, #tpu.memory_space<vmem>>, vector<1x1x3x512xbf16>
    %42 = vector.shape_cast %41 : vector<1x1x3x512xbf16> to vector<3x512xbf16>
    %c1024_48 = arith.constant 1024 : index
    %c0_49 = arith.constant 0 : index
    %43 = vector.load %arg2[%c1024_48, %c0_49] : memref<2048x128xbf16, #tpu.memory_space<vmem>>, vector<512x128xbf16>
    %cst_50 = arith.constant dense<0.000000e+00> : vector<3x128xf32>
    %44 = tpu.matmul %42, %43, %cst_50 {dimension_numbers = #tpu.dot_dimension_numbers<[1], [0], [0], [1], [0, 0, 1, 1], [], []>} : vector<3x512xbf16>, vector<512x128xbf16>, vector<3x128xf32> -> vector<3x128xf32>
    %45 = arith.addf %40, %44 : vector<3x128xf32>
    %c0_51 = arith.constant 0 : index
    %c2_52 = arith.constant 2 : index
    %c1_53 = arith.constant 1 : index
    %c0_54 = arith.constant 0 : index
    %46 = vector.load %arg1[%c0_51, %c2_52, %c1_53, %c0_54] : memref<1x4x4x512xbf16, #tpu.memory_space<vmem>>, vector<1x1x3x512xbf16>
    %47 = vector.shape_cast %46 : vector<1x1x3x512xbf16> to vector<3x512xbf16>
    %c1536_55 = arith.constant 1536 : index
    %c0_56 = arith.constant 0 : index
    %48 = vector.load %arg2[%c1536_55, %c0_56] : memref<2048x128xbf16, #tpu.memory_space<vmem>>, vector<512x128xbf16>
    %cst_57 = arith.constant dense<0.000000e+00> : vector<3x128xf32>
    %49 = tpu.matmul %47, %48, %cst_57 {dimension_numbers = #tpu.dot_dimension_numbers<[1], [0], [0], [1], [0, 0, 1, 1], [], []>} : vector<3x512xbf16>, vector<512x128xbf16>, vector<3x128xf32> -> vector<3x128xf32>
    %50 = arith.addf %45, %49 : vector<3x128xf32>
    %51 = vector.broadcast %0 : vector<1x128xf32> to vector<3x128xf32>
    %52 = arith.addf %50, %51 : vector<3x128xf32>
    %cst_58 = arith.constant 0.000000e+00 : f32
    %53 = vector.broadcast %cst_58 : f32 to vector<3x128xf32>
    %54 = arith.maximumf %52, %53 : vector<3x128xf32>
    %55 = arith.truncf %54 : vector<3x128xf32> to vector<3x128xbf16>
    %c0_59 = arith.constant 0 : index
    %c1_60 = arith.constant 1 : index
    %c0_61 = arith.constant 0 : index
    %c0_62 = arith.constant 0 : index
    %56 = vector.load %arg4[%c0_59, %c1_60, %c0_61, %c0_62] : memref<1x3x3x128xbf16, #tpu.memory_space<vmem>>, vector<1x1x3x128xbf16>
    %57 = vector.shape_cast %56 : vector<1x1x3x128xbf16> to vector<3x128xbf16>
    %58 = vector.shape_cast %55 : vector<3x128xbf16> to vector<1x1x3x128xbf16>
    tpu.vector_store %arg4[%c0_59, %c1_60, %c0_61, %c0_62], %58 {strides = array<i32>} : memref<1x3x3x128xbf16, #tpu.memory_space<vmem>>, vector<1x1x3x128xbf16>,
    %cst_63 = arith.constant 0.000000e+00 : f32
    %59 = vector.broadcast %cst_63 : f32 to vector<3x128xf32>
    %c0_64 = arith.constant 0 : index
    %c2_65 = arith.constant 2 : index
    %c0_66 = arith.constant 0 : index
    %c0_67 = arith.constant 0 : index
    %60 = vector.load %arg1[%c0_64, %c2_65, %c0_66, %c0_67] : memref<1x4x4x512xbf16, #tpu.memory_space<vmem>>, vector<1x1x3x512xbf16>
    %61 = vector.shape_cast %60 : vector<1x1x3x512xbf16> to vector<3x512xbf16>
    %c0_68 = arith.constant 0 : index
    %c0_69 = arith.constant 0 : index
    %62 = vector.load %arg2[%c0_68, %c0_69] : memref<2048x128xbf16, #tpu.memory_space<vmem>>, vector<512x128xbf16>
    %cst_70 = arith.constant dense<0.000000e+00> : vector<3x128xf32>
    %63 = tpu.matmul %61, %62, %cst_70 {dimension_numbers = #tpu.dot_dimension_numbers<[1], [0], [0], [1], [0, 0, 1, 1], [], []>} : vector<3x512xbf16>, vector<512x128xbf16>, vector<3x128xf32> -> vector<3x128xf32>
    %64 = arith.addf %59, %63 : vector<3x128xf32>
    %c0_71 = arith.constant 0 : index
    %c2_72 = arith.constant 2 : index
    %c1_73 = arith.constant 1 : index
    %c0_74 = arith.constant 0 : index
    %65 = vector.load %arg1[%c0_71, %c2_72, %c1_73, %c0_74] : memref<1x4x4x512xbf16, #tpu.memory_space<vmem>>, vector<1x1x3x512xbf16>
    %66 = vector.shape_cast %65 : vector<1x1x3x512xbf16> to vector<3x512xbf16>
    %c512_75 = arith.constant 512 : index
    %c0_76 = arith.constant 0 : index
    %67 = vector.load %arg2[%c512_75, %c0_76] : memref<2048x128xbf16, #tpu.memory_space<vmem>>, vector<512x128xbf16>
    %cst_77 = arith.constant dense<0.000000e+00> : vector<3x128xf32>
    %68 = tpu.matmul %66, %67, %cst_77 {dimension_numbers = #tpu.dot_dimension_numbers<[1], [0], [0], [1], [0, 0, 1, 1], [], []>} : vector<3x512xbf16>, vector<512x128xbf16>, vector<3x128xf32> -> vector<3x128xf32>
    %69 = arith.addf %64, %68 : vector<3x128xf32>
    %c0_78 = arith.constant 0 : index
    %c3 = arith.constant 3 : index
    %c0_79 = arith.constant 0 : index
    %c0_80 = arith.constant 0 : index
    %70 = vector.load %arg1[%c0_78, %c3, %c0_79, %c0_80] : memref<1x4x4x512xbf16, #tpu.memory_space<vmem>>, vector<1x1x3x512xbf16>
    %71 = vector.shape_cast %70 : vector<1x1x3x512xbf16> to vector<3x512xbf16>
    %c1024_81 = arith.constant 1024 : index
    %c0_82 = arith.constant 0 : index
    %72 = vector.load %arg2[%c1024_81, %c0_82] : memref<2048x128xbf16, #tpu.memory_space<vmem>>, vector<512x128xbf16>
    %cst_83 = arith.constant dense<0.000000e+00> : vector<3x128xf32>
    %73 = tpu.matmul %71, %72, %cst_83 {dimension_numbers = #tpu.dot_dimension_numbers<[1], [0], [0], [1], [0, 0, 1, 1], [], []>} : vector<3x512xbf16>, vector<512x128xbf16>, vector<3x128xf32> -> vector<3x128xf32>
    %74 = arith.addf %69, %73 : vector<3x128xf32>
    %c0_84 = arith.constant 0 : index
    %c3_85 = arith.constant 3 : index
    %c1_86 = arith.constant 1 : index
    %c0_87 = arith.constant 0 : index
    %75 = vector.load %arg1[%c0_84, %c3_85, %c1_86, %c0_87] : memref<1x4x4x512xbf16, #tpu.memory_space<vmem>>, vector<1x1x3x512xbf16>
    %76 = vector.shape_cast %75 : vector<1x1x3x512xbf16> to vector<3x512xbf16>
    %c1536_88 = arith.constant 1536 : index
    %c0_89 = arith.constant 0 : index
    %77 = vector.load %arg2[%c1536_88, %c0_89] : memref<2048x128xbf16, #tpu.memory_space<vmem>>, vector<512x128xbf16>
    %cst_90 = arith.constant dense<0.000000e+00> : vector<3x128xf32>
    %78 = tpu.matmul %76, %77, %cst_90 {dimension_numbers = #tpu.dot_dimension_numbers<[1], [0], [0], [1], [0, 0, 1, 1], [], []>} : vector<3x512xbf16>, vector<512x128xbf16>, vector<3x128xf32> -> vector<3x128xf32>
    %79 = arith.addf %74, %78 : vector<3x128xf32>
    %80 = vector.broadcast %0 : vector<1x128xf32> to vector<3x128xf32>
    %81 = arith.addf %79, %80 : vector<3x128xf32>
    %cst_91 = arith.constant 0.000000e+00 : f32
    %82 = vector.broadcast %cst_91 : f32 to vector<3x128xf32>
    %83 = arith.maximumf %81, %82 : vector<3x128xf32>
    %84 = arith.truncf %83 : vector<3x128xf32> to vector<3x128xbf16>
    %c0_92 = arith.constant 0 : index
    %c2_93 = arith.constant 2 : index
    %c0_94 = arith.constant 0 : index
    %c0_95 = arith.constant 0 : index
    %85 = vector.load %arg4[%c0_92, %c2_93, %c0_94, %c0_95] : memref<1x3x3x128xbf16, #tpu.memory_space<vmem>>, vector<1x1x3x128xbf16>
    %86 = vector.shape_cast %85 : vector<1x1x3x128xbf16> to vector<3x128xbf16>
    %87 = vector.shape_cast %84 : vector<3x128xbf16> to vector<1x1x3x128xbf16>
    tpu.vector_store %arg4[%c0_92, %c2_93, %c0_94, %c0_95], %87 {strides = array<i32>} : memref<1x3x3x128xbf16, #tpu.memory_space<vmem>>, vector<1x1x3x128xbf16>,
    return
  }
  func.func @transform_0(%arg0: i32) -> (i32, i32, i32, i32) {
    %c0_i32 = arith.constant 0 : i32
    %c0_i32_0 = arith.constant 0 : i32
    %c0_i32_1 = arith.constant 0 : i32
    %c0_i32_2 = arith.constant 0 : i32
    return %arg0, %c0_i32, %c0_i32_0, %c0_i32_1 : i32, i32, i32, i32
  }
  func.func @transform_1(%arg0: i32) -> (i32, i32) {
    %c0_i32 = arith.constant 0 : i32
    %c0_i32_0 = arith.constant 0 : i32
    %c0_i32_1 = arith.constant 0 : i32
    return %c0_i32, %c0_i32_0 : i32, i32
  }
  func.func @transform_2(%arg0: i32) -> (i32, i32) {
    %c0_i32 = arith.constant 0 : i32
    %c0_i32_0 = arith.constant 0 : i32
    %c0_i32_1 = arith.constant 0 : i32
    return %c0_i32, %c0_i32_0 : i32, i32
  }
  func.func @transform_3(%arg0: i32) -> (i32, i32, i32, i32) {
    %c0_i32 = arith.constant 0 : i32
    %c0_i32_0 = arith.constant 0 : i32
    %c0_i32_1 = arith.constant 0 : i32
    %c0_i32_2 = arith.constant 0 : i32
    return %arg0, %c0_i32, %c0_i32_0, %c0_i32_1 : i32, i32, i32, i32
  }
}

module attributes {stable_mosaic.version = 11 : i64} {
  func.func @_head_kernel(%arg0: i32, %arg1: memref<2x1152xbf16, #tpu.memory_space<vmem>>, %arg2: memref<1152x128xbf16, #tpu.memory_space<vmem>>, %arg3: memref<1x128xf32, #tpu.memory_space<vmem>>, %arg4: memref<128x512xbf16, #tpu.memory_space<vmem>>, %arg5: memref<1x512xf32, #tpu.memory_space<vmem>>, %arg6: memref<512x128xbf16, #tpu.memory_space<vmem>>, %arg7: memref<1x128xf32, #tpu.memory_space<vmem>>, %arg8: memref<2x128xf32, #tpu.memory_space<vmem>>) attributes {dimension_semantics = [#tpu.dimension_semantics<parallel>], iteration_bounds = array<i64: 1>, scalar_prefetch = 0 : i64, scratch_operands = 0 : i64, tpu.core_type = #tpu.core_type<tc>, window_params = [{transform_indices = @transform_0, window_bounds = array<i64: 2, 1152>}, {pipeline_mode = #tpu.pipeline_mode<synchronous>, transform_indices = @transform_1, window_bounds = array<i64: 1152, 128>}, {pipeline_mode = #tpu.pipeline_mode<synchronous>, transform_indices = @transform_2, window_bounds = array<i64: 1, 128>}, {pipeline_mode = #tpu.pipeline_mode<synchronous>, transform_indices = @transform_3, window_bounds = array<i64: 128, 512>}, {pipeline_mode = #tpu.pipeline_mode<synchronous>, transform_indices = @transform_4, window_bounds = array<i64: 1, 512>}, {pipeline_mode = #tpu.pipeline_mode<synchronous>, transform_indices = @transform_5, window_bounds = array<i64: 512, 128>}, {pipeline_mode = #tpu.pipeline_mode<synchronous>, transform_indices = @transform_6, window_bounds = array<i64: 1, 128>}, {transform_indices = @transform_7, window_bounds = array<i64: 2, 128>}]} {
    %c0 = arith.constant 0 : index
    %c0_0 = arith.constant 0 : index
    %0 = vector.load %arg1[%c0, %c0_0] : memref<2x1152xbf16, #tpu.memory_space<vmem>>, vector<2x1152xbf16>
    %c0_1 = arith.constant 0 : index
    %c0_2 = arith.constant 0 : index
    %1 = vector.load %arg2[%c0_1, %c0_2] : memref<1152x128xbf16, #tpu.memory_space<vmem>>, vector<1152x128xbf16>
    %cst = arith.constant dense<0.000000e+00> : vector<2x128xf32>
    %2 = tpu.matmul %0, %1, %cst {dimension_numbers = #tpu.dot_dimension_numbers<[1], [0], [0], [1], [0, 0, 1, 1], [], []>} : vector<2x1152xbf16>, vector<1152x128xbf16>, vector<2x128xf32> -> vector<2x128xf32>
    %c0_3 = arith.constant 0 : index
    %c0_4 = arith.constant 0 : index
    %3 = vector.load %arg3[%c0_3, %c0_4] : memref<1x128xf32, #tpu.memory_space<vmem>>, vector<1x128xf32>
    %4 = vector.broadcast %3 : vector<1x128xf32> to vector<2x128xf32>
    %5 = arith.addf %2, %4 : vector<2x128xf32>
    %cst_5 = arith.constant 0.000000e+00 : f32
    %6 = vector.broadcast %cst_5 : f32 to vector<2x128xf32>
    %7 = arith.maximumf %5, %6 : vector<2x128xf32>
    %8 = arith.truncf %7 : vector<2x128xf32> to vector<2x128xbf16>
    %c0_6 = arith.constant 0 : index
    %c0_7 = arith.constant 0 : index
    %9 = vector.load %arg4[%c0_6, %c0_7] : memref<128x512xbf16, #tpu.memory_space<vmem>>, vector<128x512xbf16>
    %cst_8 = arith.constant dense<0.000000e+00> : vector<2x512xf32>
    %10 = tpu.matmul %8, %9, %cst_8 {dimension_numbers = #tpu.dot_dimension_numbers<[1], [0], [0], [1], [0, 0, 1, 1], [], []>} : vector<2x128xbf16>, vector<128x512xbf16>, vector<2x512xf32> -> vector<2x512xf32>
    %c0_9 = arith.constant 0 : index
    %c0_10 = arith.constant 0 : index
    %11 = vector.load %arg5[%c0_9, %c0_10] : memref<1x512xf32, #tpu.memory_space<vmem>>, vector<1x512xf32>
    %12 = vector.broadcast %11 : vector<1x512xf32> to vector<2x512xf32>
    %13 = arith.addf %10, %12 : vector<2x512xf32>
    %cst_11 = arith.constant 0.000000e+00 : f32
    %14 = vector.broadcast %cst_11 : f32 to vector<2x512xf32>
    %15 = arith.maximumf %13, %14 : vector<2x512xf32>
    %16 = arith.truncf %15 : vector<2x512xf32> to vector<2x512xbf16>
    %c0_12 = arith.constant 0 : index
    %c0_13 = arith.constant 0 : index
    %17 = vector.load %arg6[%c0_12, %c0_13] : memref<512x128xbf16, #tpu.memory_space<vmem>>, vector<512x128xbf16>
    %cst_14 = arith.constant dense<0.000000e+00> : vector<2x128xf32>
    %18 = tpu.matmul %16, %17, %cst_14 {dimension_numbers = #tpu.dot_dimension_numbers<[1], [0], [0], [1], [0, 0, 1, 1], [], []>} : vector<2x512xbf16>, vector<512x128xbf16>, vector<2x128xf32> -> vector<2x128xf32>
    %c0_15 = arith.constant 0 : index
    %c0_16 = arith.constant 0 : index
    %19 = vector.load %arg7[%c0_15, %c0_16] : memref<1x128xf32, #tpu.memory_space<vmem>>, vector<1x128xf32>
    %20 = vector.broadcast %19 : vector<1x128xf32> to vector<2x128xf32>
    %21 = arith.addf %18, %20 : vector<2x128xf32>
    %c0_17 = arith.constant 0 : index
    %c0_18 = arith.constant 0 : index
    %22 = vector.load %arg8[%c0_17, %c0_18] : memref<2x128xf32, #tpu.memory_space<vmem>>, vector<2x128xf32>
    tpu.vector_store %arg8[%c0_17, %c0_18], %21 {strides = array<i32>} : memref<2x128xf32, #tpu.memory_space<vmem>>, vector<2x128xf32>,
    return
  }
  func.func @transform_0(%arg0: i32) -> (i32, i32) {
    %c0_i32 = arith.constant 0 : i32
    %c0_i32_0 = arith.constant 0 : i32
    return %arg0, %c0_i32 : i32, i32
  }
  func.func @transform_1(%arg0: i32) -> (i32, i32) {
    %c0_i32 = arith.constant 0 : i32
    %c0_i32_0 = arith.constant 0 : i32
    %c0_i32_1 = arith.constant 0 : i32
    return %c0_i32, %c0_i32_0 : i32, i32
  }
  func.func @transform_2(%arg0: i32) -> (i32, i32) {
    %c0_i32 = arith.constant 0 : i32
    %c0_i32_0 = arith.constant 0 : i32
    %c0_i32_1 = arith.constant 0 : i32
    return %c0_i32, %c0_i32_0 : i32, i32
  }
  func.func @transform_3(%arg0: i32) -> (i32, i32) {
    %c0_i32 = arith.constant 0 : i32
    %c0_i32_0 = arith.constant 0 : i32
    %c0_i32_1 = arith.constant 0 : i32
    return %c0_i32, %c0_i32_0 : i32, i32
  }
  func.func @transform_4(%arg0: i32) -> (i32, i32) {
    %c0_i32 = arith.constant 0 : i32
    %c0_i32_0 = arith.constant 0 : i32
    %c0_i32_1 = arith.constant 0 : i32
    return %c0_i32, %c0_i32_0 : i32, i32
  }
  func.func @transform_5(%arg0: i32) -> (i32, i32) {
    %c0_i32 = arith.constant 0 : i32
    %c0_i32_0 = arith.constant 0 : i32
    %c0_i32_1 = arith.constant 0 : i32
    return %c0_i32, %c0_i32_0 : i32, i32
  }
  func.func @transform_6(%arg0: i32) -> (i32, i32) {
    %c0_i32 = arith.constant 0 : i32
    %c0_i32_0 = arith.constant 0 : i32
    %c0_i32_1 = arith.constant 0 : i32
    return %c0_i32, %c0_i32_0 : i32, i32
  }
  func.func @transform_7(%arg0: i32) -> (i32, i32) {
    %c0_i32 = arith.constant 0 : i32
    %c0_i32_0 = arith.constant 0 : i32
    return %arg0, %c0_i32 : i32, i32
  }
}

</mosaic_0001>

<bundles_post_ra>
// kernel: dqn_cnn_forward.3
= control target key start
LH: loop header
LB: loop body
LE: loop exit
PB: predicated region body
PF: predicated region fallthrough
CT: control target
= control target key end

     0   :  { %s2909_s12 = smov 0   ;;  %s3419_s0 = inlined_call_operand.vmem [shape: bf16[2,9,9,64], index: 0, kind: input, shape index: {}]   ;;  %s3420_s1 = inlined_call_operand.vmem [shape: bf16[256,128], index: 1, kind: input, shape index: {}]   ;;  %s3421_s2 = inlined_call_operand.vmem [shape: f32[1,128], index: 2, kind: input, shape index: {}]   ;;  %s3422_s3 = inlined_call_operand.vmem [shape: bf16[2,8,8,128], index: 3, kind: output, shape index: {}]  }
   0x1 LB: > { %s2063_s13 = sadd.s32 4294967295, %s2887_s12   ;;  %p2067_p0 = scmp.ge.s32.totalorder %s2887_s12, 1  ;;  %s2887_s12 = sphi %s2909_s12, %s13_s12  }
   0x2   : > { %p137_p1 = scmp.lt.s32.totalorder %s2887_s12, 3 }
   0x4   : > { %p138_p2 = pnand %p2067_p0, %p137_p1 }
   0x5   : > { %p161_p3 = scmp.lt.s32.totalorder (!%p138_p2), %s2063_s13, 1 }
   0x6   : > { %141 = sbr.rel (%p138_p2) target bundleno = 284 (0x11c), region = 32 }
   0xb   : > { %v2735_v0 = vld [vmem:[%s3420_s1 + $0x38] sm:$0xff]  ;;  %v2734_v4 = vld [vmem:[%s3420_s1 + $0x30] sm:$0xff]  ;;  %s3424_s13 = smov (!%p161_p3, %s2063_s13), 1  ;;  %v2733_v8 = vld [vmem:[%s3420_s1 + $0x28] sm:$0xff]  ;;  %vm227_vm0 = vcmask 523264  }
   0xc   : > { %v2730_v1 = vld [vmem:[%s3420_s1 + $0x18] sm:$0xff]  ;;  %235 = vmatpush.bf16.msra.mxu0 %v2735_v0  ;;  %v2729_v5 = vld [vmem:[%s3420_s1 + $0x10] sm:$0xff]  ;;  %s2871_s30 = smul.u32 72, %s3424_s13  ;;  %v2728_v9 = vld [vmem:[%s3420_s1 + $0x8] sm:$0xff] }
   0xd   : > { %v2739_v2 = vld [vmem:[%s3420_s1 + $0x58] sm:$0xff]  ;;  %275 = vmatpush.bf16.msra.mxu1 %v2730_v1  ;;  %v2738_v6 = vld [vmem:[%s3420_s1 + $0x50] sm:$0xff]  ;;  %v2737_v10 = vld [vmem:[%s3420_s1 + $0x48] sm:$0xff] }
   0xe   : > { %v2744_v3 = vld [vmem:[%s3420_s1 + $0x78] sm:$0xff]  ;;  %325 = vmatpush.bf16.msra.mxu2 %v2739_v2  ;;  %v2743_v7 = vld [vmem:[%s3420_s1 + $0x70] sm:$0xff]  ;;  %s2956_s14 = scalar_lea.vmem %s3419_s0, %s2871_s30  ;;  %v2742_v11 = vld [vmem:[%s3420_s1 + $0x68] sm:$0xff] }
   0xf   : > { %388 = vmatpush.bf16.msra.mxu3 %v2744_v3  ;;  %v2073_v12 = vld [vmem:[%s2956_s14] sm:$0xf]  ;;  %v2731_v13 = vld [vmem:[%s2956_s14] sm:$0x10]  ;;  %v2131_v15 = vld [vmem:[%s2956_s14 + $0x8] sm:$0xf] }
  0x10   : > { %236 = vmatpush.bf16.msra.mxu0 %v2734_v4  ;;  %v2074_v14 = vor.u32 %v2731_v13, %v2073_v12  ;;  %v2740_v16 = vld [vmem:[%s2956_s14 + $0x8] sm:$0x10]  ;;  %v2732_v18 = vld [vmem:[%s3420_s1 + $0x20] sm:$0xff]  ;;  %v2757_v27 = vld [vmem:[%s3420_s1 + $0x58] sm:$0xff] }
  0x11   : > { %276 = vmatpush.bf16.msra.mxu1 %v2729_v5  ;;  %v2132_v17 = vor.u32 %v2740_v16, %v2131_v15  ;;  %v2727_v19 = vld [vmem:[%s3420_s1] sm:$0xff]  ;;  %v2753_v28 = vld [vmem:[%s3420_s1 + $0x38] sm:$0xff]  ;;  %v2154_v33 = vld [vmem:[%s2956_s14 + $0x8] sm:$0xf] }
  0x12   : > { %326 = vmatpush.bf16.msra.mxu2 %v2738_v6  ;;  %v197_v20 = vshrl.u32 %v2074_v14, 16  ;;  %v199_v21 = vshll.u32 %v2074_v14, 16  ;;  %v2736_v22 = vld [vmem:[%s3420_s1 + $0x40] sm:$0xff]  ;;  %v2748_v30 = vld [vmem:[%s3420_s1 + $0x18] sm:$0xff]  ;;  %v2749_v34 = vld [vmem:[%s2956_s14 + $0x8] sm:$0x10] }
  0x13   : > { %389 = vmatpush.bf16.msra.mxu3 %v2743_v7  ;;  %v2741_v23 = vld [vmem:[%s3420_s1 + $0x60] sm:$0xff]  ;;  %v351_v24 = vshrl.u32 %v2132_v17, 16  ;;  %v353_v25 = vshll.u32 %v2132_v17, 16  ;;  %v2109_v35 = vld [vmem:[%s2956_s14 + $0x8] sm:$0xf]  ;;  %v2762_v37 = vld [vmem:[%s3420_s1 + $0x78] sm:$0xff]  ;;  %v2155_v42 = vor.u32 %v2749_v34, %v2154_v33 }
  0x14   : > { %237 = vmatpush.bf16.msra.mxu0 %v2733_v8  ;;  %v201_v26 = vrot.slane %v199_v21, 1  ;;  %v173_v32 = vld [vmem:[%s2956_s14] sm:$0xf]  ;;  %v2756_v38 = vld [vmem:[%s3420_s1 + $0x50] sm:$0xff]  ;;  %v2755_v46 = vld [vmem:[%s3420_s1 + $0x48] sm:$0xff] }
  0x15   : > { %277 = vmatpush.bf16.msra.mxu1 %v2728_v9  ;;  %v355_v29 = vrot.slane %v353_v25, 1  ;;  %v2752_v39 = vld [vmem:[%s3420_s1 + $0x30] sm:$0xff]  ;;  %v2751_v47 = vld [vmem:[%s3420_s1 + $0x28] sm:$0xff]  ;;  %v431_v48 = vshll.u32 %v2155_v42, 16  ;;  %v2754_v52 = vld [vmem:[%s3420_s1 + $0x40] sm:$0xff]  ;;  %v429_v54 = vshrl.u32 %v2155_v42, 16 }
  0x16   : > { %327 = vmatpush.bf16.msra.mxu2 %v2737_v10  ;;  %v202_v31 = vor.u32 %v201_v26, %v197_v20  ;;  %v2212_v40 = vld [vmem:[%s2956_s14 + $0x10] sm:$0xf]  ;;  %v2758_v41 = vld [vmem:[%s2956_s14 + $0x10] sm:$0x10]  ;;  %v2746_v49 = vld [vmem:[%s3420_s1 + $0x8] sm:$0xff] }
  0x17   : > { %390 = vmatpush.bf16.msra.mxu3 %v2742_v11  ;;  %v356_v36 = vor.u32 %v355_v29, %v351_v24  ;;  %v2747_v43 = vld [vmem:[%s3420_s1 + $0x10] sm:$0xff]  ;;  %v2213_v45 = vor.u32 %v2758_v41, %v2212_v40  ;;  %v2760_v50 = vld [vmem:[%s3420_s1 + $0x68] sm:$0xff]  ;;  %v2750_v53 = vld [vmem:[%s3420_s1 + $0x20] sm:$0xff]  ;;  %v433_v55 = vrot.slane %v431_v48, 1 }
  0x18   : > { %238 = vmatpush.bf16.msra.mxu0 %v2732_v18  ;;  %v2761_v44 = vld [vmem:[%s3420_s1 + $0x70] sm:$0xff]  ;;  %v2775_v56 = vld [vmem:[%s3420_s1 + $0x58] sm:$0xff]  ;;  %v2745_v58 = vld [vmem:[%s3420_s1] sm:$0xff] }
  0x19   : > { %278 = vmatpush.bf16.msra.mxu1 %v2727_v19  ;;  %v584_v51 = vshll.u32 %v2213_v45, 16  ;;  %v2771_v57 = vld [vmem:[%s3420_s1 + $0x38] sm:$0xff]  ;;  %v2759_v59 = vld [vmem:[%s3420_s1 + $0x60] sm:$0xff]  ;;  %v582_v60 = vshrl.u32 %v2213_v45, 16  ;;  %v434_v0 = vor.u32 %v433_v55, %v429_v54  ;;  %v2774_v1 = vld [vmem:[%s3420_s1 + $0x50] sm:$0xff] }
  0x1a   : > { %328 = vmatpush.bf16.msra.mxu2 %v2736_v22  ;;  %v2766_v62 = vld [vmem:[%s3420_s1 + $0x18] sm:$0xff]  ;;  %v2150_v2 = vld [vmem:[%s2956_s14 + $0x8] sm:$0xf]  ;;  %v2236_v3 = vld [vmem:[%s2956_s14 + $0x10] sm:$0xf] }
  0x1b   : > { %391 = vmatpush.bf16.msra.mxu3 %v2741_v23  ;;  %2091 = vmatmul.msk.bf16.vlgmr.msra.gmra.mxu0 %vm227_vm0, %v202_v31  ;;  %v586_v61 = vrot.slane %v584_v51, 1  ;;  %v2780_v63 = vld [vmem:[%s3420_s1 + $0x78] sm:$0xff]  ;;  %v2767_v4 = vld [vmem:[%s2956_s14 + $0x10] sm:$0x10]  ;;  %v2190_v5 = vld [vmem:[%s2956_s14 + $0x10] sm:$0xf] }
  0x1c   : > { %466 = vmatpush.bf16.msrb.mxu0 %v2753_v28  ;;  %2108 = vmatmul.msk.bf16.vlgmr.msra.gmra.mxu1 %vm227_vm0, %v173_v32  ;;  %v2770_v7 = vld [vmem:[%s3420_s1 + $0x30] sm:$0xff]  ;;  %v2294_v10 = vld [vmem:[%s2956_s14 + $0x18] sm:$0xf]  ;;  %v2776_v11 = vld [vmem:[%s2956_s14 + $0x18] sm:$0x10]  ;;  %v2237_v13 = vor.u32 %v2767_v4, %v2236_v3 }
  0x1d   : > { %2126 = vmatmul.msk.bf16.vlgmr.msra.gmra.mxu2 %vm227_vm0, %v2109_v35  ;;  %506 = vmatpush.bf16.msrb.mxu1 %v2748_v30  ;;  %v587_v6 = vor.u32 %v586_v61, %v582_v60  ;;  %v2765_v8 = vld [vmem:[%s3420_s1 + $0x10] sm:$0xff]  ;;  %v2773_v12 = vld [vmem:[%s3420_s1 + $0x48] sm:$0xff]  ;;  %v2295_v15 = vor.u32 %v2776_v11, %v2294_v10  ;;  %v2772_v18 = vld [vmem:[%s3420_s1 + $0x40] sm:$0xff] }
  0x1e   : > { %556 = vmatpush.bf16.msrb.mxu2 %v2757_v27  ;;  %2149 = vmatmul.msk.bf16.vlgmr.msra.gmra.mxu3 %vm227_vm0, %v356_v36  ;;  %v2779_v9 = vld [vmem:[%s3420_s1 + $0x70] sm:$0xff]  ;;  %v2769_v14 = vld [vmem:[%s3420_s1 + $0x28] sm:$0xff]  ;;  %v660_v19 = vshll.u32 %v2237_v13, 16  ;;  %v2793_v20 = vld [vmem:[%s3420_s1 + $0x58] sm:$0xff]  ;;  %v658_v25 = vshrl.u32 %v2237_v13, 16 }
  0x1f   : > { %619 = vmatpush.bf16.msrb.mxu3 %v2762_v37  ;;  %v2764_v16 = vld [vmem:[%s3420_s1 + $0x8] sm:$0xff]  ;;  %v2768_v21 = vld [vmem:[%s3420_s1 + $0x20] sm:$0xff]  ;;  %v813_v22 = vshll.u32 %v2295_v15, 16  ;;  %v2789_v27 = vld [vmem:[%s3420_s1 + $0x38] sm:$0xff]  ;;  %v811_v31 = vshrl.u32 %v2295_v15, 16 }
  0x20   : > { %467 = vmatpush.bf16.msrb.mxu0 %v2752_v39  ;;  %v2778_v17 = vld [vmem:[%s3420_s1 + $0x68] sm:$0xff]  ;;  %v2763_v23 = vld [vmem:[%s3420_s1] sm:$0xff]  ;;  %v662_v26 = vrot.slane %v660_v19, 1  ;;  %v2784_v28 = vld [vmem:[%s3420_s1 + $0x18] sm:$0xff] }
  0x21   : > { %507 = vmatpush.bf16.msrb.mxu1 %v2747_v43  ;;  %v2777_v24 = vld [vmem:[%s3420_s1 + $0x60] sm:$0xff]  ;;  %v2798_v29 = vld [vmem:[%s3420_s1 + $0x78] sm:$0xff]  ;;  %v2792_v30 = vld [vmem:[%s3420_s1 + $0x50] sm:$0xff]  ;;  %v815_v32 = vrot.slane %v813_v22, 1 }
  0x22   : > { %557 = vmatpush.bf16.msrb.mxu2 %v2756_v38  ;;  %v663_v33 = vor.u32 %v662_v26, %v658_v25  ;;  %v2783_v34 = vld [vmem:[%s3420_s1 + $0x10] sm:$0xff]  ;;  %v2318_v36 = vld [vmem:[%s2956_s14 + $0x18] sm:$0xf]  ;;  %v2785_v37 = vld [vmem:[%s2956_s14 + $0x18] sm:$0x10] }
  0x23   : > { %620 = vmatpush.bf16.msrb.mxu3 %v2761_v44  ;;  %v2232_v35 = vld [vmem:[%s2956_s14 + $0x10] sm:$0xf]  ;;  %v2272_v38 = vld [vmem:[%s2956_s14 + $0x18] sm:$0xf]  ;;  %v816_v39 = vor.u32 %v815_v32, %v811_v31  ;;  %v2791_v42 = vld [vmem:[%s3420_s1 + $0x48] sm:$0xff] }
  0x24   : > { %468 = vmatpush.bf16.msrb.mxu0 %v2751_v47  ;;  %v2788_v40 = vld [vmem:[%s3420_s1 + $0x30] sm:$0xff]  ;;  %v2376_v43 = vld [vmem:[%s2956_s14 + $0x20] sm:$0xf]  ;;  %v2794_v44 = vld [vmem:[%s2956_s14 + $0x20] sm:$0x10] }
  0x25   : > { %508 = vmatpush.bf16.msrb.mxu1 %v2746_v49  ;;  %v2797_v41 = vld [vmem:[%s3420_s1 + $0x70] sm:$0xff]  ;;  %v2782_v45 = vld [vmem:[%s3420_s1 + $0x8] sm:$0xff]  ;;  %v2377_v48 = vor.u32 %v2794_v44, %v2376_v43  ;;  %v2781_v51 = vld [vmem:[%s3420_s1] sm:$0xff] }
  0x26   : > { %558 = vmatpush.bf16.msrb.mxu2 %v2755_v46  ;;  %v2319_v46 = vor.u32 %v2785_v37, %v2318_v36  ;;  %v2787_v47 = vld [vmem:[%s3420_s1 + $0x28] sm:$0xff]  ;;  %v2802_v54 = vld [vmem:[%s3420_s1 + $0x18] sm:$0xff]  ;;  %v2786_v55 = vld [vmem:[%s3420_s1 + $0x20] sm:$0xff] }
  0x27   : > { %621 = vmatpush.bf16.msrb.mxu3 %v2760_v50  ;;  %v2796_v49 = vld [vmem:[%s3420_s1 + $0x68] sm:$0xff]  ;;  %v2790_v50 = vld [vmem:[%s3420_s1 + $0x40] sm:$0xff]  ;;  %v2816_v61 = vld [vmem:[%s3420_s1 + $0x78] sm:$0xff] }
  0x28   : > { %469 = vmatpush.bf16.msrb.mxu0 %v2750_v53  ;;  %v2811_v53 = vld [vmem:[%s3420_s1 + $0x58] sm:$0xff]  ;;  %v2815_v4 = vld [vmem:[%s3420_s1 + $0x70] sm:$0xff]  ;;  %v2809_v10 = vld [vmem:[%s3420_s1 + $0x48] sm:$0xff] }
  0x29   : > { %509 = vmatpush.bf16.msrb.mxu1 %v2745_v58  ;;  %v2807_v58 = vld [vmem:[%s3420_s1 + $0x38] sm:$0xff]  ;;  %v2805_v11 = vld [vmem:[%s3420_s1 + $0x28] sm:$0xff]  ;;  %v2804_v19 = vld [vmem:[%s3420_s1 + $0x20] sm:$0xff] }
  0x2a   : > { %559 = vmatpush.bf16.msrb.mxu2 %v2754_v52  ;;  %v889_v52 = vshll.u32 %v2319_v46, 16  ;;  %v2458_v13 = vld [vmem:[%s2956_s14 + $0x28] sm:$0xf]  ;;  %v2820_v25 = vld [vmem:[%s3420_s1 + $0x18] sm:$0xff]  ;;  %v2824_v31 = vld [vmem:[%s3420_s1 + $0x30] sm:$0xff] }
  0x2b   : > { %622 = vmatpush.bf16.msrb.mxu3 %v2759_v59  ;;  %2172 = vmatmul.msk.bf16.vlgmr.msrb.gmra.mxu0 %vm227_vm0, %v434_v0  ;;  %v887_v59 = vshrl.u32 %v2319_v46, 16  ;;  %v1040_v0 = vshrl.u32 %v2377_v48, 16  ;;  %v2814_v15 = vld [vmem:[%s3420_s1 + $0x68] sm:$0xff]  ;;  %v2819_v32 = vld [vmem:[%s3420_s1 + $0x10] sm:$0xff] }
  0x2c   : > { %695 = vmatpush.bf16.msra.mxu0 %v2771_v57  ;;  %2189 = vmatmul.msk.bf16.vlgmr.msrb.gmra.mxu1 %vm227_vm0, %v2150_v2  ;;  %v2795_v57 = vld [vmem:[%s3420_s1 + $0x60] sm:$0xff]  ;;  %v891_v60 = vrot.slane %v889_v52, 1  ;;  %v2806_v2 = vld [vmem:[%s3420_s1 + $0x30] sm:$0xff]  ;;  %v2827_v37 = vld [vmem:[%s3420_s1 + $0x48] sm:$0xff] }
  0x2d   : > { %735 = vmatpush.bf16.msra.mxu1 %v2766_v62  ;;  %2207 = vmatmul.msk.bf16.vlgmr.msrb.gmra.mxu2 %vm227_vm0, %v2190_v5  ;;  %v2810_v62 = vld [vmem:[%s3420_s1 + $0x50] sm:$0xff]  ;;  %v2314_v5 = vld [vmem:[%s2956_s14 + $0x18] sm:$0xf]  ;;  %v2823_v43 = vld [vmem:[%s3420_s1 + $0x28] sm:$0xff] }
  0x2e   : > { %785 = vmatpush.bf16.msra.mxu2 %v2775_v56  ;;  %2230 = vmatmul.msk.bf16.vlgmr.msrb.gmra.mxu3 %vm227_vm0, %v587_v6  ;;  %v1042_v56 = vshll.u32 %v2377_v48, 16  ;;  %v892_v3 = vor.u32 %v891_v60, %v887_v59  ;;  %v2400_v6 = vld [vmem:[%s2956_s14 + $0x20] sm:$0xf]  ;;  %v2818_v44 = vld [vmem:[%s3420_s1 + $0x8] sm:$0xff]  ;;  %v2540_v46 = vld [vmem:[%s2956_s14 + $0x30] sm:$0xf] }
  0x2f   : > { %848 = vmatpush.bf16.msra.mxu3 %v2780_v63  ;;  %v2801_v63 = vld [vmem:[%s3420_s1 + $0x10] sm:$0xff]  ;;  %v2826_v48 = vld [vmem:[%s3420_s1 + $0x40] sm:$0xff] }
  0x30   : > { %696 = vmatpush.bf16.msra.mxu0 %v2770_v7  ;;  %v2803_v7 = vld [vmem:[%s2956_s14 + $0x20] sm:$0x10]  ;;  %v2846_v59 = vld [vmem:[%s3420_s1 + $0x50] sm:$0xff] }
  0x31   : > { %736 = vmatpush.bf16.msra.mxu1 %v2765_v8  ;;  %v2354_v8 = vld [vmem:[%s2956_s14 + $0x20] sm:$0xf] }
  0x32   : > { %786 = vmatpush.bf16.msra.mxu2 %v2774_v1  ;;  %v1044_v1 = vrot.slane %v1042_v56, 1  ;;  %v2843_v56 = vld [vmem:[%s3420_s1 + $0x38] sm:$0xff] }
  0x33   : > { %849 = vmatpush.bf16.msra.mxu3 %v2779_v9 }
  0x34   : > { %697 = vmatpush.bf16.msra.mxu0 %v2769_v14  ;;  %v1045_v9 = vor.u32 %v1044_v1, %v1040_v0  ;;  %v2812_v14 = vld [vmem:[%s2956_s14 + $0x28] sm:$0x10]  ;;  %v2837_v0 = vld [vmem:[%s3420_s1 + $0x10] sm:$0xff] }
  0x35   : > { %737 = vmatpush.bf16.msra.mxu1 %v2764_v16  ;;  %v2401_v16 = vor.u32 %v2803_v7, %v2400_v6  ;;  %v2851_v1 = vld [vmem:[%s3420_s1 + $0x70] sm:$0xff]  ;;  %v2836_v6 = vld [vmem:[%s3420_s1 + $0x8] sm:$0xff] }
  0x36   : > { %787 = vmatpush.bf16.msra.mxu2 %v2773_v12  ;;  %v2800_v12 = vld [vmem:[%s3420_s1 + $0x8] sm:$0xff] }
  0x37   : > { %850 = vmatpush.bf16.msra.mxu3 %v2778_v17  ;;  %v2808_v17 = vld [vmem:[%s3420_s1 + $0x40] sm:$0xff]  ;;  %v1118_v22 = vshll.u32 %v2401_v16, 16  ;;  %v2478_v7 = vld [vmem:[%s2956_s14 + $0x28] sm:$0xf] }
  0x38   : > { %698 = vmatpush.bf16.msra.mxu0 %v2768_v21  ;;  %v2813_v21 = vld [vmem:[%s3420_s1 + $0x60] sm:$0xff] }
  0x39   : > { %738 = vmatpush.bf16.msra.mxu1 %v2763_v23  ;;  %v2829_v23 = vld [vmem:[%s3420_s1 + $0x58] sm:$0xff] }
  0x3a   : > { %788 = vmatpush.bf16.msra.mxu2 %v2772_v18  ;;  %v2459_v18 = vor.u32 %v2812_v14, %v2458_v13  ;;  %v2850_v13 = vld [vmem:[%s3420_s1 + $0x68] sm:$0xff]  ;;  %v2844_v14 = vld [vmem:[%s3420_s1 + $0x40] sm:$0xff] }
  0x3b   : > { %851 = vmatpush.bf16.msra.mxu3 %v2777_v24  ;;  %2254 = vmatmul.msk.bf16.vlgmr.msra.gmra.mxu0 %vm227_vm0, %v663_v33  ;;  %v2825_v24 = vld [vmem:[%s3420_s1 + $0x38] sm:$0xff] }
  0x3c   : > { %924 = vmatpush.bf16.msrb.mxu0 %v2789_v27  ;;  %2271 = vmatmul.msk.bf16.vlgmr.msra.gmra.mxu1 %vm227_vm0, %v2232_v35  ;;  %v1271_v26 = vshll.u32 %v2459_v18, 16  ;;  %v2834_v27 = vld [vmem:[%s3420_s1 + $0x78] sm:$0xff]  ;;  %v1269_v33 = vshrl.u32 %v2459_v18, 16  ;;  %v2833_v35 = vld [vmem:[%s3420_s1 + $0x70] sm:$0xff] }
  0x3d   : > { %964 = vmatpush.bf16.msrb.mxu1 %v2784_v28  ;;  %2289 = vmatmul.msk.bf16.vlgmr.msra.gmra.mxu2 %vm227_vm0, %v2272_v38  ;;  %v1116_v28 = vshrl.u32 %v2401_v16, 16  ;;  %v2396_v38 = vld [vmem:[%s2956_s14 + $0x20] sm:$0xf]  ;;  %v2848_v16 = vld [vmem:[%s2956_s14 + $0x38] sm:$0x10] }
  0x3e   : > { %1014 = vmatpush.bf16.msrb.mxu2 %v2793_v20  ;;  %2312 = vmatmul.msk.bf16.vlgmr.msra.gmra.mxu3 %vm227_vm0, %v816_v39  ;;  %v2799_v20 = vld [vmem:[%s3420_s1] sm:$0xff]  ;;  %v2482_v39 = vld [vmem:[%s2956_s14 + $0x28] sm:$0xf] }
  0x3f   : > { %1077 = vmatpush.bf16.msrb.mxu3 %v2798_v29  ;;  %v1120_v29 = vrot.slane %v1118_v22, 1 }
  0x40   : > { %925 = vmatpush.bf16.msrb.mxu0 %v2788_v40  ;;  %v2821_v40 = vld [vmem:[%s2956_s14 + $0x28] sm:$0x10] }
  0x41   : > { %965 = vmatpush.bf16.msrb.mxu1 %v2783_v34  ;;  %v1273_v34 = vrot.slane %v1271_v26, 1  ;;  %v1121_v36 = vor.u32 %v1120_v29, %v1116_v28  ;;  %v2870_v26 = vld [vmem:[%s3420_s1 + $0x78] sm:$0xff]  ;;  %v2855_v28 = vld [vmem:[%s3420_s1 + $0x10] sm:$0xff] }
  0x42   : > { %1015 = vmatpush.bf16.msrb.mxu2 %v2792_v30  ;;  %v2828_v30 = vld [vmem:[%s3420_s1 + $0x50] sm:$0xff] }
  0x43   : > { %1078 = vmatpush.bf16.msrb.mxu3 %v2797_v41  ;;  %v2436_v41 = vld [vmem:[%s2956_s14 + $0x28] sm:$0xf] }
  0x44   : > { %926 = vmatpush.bf16.msrb.mxu0 %v2787_v47  ;;  %v2830_v47 = vld [vmem:[%s2956_s14 + $0x30] sm:$0x10] }
  0x45   : > { %966 = vmatpush.bf16.msrb.mxu1 %v2782_v45  ;;  %v2832_v45 = vld [vmem:[%s3420_s1 + $0x68] sm:$0xff]  ;;  %v2541_v52 = vor.u32 %v2830_v47, %v2540_v46  ;;  %v2862_v46 = vld [vmem:[%s3420_s1 + $0x40] sm:$0xff] }
  0x46   : > { %1016 = vmatpush.bf16.msrb.mxu2 %v2791_v42  ;;  %v1274_v42 = vor.u32 %v1273_v34, %v1269_v33  ;;  %v2869_v33 = vld [vmem:[%s3420_s1 + $0x70] sm:$0xff]  ;;  %v2863_v34 = vld [vmem:[%s3420_s1 + $0x48] sm:$0xff]  ;;  %v2858_v47 = vld [vmem:[%s3420_s1 + $0x20] sm:$0xff] }
  0x47   : > { %1079 = vmatpush.bf16.msrb.mxu3 %v2796_v49  ;;  %v2483_v49 = vor.u32 %v2821_v40, %v2482_v39  ;;  %v1500_v60 = vshll.u32 %v2541_v52, 16  ;;  %v2868_v40 = vld [vmem:[%s3420_s1 + $0x68] sm:$0xff] }
  0x48   : > { %927 = vmatpush.bf16.msrb.mxu0 %v2786_v55 }
  0x49   : > { %967 = vmatpush.bf16.msrb.mxu1 %v2781_v51  ;;  %v2822_v51 = vld [vmem:[%s3420_s1 + $0x20] sm:$0xff]  ;;  %v1347_v55 = vshll.u32 %v2483_v49, 16 }
  0x4a   : > { %1017 = vmatpush.bf16.msrb.mxu2 %v2790_v50  ;;  %v2847_v50 = vld [vmem:[%s3420_s1 + $0x58] sm:$0xff] }
  0x4b   : > { %1080 = vmatpush.bf16.msrb.mxu3 %v2795_v57  ;;  %2336 = vmatmul.msk.bf16.vlgmr.msrb.gmra.mxu0 %vm227_vm0, %v892_v3  ;;  %v2838_v57 = vld [vmem:[%s3420_s1 + $0x18] sm:$0xff]  ;;  %v1498_v3 = vshrl.u32 %v2541_v52, 16 }
  0x4c   : > { %1153 = vmatpush.bf16.msra.mxu0 %v2807_v58  ;;  %2353 = vmatmul.msk.bf16.vlgmr.msrb.gmra.mxu1 %vm227_vm0, %v2314_v5  ;;  %v2852_v58 = vld [vmem:[%s3420_s1 + $0x78] sm:$0xff] }
  0x4d   : > { %1193 = vmatpush.bf16.msra.mxu1 %v2802_v54  ;;  %2371 = vmatmul.msk.bf16.vlgmr.msrb.gmra.mxu2 %vm227_vm0, %v2354_v8  ;;  %v2831_v54 = vld [vmem:[%s3420_s1 + $0x60] sm:$0xff]  ;;  %v2564_v8 = vld [vmem:[%s2956_s14 + $0x30] sm:$0xf] }
  0x4e   : > { %1243 = vmatpush.bf16.msra.mxu2 %v2811_v53  ;;  %2394 = vmatmul.msk.bf16.vlgmr.msrb.gmra.mxu3 %vm227_vm0, %v1045_v9  ;;  %v2817_v53 = vld [vmem:[%s3420_s1] sm:$0xff]  ;;  %v2839_v9 = vld [vmem:[%s2956_s14 + $0x30] sm:$0x10] }
  0x4f   : > { %1306 = vmatpush.bf16.msra.mxu3 %v2816_v61  ;;  %v1345_v61 = vshrl.u32 %v2483_v49, 16  ;;  %v2565_v18 = vor.u32 %v2839_v9, %v2564_v8  ;;  %v2704_v49 = vld [vmem:[%s2956_s14 + $0x40] sm:$0xf] }
  0x50   : > { %1154 = vmatpush.bf16.msra.mxu0 %v2806_v2  ;;  %v2845_v2 = vld [vmem:[%s3420_s1 + $0x48] sm:$0xff] }
  0x51   : > { %1194 = vmatpush.bf16.msra.mxu1 %v2801_v63  ;;  %v2842_v63 = vld [vmem:[%s3420_s1 + $0x30] sm:$0xff] }
  0x52   : > { %1244 = vmatpush.bf16.msra.mxu2 %v2810_v62  ;;  %v1349_v62 = vrot.slane %v1347_v55, 1 }
  0x53   : > { %1307 = vmatpush.bf16.msra.mxu3 %v2815_v4  ;;  %v1502_v4 = vrot.slane %v1500_v60, 1 }
  0x54   : > { %1155 = vmatpush.bf16.msra.mxu0 %v2805_v11  ;;  %v1350_v5 = vor.u32 %v1349_v62, %v1345_v61  ;;  %v2642_v61 = vld [vmem:[%s2956_s14 + $0x38] sm:$0xf]  ;;  %v2682_v62 = vld [vmem:[%s2956_s14 + $0x40] sm:$0xf] }
  0x55   : > { %1195 = vmatpush.bf16.msra.mxu1 %v2800_v12  ;;  %v1503_v11 = vor.u32 %v1502_v4, %v1498_v3  ;;  %v2841_v12 = vld [vmem:[%s3420_s1 + $0x28] sm:$0xff] }
  0x56   : > { %1245 = vmatpush.bf16.msra.mxu2 %v2809_v10  ;;  %v2518_v10 = vld [vmem:[%s2956_s14 + $0x30] sm:$0xf] }
  0x57   : > { %1308 = vmatpush.bf16.msra.mxu3 %v2814_v15  ;;  %v2622_v15 = vld [vmem:[%s2956_s14 + $0x38] sm:$0xf] }
  0x58   : > { %1156 = vmatpush.bf16.msra.mxu0 %v2804_v19  ;;  %v2865_v19 = vld [vmem:[%s3420_s1 + $0x58] sm:$0xff]  ;;  %v2623_v22 = vor.u32 %v2848_v16, %v2622_v15 }
  0x59   : > { %1196 = vmatpush.bf16.msra.mxu1 %v2799_v20  ;;  %v2856_v20 = vld [vmem:[%s3420_s1 + $0x18] sm:$0xff] }
  0x5a   : > { %1246 = vmatpush.bf16.msra.mxu2 %v2808_v17  ;;  %v2835_v17 = vld [vmem:[%s3420_s1] sm:$0xff]  ;;  %v1729_v29 = vshll.u32 %v2623_v22, 16 }
  0x5b   : > { %1309 = vmatpush.bf16.msra.mxu3 %v2813_v21  ;;  %2418 = vmatmul.msk.bf16.vlgmr.msra.gmra.mxu0 %vm227_vm0, %v1121_v36  ;;  %v2840_v21 = vld [vmem:[%s3420_s1 + $0x20] sm:$0xff]  ;;  %v1727_v36 = vshrl.u32 %v2623_v22, 16 }
  0x5c   : > { %1382 = vmatpush.bf16.msrb.mxu0 %v2825_v24  ;;  %2435 = vmatmul.msk.bf16.vlgmr.msra.gmra.mxu1 %vm227_vm0, %v2396_v38  ;;  %v2861_v24 = vld [vmem:[%s3420_s1 + $0x38] sm:$0xff]  ;;  %v2859_v38 = vld [vmem:[%s3420_s1 + $0x28] sm:$0xff] }
  0x5d   : > { %1422 = vmatpush.bf16.msrb.mxu1 %v2820_v25  ;;  %2453 = vmatmul.msk.bf16.vlgmr.msra.gmra.mxu2 %vm227_vm0, %v2436_v41  ;;  %v1576_v25 = vshll.u32 %v2565_v18, 16  ;;  %v2560_v41 = vld [vmem:[%s2956_s14 + $0x30] sm:$0xf] }
  0x5e   : > { %1472 = vmatpush.bf16.msrb.mxu2 %v2829_v23  ;;  %2476 = vmatmul.msk.bf16.vlgmr.msra.gmra.mxu3 %vm227_vm0, %v1274_v42  ;;  %v2849_v23 = vld [vmem:[%s3420_s1 + $0x60] sm:$0xff]  ;;  %v2646_v42 = vld [vmem:[%s2956_s14 + $0x38] sm:$0xf] }
  0x5f   : > { %1535 = vmatpush.bf16.msrb.mxu3 %v2834_v27  ;;  %v2864_v27 = vld [vmem:[%s3420_s1 + $0x50] sm:$0xff] }
  0x60   : > { %1383 = vmatpush.bf16.msrb.mxu0 %v2824_v31  ;;  %v1574_v31 = vshrl.u32 %v2565_v18, 16 }
  0x61   : > { %1423 = vmatpush.bf16.msrb.mxu1 %v2819_v32  ;;  %v1578_v32 = vrot.slane %v1576_v25, 1 }
  0x62   : > { %1473 = vmatpush.bf16.msrb.mxu2 %v2828_v30  ;;  %v2860_v30 = vld [vmem:[%s3420_s1 + $0x30] sm:$0xff] }
  0x63   : > { %1536 = vmatpush.bf16.msrb.mxu3 %v2833_v35  ;;  %v2854_v35 = vld [vmem:[%s3420_s1 + $0x8] sm:$0xff]  ;;  %v1579_v39 = vor.u32 %v1578_v32, %v1574_v31 }
  0x64   : > { %1384 = vmatpush.bf16.msrb.mxu0 %v2823_v43  ;;  %v2857_v43 = vld [vmem:[%s2956_s14 + $0x38] sm:$0x10] }
  0x65   : > { %1424 = vmatpush.bf16.msrb.mxu1 %v2818_v44  ;;  %v2600_v44 = vld [vmem:[%s2956_s14 + $0x38] sm:$0xf]  ;;  %v2647_v52 = vor.u32 %v2857_v43, %v2646_v42 }
  0x66   : > { %1474 = vmatpush.bf16.msrb.mxu2 %v2827_v37  ;;  %v1731_v37 = vrot.slane %v1729_v29, 1 }
  0x67   : > { %1537 = vmatpush.bf16.msrb.mxu3 %v2832_v45 }
  0x68   : > { %1385 = vmatpush.bf16.msrb.mxu0 %v2822_v51  ;;  %v1732_v45 = vor.u32 %v1731_v37, %v1727_v36  ;;  %v2867_v51 = vld [vmem:[%s3420_s1 + $0x60] sm:$0xff] }
  0x69   : > { %1425 = vmatpush.bf16.msrb.mxu1 %v2817_v53 }
  0x6a   : > { %1475 = vmatpush.bf16.msrb.mxu2 %v2826_v48  ;;  %v2853_v48 = vld [vmem:[%s3420_s1] sm:$0xff] }
  0x6b   : > { %1538 = vmatpush.bf16.msrb.mxu3 %v2831_v54  ;;  %2500 = vmatmul.msk.bf16.vlgmr.msrb.gmra.mxu0 %vm227_vm0, %v1350_v5  ;;  %v1805_v54 = vshll.u32 %v2647_v52, 16 }
  0x6c   : > { %1611 = vmatpush.bf16.msra.mxu0 %v2843_v56  ;;  %2517 = vmatmul.msk.bf16.vlgmr.msrb.gmra.mxu1 %vm227_vm0, %v2478_v7  ;;  %v1803_v56 = vshrl.u32 %v2647_v52, 16 }
  0x6d   : > { %1651 = vmatpush.bf16.msra.mxu1 %v2838_v57  ;;  %2535 = vmatmul.msk.bf16.vlgmr.msrb.gmra.mxu2 %vm227_vm0, %v2518_v10  ;;  %v1807_v57 = vrot.slane %v1805_v54, 1 }
  0x6e   : > { %1701 = vmatpush.bf16.msra.mxu2 %v2847_v50  ;;  %2558 = vmatmul.msk.bf16.vlgmr.msrb.gmra.mxu3 %vm227_vm0, %v1503_v11  ;;  %v2866_v50 = vld [vmem:[%s2956_s14 + $0x40] sm:$0x10]  ;;  %s2726_s14 = sshll.u32 %s3424_s13, 5 }
  0x6f   : > { %1764 = vmatpush.bf16.msra.mxu3 %v2852_v58  ;;  %v2705_v53 = vor.u32 %v2866_v50, %v2704_v49  ;;  %v1808_v60 = vor.u32 %v1807_v57, %v1803_v56  ;;  %s3399_s10 = scalar_lea.vmem %s3422_s3, %s2726_s14 }
  0x70   : > { %1612 = vmatpush.bf16.msra.mxu0 %v2842_v63 }
  0x71   : > { %1652 = vmatpush.bf16.msra.mxu1 %v2837_v0  ;;  %v1958_v55 = vshll.u32 %v2705_v53, 16  ;;  %v1956_v58 = vshrl.u32 %v2705_v53, 16 }
  0x72   : > { %1702 = vmatpush.bf16.msra.mxu2 %v2846_v59 }
  0x73   : > { %1765 = vmatpush.bf16.msra.mxu3 %v2851_v1  ;;  %v1960_v59 = vrot.slane %v1958_v55, 1 }
  0x74   : > { %1613 = vmatpush.bf16.msra.mxu0 %v2841_v12 }
  0x75   : > { %1653 = vmatpush.bf16.msra.mxu1 %v2836_v6  ;;  %v1961_v63 = vor.u32 %v1960_v59, %v1956_v58  ;;  %v3392_v6 = vld [vmem:[%s3421_s2] ss:$0 sm:$0xff] }
  0x76   : > { %1703 = vmatpush.bf16.msra.mxu2 %v2845_v2 }
  0x77   : > { %1766 = vmatpush.bf16.msra.mxu3 %v2850_v13 }
  0x78   : > { %1614 = vmatpush.bf16.msra.mxu0 %v2840_v21 }
  0x79   : > { %1654 = vmatpush.bf16.msra.mxu1 %v2835_v17 }
  0x7a   : > { %1704 = vmatpush.bf16.msra.mxu2 %v2844_v14 }
  0x7b   : > { %1767 = vmatpush.bf16.msra.mxu3 %v2849_v23  ;;  %2582 = vmatmul.msk.bf16.vlgmr.msra.gmra.mxu0 %vm227_vm0, %v1579_v39 }
  0x7c   : > { %1840 = vmatpush.bf16.msrb.mxu0 %v2861_v24  ;;  %2599 = vmatmul.msk.bf16.vlgmr.msra.gmra.mxu1 %vm227_vm0, %v2560_v41 }
  0x7d   : > { %1880 = vmatpush.bf16.msrb.mxu1 %v2856_v20  ;;  %2617 = vmatmul.msk.bf16.vlgmr.msra.gmra.mxu2 %vm227_vm0, %v2600_v44 }
  0x7e   : > { %1930 = vmatpush.bf16.msrb.mxu2 %v2865_v19  ;;  %2640 = vmatmul.msk.bf16.vlgmr.msra.gmra.mxu3 %vm227_vm0, %v1732_v45 }
  0x7f   : > { %1993 = vmatpush.bf16.msrb.mxu3 %v2870_v26 }
  0x80   : > { %1841 = vmatpush.bf16.msrb.mxu0 %v2860_v30 }
  0x81   : > { %1881 = vmatpush.bf16.msrb.mxu1 %v2855_v28 }
  0x82   : > { %1931 = vmatpush.bf16.msrb.mxu2 %v2864_v27 }
  0x83   : > { %1994 = vmatpush.bf16.msrb.mxu3 %v2869_v33 }
  0x84   : > { %1842 = vmatpush.bf16.msrb.mxu0 %v2859_v38 }
  0x85   : > { %1882 = vmatpush.bf16.msrb.mxu1 %v2854_v35 }
  0x86   : > { %1932 = vmatpush.bf16.msrb.mxu2 %v2863_v34 }
  0x87   : > { %1995 = vmatpush.bf16.msrb.mxu3 %v2868_v40 }
  0x88   : > { %1843 = vmatpush.bf16.msrb.mxu0 %v2858_v47 }
  0x89   : > { %1883 = vmatpush.bf16.msrb.mxu1 %v2853_v48 }
  0x8a   : > { %1933 = vmatpush.bf16.msrb.mxu2 %v2862_v46 }
  0x8b   : > { %1996 = vmatpush.bf16.msrb.mxu3 %v2867_v51  ;;  %2664 = vmatmul.msk.bf16.vlgmr.msrb.gmra.mxu0 %vm227_vm0, %v1808_v60 }
  0x8c   : > { %2681 = vmatmul.msk.bf16.vlgmr.msrb.gmra.mxu1 %vm227_vm0, %v2642_v61 }
  0x8d   : > { %2699 = vmatmul.msk.bf16.vlgmr.msrb.gmra.mxu2 %vm227_vm0, %v2682_v62 }
  0x8e   : > { %2722 = vmatmul.msk.bf16.vlgmr.msrb.gmra.mxu3 %vm227_vm0, %v1961_v63 }
  0x98   : > { %v240_v0 = vpop.f32.mrf.mxu0 }
  0x99   : > { %v280_v1 = vpop.f32.mrf.mxu1 }
  0x9a   : > { %v281_v2 = vadd.f32 %v280_v1, %v240_v0 }
  0xa0   : > { %v330_v3 = vpop.f32.mrf.mxu2  ;;  %v242_v7 = vpop.f32.mrf.mxu0 }
  0xa1   : > { %v393_v4 = vpop.f32.mrf.mxu3  ;;  %v334_v5 = vadd.f32 %v330_v3, %v281_v2  ;;  %v282_v8 = vpop.f32.mrf.mxu1 }
  0xa3   : > { %v397_v9 = vadd.f32 %v393_v4, %v334_v5 }
  0xa5   : > { %v401_v10 = vadd.f32 %v3392_v6, %v397_v9 }
  0xa7   : > { %v402_v11 = vmax.f32 %v401_v10, 0.0 }
  0xa8   : > { %v332_v12 = vpop.f32.mrf.mxu2  ;;  %v471_v15 = vpop.f32.mrf.mxu0 }
  0xa9   : > { %v395_v13 = vpop.f32.mrf.mxu3  ;;  %v403_v14 = vpack.c.bf16 %v402_v11, %v402_v11  ;;  %v511_v16 = vpop.f32.mrf.mxu1 }
  0xaa   : > { %v512_v17 = vadd.f32 %v511_v16, %v471_v15 }
  0xab   : > { %404 = vst [vmem:[%s3399_s10] sm:$0xf] %v403_v14 }
  0xb0   : > { %v561_v18 = vpop.f32.mrf.mxu2  ;;  %v473_v21 = vpop.f32.mrf.mxu0 }
  0xb1   : > { %v565_v19 = vadd.f32 %v561_v18, %v512_v17  ;;  %v624_v20 = vpop.f32.mrf.mxu3  ;;  %v513_v22 = vpop.f32.mrf.mxu1 }
  0xb3   : > { %v628_v23 = vadd.f32 %v624_v20, %v565_v19 }
  0xb5   : > { %v629_v24 = vadd.f32 %v3392_v6, %v628_v23 }
  0xb7   : > { %v630_v25 = vmax.f32 %v629_v24, 0.0 }
  0xb8   : > { %v563_v26 = vpop.f32.mrf.mxu2  ;;  %v700_v29 = vpop.f32.mrf.mxu0 }
  0xb9   : > { %v631_v27 = vpack.c.bf16 %v630_v25, %v630_v25  ;;  %v626_v28 = vpop.f32.mrf.mxu3  ;;  %v740_v30 = vpop.f32.mrf.mxu1 }
  0xba   : > { %v741_v31 = vadd.f32 %v740_v30, %v700_v29 }
  0xbb   : > { %2231 = vst [vmem:[%s3399_s10 + $0x4] sm:$0xf] %v631_v27 }
  0xc0   : > { %v790_v32 = vpop.f32.mrf.mxu2  ;;  %v702_v35 = vpop.f32.mrf.mxu0 }
  0xc1   : > { %v794_v33 = vadd.f32 %v790_v32, %v741_v31  ;;  %v853_v34 = vpop.f32.mrf.mxu3  ;;  %v742_v36 = vpop.f32.mrf.mxu1 }
  0xc3   : > { %v857_v37 = vadd.f32 %v853_v34, %v794_v33 }
  0xc5   : > { %v858_v38 = vadd.f32 %v3392_v6, %v857_v37 }
  0xc7   : > { %v859_v39 = vmax.f32 %v858_v38, 0.0 }
  0xc8   : > { %v792_v40 = vpop.f32.mrf.mxu2  ;;  %v929_v43 = vpop.f32.mrf.mxu0 }
  0xc9   : > { %v860_v41 = vpack.c.bf16 %v859_v39, %v859_v39  ;;  %v855_v42 = vpop.f32.mrf.mxu3  ;;  %v969_v44 = vpop.f32.mrf.mxu1 }
  0xca   : > { %v970_v45 = vadd.f32 %v969_v44, %v929_v43 }
  0xcb   : > { %2313 = vst [vmem:[%s3399_s10 + $0x8] sm:$0xf] %v860_v41 }
  0xd0   : > { %v1019_v46 = vpop.f32.mrf.mxu2  ;;  %v931_v49 = vpop.f32.mrf.mxu0 }
  0xd1   : > { %v1023_v47 = vadd.f32 %v1019_v46, %v970_v45  ;;  %v1082_v48 = vpop.f32.mrf.mxu3  ;;  %v971_v50 = vpop.f32.mrf.mxu1 }
  0xd3   : > { %v1086_v51 = vadd.f32 %v1082_v48, %v1023_v47 }
  0xd5   : > { %v1087_v52 = vadd.f32 %v3392_v6, %v1086_v51 }
  0xd7   : > { %v1088_v53 = vmax.f32 %v1087_v52, 0.0 }
  0xd8   : > { %v1021_v54 = vpop.f32.mrf.mxu2  ;;  %v1158_v57 = vpop.f32.mrf.mxu0 }
  0xd9   : > { %v1089_v55 = vpack.c.bf16 %v1088_v53, %v1088_v53  ;;  %v1084_v56 = vpop.f32.mrf.mxu3  ;;  %v1198_v58 = vpop.f32.mrf.mxu1 }
  0xda   : > { %v1199_v59 = vadd.f32 %v1198_v58, %v1158_v57 }
  0xdb   : > { %2395 = vst [vmem:[%s3399_s10 + $0xc] sm:$0xf] %v1089_v55 }
  0xe0   : > { %v1248_v60 = vpop.f32.mrf.mxu2  ;;  %v1160_v63 = vpop.f32.mrf.mxu0 }
  0xe1   : > { %v1252_v61 = vadd.f32 %v1248_v60, %v1199_v59  ;;  %v1311_v62 = vpop.f32.mrf.mxu3  ;;  %v1200_v0 = vpop.f32.mrf.mxu1 }
  0xe3   : > { %v1315_v1 = vadd.f32 %v1311_v62, %v1252_v61 }
  0xe5   : > { %v1316_v2 = vadd.f32 %v3392_v6, %v1315_v1 }
  0xe7   : > { %v1317_v3 = vmax.f32 %v1316_v2, 0.0 }
  0xe8   : > { %v1250_v4 = vpop.f32.mrf.mxu2  ;;  %v1387_v8 = vpop.f32.mrf.mxu0 }
  0xe9   : > { %v1318_v5 = vpack.c.bf16 %v1317_v3, %v1317_v3  ;;  %v1313_v7 = vpop.f32.mrf.mxu3  ;;  %v1427_v9 = vpop.f32.mrf.mxu1 }
  0xea   : > { %v1428_v10 = vadd.f32 %v1427_v9, %v1387_v8 }
  0xeb   : > { %2477 = vst [vmem:[%s3399_s10 + $0x10] sm:$0xf] %v1318_v5 }
  0xf0   : > { %v1477_v11 = vpop.f32.mrf.mxu2  ;;  %v1389_v14 = vpop.f32.mrf.mxu0 }
  0xf1   : > { %v1481_v12 = vadd.f32 %v1477_v11, %v1428_v10  ;;  %v1540_v13 = vpop.f32.mrf.mxu3  ;;  %v1429_v15 = vpop.f32.mrf.mxu1 }
  0xf3   : > { %v1544_v16 = vadd.f32 %v1540_v13, %v1481_v12 }
  0xf5   : > { %v1545_v17 = vadd.f32 %v3392_v6, %v1544_v16 }
  0xf7   : > { %v1546_v18 = vmax.f32 %v1545_v17, 0.0 }
  0xf8   : > { %v1479_v19 = vpop.f32.mrf.mxu2  ;;  %v1616_v22 = vpop.f32.mrf.mxu0 }
  0xf9   : > { %v1547_v20 = vpack.c.bf16 %v1546_v18, %v1546_v18  ;;  %v1542_v21 = vpop.f32.mrf.mxu3  ;;  %v1656_v23 = vpop.f32.mrf.mxu1 }
  0xfa   : > { %v1657_v24 = vadd.f32 %v1656_v23, %v1616_v22 }
  0xfb   : > { %2559 = vst [vmem:[%s3399_s10 + $0x14] sm:$0xf] %v1547_v20 }
 0x100   : > { %v1706_v25 = vpop.f32.mrf.mxu2  ;;  %v1618_v28 = vpop.f32.mrf.mxu0 }
 0x101   : > { %v1710_v26 = vadd.f32 %v1706_v25, %v1657_v24  ;;  %v1769_v27 = vpop.f32.mrf.mxu3  ;;  %v1658_v29 = vpop.f32.mrf.mxu1 }
 0x103   : > { %v1773_v30 = vadd.f32 %v1769_v27, %v1710_v26 }
 0x105   : > { %v1774_v31 = vadd.f32 %v3392_v6, %v1773_v30 }
 0x107   : > { %v1775_v32 = vmax.f32 %v1774_v31, 0.0 }
 0x108   : > { %v1708_v33 = vpop.f32.mrf.mxu2  ;;  %v1845_v36 = vpop.f32.mrf.mxu0 }
 0x109   : > { %v1776_v34 = vpack.c.bf16 %v1775_v32, %v1775_v32  ;;  %v1771_v35 = vpop.f32.mrf.mxu3  ;;  %v1885_v37 = vpop.f32.mrf.mxu1 }
 0x10a   : > { %v1886_v38 = vadd.f32 %v1885_v37, %v1845_v36 }
 0x10b   : > { %2641 = vst [vmem:[%s3399_s10 + $0x18] sm:$0xf] %v1776_v34 }
 0x110   : > { %v1935_v39 = vpop.f32.mrf.mxu2  ;;  %v1847_v42 = vpop.f32.mrf.mxu0 }
 0x111   : > { %v1939_v40 = vadd.f32 %v1935_v39, %v1886_v38  ;;  %v1998_v41 = vpop.f32.mrf.mxu3  ;;  %v1887_v43 = vpop.f32.mrf.mxu1 }
 0x113   : > { %v2002_v44 = vadd.f32 %v1998_v41, %v1939_v40 }
 0x115   : > { %v2003_v45 = vadd.f32 %v3392_v6, %v2002_v44 }
 0x117   : > { %v2004_v46 = vmax.f32 %v2003_v45, 0.0 }
 0x118   : > { %v1937_v47 = vpop.f32.mrf.mxu2 }
 0x119   : > { %v2005_v48 = vpack.c.bf16 %v2004_v46, %v2004_v46  ;;  %v2000_v49 = vpop.f32.mrf.mxu3 }
 0x11b   : > { %2723 = vst [vmem:[%s3399_s10 + $0x1c] sm:$0xf] %v2005_v48 }
 0x11c PF: > { %s13_s12 = sadd.s32 1, %s2887_s12  }
 0x11d   : > { %p10_p4 = scmp.ge.s32.totalorder %s13_s12, 4  }
 0x11f   :  { %12 = sbr.rel (!%p10_p4) target bundleno = 1 (0x1), region = 77 }

// kernel: dqn_cnn_forward.5
= control target key start
LH: loop header
LB: loop body
LE: loop exit
PB: predicated region body
PF: predicated region fallthrough
CT: control target
= control target key end

     0   :  { %s2625_s0 = inlined_call_operand.vmem [shape: bf16[2,1152], index: 0, kind: input, shape index: {}]   ;;  %s2626_s1 = inlined_call_operand.vmem [shape: bf16[1152,128], index: 1, kind: input, shape index: {}]   ;;  %s2627_s2 = inlined_call_operand.vmem [shape: f32[1,128], index: 2, kind: input, shape index: {}]   ;;  %s2628_s3 = inlined_call_operand.vmem [shape: bf16[128,512], index: 3, kind: input, shape index: {}]   ;;  %s2629_s4 = inlined_call_operand.vmem [shape: f32[1,512], index: 4, kind: input, shape index: {}]   ;;  %s2630_s5 = inlined_call_operand.vmem [shape: bf16[512,128], index: 5, kind: input, shape index: {}]   ;;  %s2631_s6 = inlined_call_operand.vmem [shape: f32[1,128], index: 6, kind: input, shape index: {}]   ;;  %s2632_s7 = inlined_call_operand.hbm [shape: f32[2,128], index: 7, kind: output, shape index: {}]  }
   0x1   :  { %v1892_v0 = vld [vmem:[%s2626_s1 + $0x38] sm:$0xff]  ;;  %v1891_v4 = vld [vmem:[%s2626_s1 + $0x30] sm:$0xff]  ;;  %v1890_v8 = vld [vmem:[%s2626_s1 + $0x28] sm:$0xff] }
   0x2   :  { %v1908_v1 = vld [vmem:[%s2626_s1 + $0xb8] sm:$0xff]  ;;  %631 = vmatpush.bf16.msra.mxu0 %v1892_v0  ;;  %v1907_v5 = vld [vmem:[%s2626_s1 + $0xb0] sm:$0xff]  ;;  %v1906_v9 = vld [vmem:[%s2626_s1 + $0xa8] sm:$0xff] }
   0x3   :  { %v1916_v2 = vld [vmem:[%s2626_s1 + $0xf8] sm:$0xff]  ;;  %657 = vmatpush.bf16.msra.mxu2 %v1908_v1  ;;  %v1915_v6 = vld [vmem:[%s2626_s1 + $0xf0] sm:$0xff]  ;;  %v1914_v10 = vld [vmem:[%s2626_s1 + $0xe8] sm:$0xff] }
   0x4   :  { %v1900_v3 = vld [vmem:[%s2626_s1 + $0x78] sm:$0xff]  ;;  %670 = vmatpush.bf16.msra.mxu3 %v1916_v2  ;;  %v1899_v7 = vld [vmem:[%s2626_s1 + $0x70] sm:$0xff]  ;;  %v1898_v11 = vld [vmem:[%s2626_s1 + $0x68] sm:$0xff] }
   0x5   :  { %644 = vmatpush.bf16.msra.mxu1 %v1900_v3  ;;  %v1889_v12 = vld [vmem:[%s2626_s1 + $0x20] sm:$0xff]  ;;  %v1888_v16 = vld [vmem:[%s2626_s1 + $0x18] sm:$0xff]  ;;  %v1887_v21 = vld [vmem:[%s2626_s1 + $0x10] sm:$0xff] }
   0x6   :  { %632 = vmatpush.bf16.msra.mxu0 %v1891_v4  ;;  %v1905_v13 = vld [vmem:[%s2626_s1 + $0xa0] sm:$0xff]  ;;  %v1904_v17 = vld [vmem:[%s2626_s1 + $0x98] sm:$0xff]  ;;  %v1903_v22 = vld [vmem:[%s2626_s1 + $0x90] sm:$0xff] }
   0x7   :  { %658 = vmatpush.bf16.msra.mxu2 %v1907_v5  ;;  %v1913_v14 = vld [vmem:[%s2626_s1 + $0xe0] sm:$0xff]  ;;  %v1912_v18 = vld [vmem:[%s2626_s1 + $0xd8] sm:$0xff] }
   0x8   :  { %671 = vmatpush.bf16.msra.mxu3 %v1915_v6  ;;  %v1897_v15 = vld [vmem:[%s2626_s1 + $0x60] sm:$0xff]  ;;  %v1896_v19 = vld [vmem:[%s2626_s1 + $0x58] sm:$0xff] }
   0x9   :  { %645 = vmatpush.bf16.msra.mxu1 %v1899_v7  ;;  %v27_v20 = vld [vmem:[%s2625_s0] sm:$0xff] }
   0xa   :  { %633 = vmatpush.bf16.msra.mxu0 %v1890_v8  ;;  %178 = vst [vmem:[#allocation1] ss:$9 sm:$0xff] %v27_v20 }
   0xb   :  { %659 = vmatpush.bf16.msra.mxu2 %v1906_v9 }
   0xc   :  { %672 = vmatpush.bf16.msra.mxu3 %v1914_v10 }
   0xd   :  { %646 = vmatpush.bf16.msra.mxu1 %v1898_v11 }
   0xe   :  { %634 = vmatpush.bf16.msra.mxu0 %v1889_v12 }
   0xf   :  { %660 = vmatpush.bf16.msra.mxu2 %v1905_v13 }
  0x10   :  { %673 = vmatpush.bf16.msra.mxu3 %v1913_v14 }
  0x11   :  { %647 = vmatpush.bf16.msra.mxu1 %v1897_v15 }
  0x12   :  { %635 = vmatpush.bf16.msra.mxu0 %v1888_v16 }
  0x13   :  { %661 = vmatpush.bf16.msra.mxu2 %v1904_v17 }
  0x14   :  { %12 = vsyncpa [#allocation3], 0  ;;  %674 = vmatpush.bf16.msra.mxu3 %v1912_v18  ;;  %v1911_v23 = vld [vmem:[%s2626_s1 + $0xd0] sm:$0xff]  ;;  %v1886_v25 = vld [vmem:[%s2626_s1 + $0x8] sm:$0xff]  ;;  %s2050_s22 = smov [#allocation2]   ;;  %s1332_s25 = sshll.u32 %s2632_s7, 4  ;;  %s1333_s25 = int_to_ptr.hbm [resolvable:$true] %s1332_s25 }
  0x15   :  { %648 = vmatpush.bf16.msra.mxu1 %v1896_v19  ;;  %v1895_v24 = vld [vmem:[%s2626_s1 + $0x50] sm:$0xff]  ;;  %v1902_v26 = vld [vmem:[%s2626_s1 + $0x88] sm:$0xff]  ;;  %v1885_v29 = vld [vmem:[%s2626_s1] sm:$0xff]  ;;  %s1330_s23 = sshll.u32 %s2050_s22, 4  ;;  %s1331_s23 = int_to_ptr.vmem [resolvable:$true] %s1330_s23 }
  0x16   :  { %636 = vmatpush.bf16.msra.mxu0 %v1887_v21  ;;  %v1910_v27 = vld [vmem:[%s2626_s1 + $0xc8] sm:$0xff]  ;;  %v1901_v30 = vld [vmem:[%s2626_s1 + $0x80] sm:$0xff]  ;;  %v1924_v31 = vld [vmem:[%s2626_s1 + $0x138] sm:$0xff] }
  0x17   :  { %662 = vmatpush.bf16.msra.mxu2 %v1903_v22  ;;  %v1894_v28 = vld [vmem:[%s2626_s1 + $0x48] sm:$0xff]  ;;  %v1940_v32 = vld [vmem:[%s2626_s1 + $0x1b8] sm:$0xff]  ;;  %v1909_v33 = vld [vmem:[%s2626_s1 + $0xc0] sm:$0xff] }
  0x18   :  { %675 = vmatpush.bf16.msra.mxu3 %v1911_v23  ;;  %v1893_v34 = vld [vmem:[%s2626_s1 + $0x40] sm:$0xff]  ;;  %v1948_v35 = vld [vmem:[%s2626_s1 + $0x1f8] sm:$0xff]  ;;  %v1923_v37 = vld [vmem:[%s2626_s1 + $0x130] sm:$0xff] }
  0x19   :  { %649 = vmatpush.bf16.msra.mxu1 %v1895_v24  ;;  %v1932_v36 = vld [vmem:[%s2626_s1 + $0x178] sm:$0xff]  ;;  %v1939_v38 = vld [vmem:[%s2626_s1 + $0x1b0] sm:$0xff]  ;;  %v179_v40 = vld [vmem:[#allocation1] sm:$0xff] }
  0x1a   :  { %637 = vmatpush.bf16.msra.mxu0 %v1886_v25  ;;  %v181_v39 = vld [vmem:[#allocation1 + $0x12] sm:$0xff]  ;;  %v182_v43 = vld [vmem:[#allocation1 + $0x1b] sm:$0xff]  ;;  %v180_v44 = vld [vmem:[#allocation1 + $0x9] sm:$0xff] }
  0x1b   :  { %663 = vmatpush.bf16.msra.mxu2 %v1902_v26  ;;  %v1947_v41 = vld [vmem:[%s2626_s1 + $0x1f0] sm:$0xff]  ;;  %v1922_v45 = vld [vmem:[%s2626_s1 + $0x128] sm:$0xff]  ;;  %v186_v49 = vld [vmem:[#allocation1 + $0x3f] sm:$0xff] }
  0x1c   :  { %676 = vmatpush.bf16.msra.mxu3 %v1910_v27  ;;  %v1931_v42 = vld [vmem:[%s2626_s1 + $0x170] sm:$0xff]  ;;  %v1938_v46 = vld [vmem:[%s2626_s1 + $0x1a8] sm:$0xff]  ;;  %v1921_v54 = vld [vmem:[%s2626_s1 + $0x120] sm:$0xff] }
  0x1d   :  { %650 = vmatpush.bf16.msra.mxu1 %v1894_v28  ;;  %v185_v47 = vld [vmem:[#allocation1 + $0x36] sm:$0xff]  ;;  %v183_v48 = vld [vmem:[#allocation1 + $0x24] sm:$0xff]  ;;  %v184_v51 = vld [vmem:[#allocation1 + $0x2d] sm:$0xff] }
  0x1e   :  { %638 = vmatpush.bf16.msra.mxu0 %v1885_v29  ;;  %v28_v50 = vld [vmem:[%s2625_s0 + $0x8] sm:$0x1]  ;;  %v1937_v55 = vld [vmem:[%s2626_s1 + $0x1a0] sm:$0xff]  ;;  %v1920_v58 = vld [vmem:[%s2626_s1 + $0x118] sm:$0xff] }
  0x1f   :  { %664 = vmatpush.bf16.msra.mxu2 %v1901_v30  ;;  %v1946_v52 = vld [vmem:[%s2626_s1 + $0x1e8] sm:$0xff]  ;;  %188 = vst [vmem:[#allocation1] ss:$9 sm:$0xff] %v28_v50  ;;  %v1945_v56 = vld [vmem:[%s2626_s1 + $0x1e0] sm:$0xff]  ;;  %v1936_v59 = vld [vmem:[%s2626_s1 + $0x198] sm:$0xff] }
  0x20   :  { %677 = vmatpush.bf16.msra.mxu3 %v1909_v33  ;;  %v1930_v53 = vld [vmem:[%s2626_s1 + $0x168] sm:$0xff]  ;;  %v1929_v57 = vld [vmem:[%s2626_s1 + $0x160] sm:$0xff]  ;;  %v1944_v60 = vld [vmem:[%s2626_s1 + $0x1d8] sm:$0xff] }
  0x21   :  { %651 = vmatpush.bf16.msra.mxu1 %v1893_v34  ;;  %639 = vmatmul.bf16.vlgmr.msra.gmra.mxu0 %v179_v40  ;;  %v1928_v61 = vld [vmem:[%s2626_s1 + $0x158] sm:$0xff]  ;;  %v1919_v62 = vld [vmem:[%s2626_s1 + $0x110] sm:$0xff]  ;;  %v1918_v2 = vld [vmem:[%s2626_s1 + $0x108] sm:$0xff] }
  0x22   :  { %683 = vmatpush.bf16.msrb.mxu0 %v1924_v31  ;;  %665 = vmatmul.bf16.vlgmr.msra.gmra.mxu2 %v181_v39  ;;  %v1935_v63 = vld [vmem:[%s2626_s1 + $0x190] sm:$0xff]  ;;  %v1934_v3 = vld [vmem:[%s2626_s1 + $0x188] sm:$0xff]  ;;  %v1917_v6 = vld [vmem:[%s2626_s1 + $0x100] sm:$0xff] }
  0x23   :  { %709 = vmatpush.bf16.msrb.mxu2 %v1940_v32  ;;  %678 = vmatmul.bf16.vlgmr.msra.gmra.mxu3 %v182_v43  ;;  %v1943_v0 = vld [vmem:[%s2626_s1 + $0x1d0] sm:$0xff]  ;;  %v1942_v4 = vld [vmem:[%s2626_s1 + $0x1c8] sm:$0xff]  ;;  %v1933_v7 = vld [vmem:[%s2626_s1 + $0x180] sm:$0xff] }
  0x24   :  { %722 = vmatpush.bf16.msrb.mxu3 %v1948_v35  ;;  %652 = vmatmul.bf16.vlgmr.msra.gmra.mxu1 %v180_v44  ;;  %v1927_v1 = vld [vmem:[%s2626_s1 + $0x150] sm:$0xff]  ;;  %v1926_v5 = vld [vmem:[%s2626_s1 + $0x148] sm:$0xff]  ;;  %v1956_v8 = vld [vmem:[%s2626_s1 + $0x238] sm:$0xff] }
  0x25   :  { %696 = vmatpush.bf16.msrb.mxu1 %v1932_v36  ;;  %v1941_v9 = vld [vmem:[%s2626_s1 + $0x1c0] sm:$0xff]  ;;  %v1955_v11 = vld [vmem:[%s2626_s1 + $0x230] sm:$0xff]  ;;  %v1954_v12 = vld [vmem:[%s2626_s1 + $0x228] sm:$0xff] }
  0x26   :  { %684 = vmatpush.bf16.msrb.mxu0 %v1923_v37  ;;  %v1925_v10 = vld [vmem:[%s2626_s1 + $0x140] sm:$0xff]  ;;  %v1952_v14 = vld [vmem:[%s2626_s1 + $0x218] sm:$0xff]  ;;  %v1951_v15 = vld [vmem:[%s2626_s1 + $0x210] sm:$0xff] }
  0x27   :  { %710 = vmatpush.bf16.msrb.mxu2 %v1939_v38  ;;  %v1953_v13 = vld [vmem:[%s2626_s1 + $0x220] sm:$0xff]  ;;  %v1950_v16 = vld [vmem:[%s2626_s1 + $0x208] sm:$0xff]  ;;  %v1987_v20 = vld [vmem:[%s2628_s3 + $0xec] sm:$0xf0] }
  0x28   :  { %723 = vmatpush.bf16.msrb.mxu3 %v1947_v41  ;;  %v1949_v17 = vld [vmem:[%s2626_s1 + $0x200] sm:$0xff]  ;;  %v1745_v23 = vld [vmem:[%s2628_s3 + $0xf0] sm:$0xf0]  ;;  %v1751_v24 = vld [vmem:[%s2628_s3 + $0xe8] sm:$0xf] }
  0x29   :  { %697 = vmatpush.bf16.msrb.mxu1 %v1931_v42  ;;  %v189_v18 = vld [vmem:[#allocation1] sm:$0xff]  ;;  %v1988_v25 = vld [vmem:[%s2628_s3 + $0xf4] sm:$0xf0]  ;;  %v1986_v28 = vld [vmem:[%s2628_s3 + $0xec] sm:$0xf] }
  0x2a   :  { %685 = vmatpush.bf16.msrb.mxu0 %v1922_v45  ;;  %v1743_v19 = vld [vmem:[%s2628_s3 + $0xe0] sm:$0xf]  ;;  %v1985_v21 = vld [vmem:[%s2628_s3 + $0xe4] sm:$0xf]  ;;  %v1752_v27 = vor.u32 %v1988_v25, %v1751_v24  ;;  %v1753_v29 = vld [vmem:[%s2628_s3 + $0xf8] sm:$0xf0] }
  0x2b   :  { %711 = vmatpush.bf16.msrb.mxu2 %v1938_v46  ;;  %v1744_v22 = vor.u32 %v1987_v20, %v1743_v19  ;;  %v1748_v26 = vor.u32 %v1985_v21, %v1745_v23  ;;  %v1756_v31 = vor.u32 %v1986_v28, %v1753_v29  ;;  %v1727_v33 = vld [vmem:[%s2628_s3 + $0xc0] sm:$0xf]  ;;  %v1983_v34 = vld [vmem:[%s2628_s3 + $0xcc] sm:$0xf0]  ;;  %v1981_v35 = vld [vmem:[%s2628_s3 + $0xc4] sm:$0xf] }
  0x2c   :  { %724 = vmatpush.bf16.msrb.mxu3 %v1946_v52  ;;  %v1728_v36 = vor.u32 %v1983_v34, %v1727_v33  ;;  %v1729_v37 = vld [vmem:[%s2628_s3 + $0xd0] sm:$0xf0]  ;;  %v1735_v38 = vld [vmem:[%s2628_s3 + $0xc8] sm:$0xf]  ;;  %v1984_v39 = vld [vmem:[%s2628_s3 + $0xd4] sm:$0xf0] }
  0x2d   :  { %698 = vmatpush.bf16.msrb.mxu1 %v1930_v53  ;;  %v1732_v40 = vor.u32 %v1981_v35, %v1729_v37  ;;  %v1736_v41 = vor.u32 %v1984_v39, %v1735_v38  ;;  %v1982_v42 = vld [vmem:[%s2628_s3 + $0xcc] sm:$0xf]  ;;  %v1737_v43 = vld [vmem:[%s2628_s3 + $0xd8] sm:$0xf0]  ;;  %v1711_v45 = vld [vmem:[%s2628_s3 + $0xa0] sm:$0xf] }
  0x2e   :  { %686 = vmatpush.bf16.msrb.mxu0 %v1921_v54  ;;  %v1740_v44 = vor.u32 %v1982_v42, %v1737_v43  ;;  %v1979_v46 = vld [vmem:[%s2628_s3 + $0xac] sm:$0xf0]  ;;  %v1713_v50 = vld [vmem:[%s2628_s3 + $0xb0] sm:$0xf0]  ;;  %v1980_v52 = vld [vmem:[%s2628_s3 + $0xb4] sm:$0xf0] }
  0x2f   :  { %712 = vmatpush.bf16.msrb.mxu2 %v1937_v55  ;;  %v1978_v55 = vld [vmem:[%s2628_s3 + $0xac] sm:$0xf]  ;;  %v1663_v21 = vld [vmem:[%s2628_s3 + $0x40] sm:$0xf]  ;;  %v1965_v23 = vld [vmem:[%s2628_s3 + $0x44] sm:$0xf] }
  0x30   :  { %725 = vmatpush.bf16.msrb.mxu3 %v1945_v56  ;;  %v1721_v56 = vld [vmem:[%s2628_s3 + $0xb8] sm:$0xf0]  ;;  %v1665_v25 = vld [vmem:[%s2628_s3 + $0x50] sm:$0xf0]  ;;  %v1966_v29 = vld [vmem:[%s2628_s3 + $0x4c] sm:$0xf] }
  0x31   :  { %699 = vmatpush.bf16.msrb.mxu1 %v1929_v57  ;;  %v1695_v57 = vld [vmem:[%s2628_s3 + $0x80] sm:$0xf]  ;;  %v1668_v34 = vor.u32 %v1965_v23, %v1665_v25  ;;  %v1963_v38 = vld [vmem:[%s2628_s3 + $0x2c] sm:$0xf0]  ;;  %v1961_v39 = vld [vmem:[%s2628_s3 + $0x24] sm:$0xf] }
  0x32   :  { %687 = vmatpush.bf16.msrb.mxu0 %v1920_v58  ;;  %v1647_v37 = vld [vmem:[%s2628_s3 + $0x20] sm:$0xf]  ;;  %v1655_v42 = vld [vmem:[%s2628_s3 + $0x28] sm:$0xf]  ;;  %v1964_v43 = vld [vmem:[%s2628_s3 + $0x34] sm:$0xf0] }
  0x33   :  { %713 = vmatpush.bf16.msrb.mxu2 %v1936_v59  ;;  %v2001_v23 = vld [vmem:[%s2630_s5 + $0x60] sm:$0xff]  ;;  %v1992_v25 = vld [vmem:[%s2630_s5 + $0x18] sm:$0xff] }
  0x34   :  { %726 = vmatpush.bf16.msrb.mxu3 %v1944_v60  ;;  %v1724_v60 = vor.u32 %v1978_v55, %v1721_v56  ;;  %v1633_v55 = vld [vmem:[%s2628_s3 + $0x10] sm:$0xf0]  ;;  %v1639_v56 = vld [vmem:[%s2628_s3 + $0x8] sm:$0xf] }
  0x35   :  { %700 = vmatpush.bf16.msrb.mxu1 %v1928_v61  ;;  %v1975_v61 = vld [vmem:[%s2628_s3 + $0x8c] sm:$0xf0] }
  0x36   :  { %688 = vmatpush.bf16.msrb.mxu0 %v1919_v62  ;;  %v1973_v62 = vld [vmem:[%s2628_s3 + $0x84] sm:$0xf] }
  0x37   :  { %714 = vmatpush.bf16.msrb.mxu2 %v1935_v63  ;;  %v1697_v63 = vld [vmem:[%s2628_s3 + $0x90] sm:$0xf0] }
  0x38   :  { %727 = vmatpush.bf16.msrb.mxu3 %v1943_v0  ;;  %v1696_v0 = vor.u32 %v1975_v61, %v1695_v57  ;;  %v1960_v57 = vld [vmem:[%s2628_s3 + $0x14] sm:$0xf0] }
  0x39   :  { %701 = vmatpush.bf16.msrb.mxu1 %v1927_v1  ;;  %v1703_v1 = vld [vmem:[%s2628_s3 + $0x88] sm:$0xf] }
  0x3a   :  { %689 = vmatpush.bf16.msrb.mxu0 %v1918_v2  ;;  %v1976_v2 = vld [vmem:[%s2628_s3 + $0x94] sm:$0xf0] }
  0x3b   :  { %715 = vmatpush.bf16.msrb.mxu2 %v1934_v3  ;;  %v1974_v3 = vld [vmem:[%s2628_s3 + $0x8c] sm:$0xf] }
  0x3c   :  { %728 = vmatpush.bf16.msrb.mxu3 %v1942_v4 }
  0x3d   :  { %702 = vmatpush.bf16.msrb.mxu1 %v1926_v5  ;;  %v1700_v5 = vor.u32 %v1973_v62, %v1697_v63  ;;  %v1640_v62 = vor.u32 %v1960_v57, %v1639_v56  ;;  %v1958_v63 = vld [vmem:[%s2628_s3 + $0xc] sm:$0xf] }
  0x3e   :  { %690 = vmatpush.bf16.msrb.mxu0 %v1917_v6  ;;  %v1704_v6 = vor.u32 %v1976_v2, %v1703_v1 }
  0x3f   :  { %716 = vmatpush.bf16.msrb.mxu2 %v1933_v7  ;;  %v1705_v7 = vld [vmem:[%s2628_s3 + $0x98] sm:$0xf0] }
  0x40   :  { %729 = vmatpush.bf16.msrb.mxu3 %v1941_v9  ;;  %v1971_v9 = vld [vmem:[%s2628_s3 + $0x6c] sm:$0xf0] }
  0x41   :  { %703 = vmatpush.bf16.msrb.mxu1 %v1925_v10  ;;  %691 = vmatmul.bf16.vlgmr.msrb.gmra.mxu0 %v183_v48  ;;  %v1708_v10 = vor.u32 %v1974_v3, %v1705_v7  ;;  %v2012_v7 = vld [vmem:[%s2630_s5 + $0xb8] sm:$0xff] }
  0x42   :  { %735 = vmatpush.bf16.msra.mxu0 %v1956_v8  ;;  %717 = vmatmul.bf16.vlgmr.msrb.gmra.mxu2 %v185_v47  ;;  %v1977_v47 = vld [vmem:[%s2628_s3 + $0xa4] sm:$0xf]  ;;  %v1679_v8 = vld [vmem:[%s2628_s3 + $0x60] sm:$0xf] }
  0x43   :  { %730 = vmatmul.bf16.vlgmr.msrb.gmra.mxu3 %v186_v49  ;;  %965 = vmatpush.bf16.msra.mxu2 %v1748_v26  ;;  %v1712_v49 = vor.u32 %v1979_v46, %v1711_v45  ;;  %v1716_v53 = vor.u32 %v1977_v47, %v1713_v50  ;;  %v1671_v26 = vld [vmem:[%s2628_s3 + $0x48] sm:$0xf]  ;;  %v1656_v46 = vor.u32 %v1964_v43, %v1655_v42  ;;  %v1962_v47 = vld [vmem:[%s2628_s3 + $0x2c] sm:$0xf]  ;;  %v1999_v43 = vld [vmem:[%s2630_s5 + $0x50] sm:$0xff] }
  0x44   :  { %704 = vmatmul.bf16.vlgmr.msrb.gmra.mxu1 %v184_v51  ;;  %978 = vmatpush.bf16.msra.mxu3 %v1752_v27  ;;  %v1719_v51 = vld [vmem:[%s2628_s3 + $0xa8] sm:$0xf]  ;;  %v1968_v27 = vld [vmem:[%s2628_s3 + $0x54] sm:$0xf0] }
  0x45   :  { %952 = vmatpush.bf16.msra.mxu1 %v1744_v22  ;;  %v1720_v54 = vor.u32 %v1980_v52, %v1719_v51  ;;  %v1967_v22 = vld [vmem:[%s2628_s3 + $0x4c] sm:$0xf0]  ;;  %v1672_v35 = vor.u32 %v1968_v27, %v1671_v26  ;;  %v1631_v51 = vld [vmem:[%s2628_s3] sm:$0xf]  ;;  %v2016_v26 = vld [vmem:[%s2630_s5 + $0xd8] sm:$0xff] }
  0x46   :  { %736 = vmatpush.bf16.msra.mxu0 %v1955_v11  ;;  %v1969_v11 = vld [vmem:[%s2628_s3 + $0x64] sm:$0xf]  ;;  %v1664_v33 = vor.u32 %v1967_v22, %v1663_v21  ;;  %v1959_v52 = vld [vmem:[%s2628_s3 + $0xc] sm:$0xf0]  ;;  %v2014_v42 = vld [vmem:[%s2630_s5 + $0xc8] sm:$0xff] }
  0x47   :  { %966 = vmatpush.bf16.msra.mxu2 %v1732_v40  ;;  %v1648_v40 = vor.u32 %v1963_v38, %v1647_v37 }
  0x48   :  { %979 = vmatpush.bf16.msra.mxu3 %v1736_v41  ;;  %v1649_v41 = vld [vmem:[%s2628_s3 + $0x30] sm:$0xf0] }
  0x49   :  { %953 = vmatpush.bf16.msra.mxu1 %v1728_v36  ;;  %v1652_v45 = vor.u32 %v1961_v39, %v1649_v41  ;;  %v1990_v41 = vld [vmem:[%s2630_s5 + $0x8] sm:$0xff] }
  0x4a   :  { %737 = vmatpush.bf16.msra.mxu0 %v1954_v12  ;;  %v1681_v12 = vld [vmem:[%s2628_s3 + $0x70] sm:$0xf0] }
  0x4b   :  { %967 = vmatpush.bf16.msra.mxu2 %v1716_v53  ;;  %v1684_v19 = vor.u32 %v1969_v11, %v1681_v12  ;;  %v1957_v53 = vld [vmem:[%s2628_s3 + $0x4] sm:$0xf]  ;;  %v2003_v12 = vld [vmem:[%s2630_s5 + $0x70] sm:$0xff] }
  0x4c   :  { %980 = vmatpush.bf16.msra.mxu3 %v1720_v54  ;;  %v1632_v54 = vor.u32 %v1959_v52, %v1631_v51  ;;  %v1636_v61 = vor.u32 %v1957_v53, %v1633_v55  ;;  %v2005_v51 = vld [vmem:[%s2630_s5 + $0x80] sm:$0xff] }
  0x4d   :  { %954 = vmatpush.bf16.msra.mxu1 %v1712_v49  ;;  %v1657_v49 = vld [vmem:[%s2628_s3 + $0x38] sm:$0xf0]  ;;  %v782_v52 = vld [vmem:[%s2629_s4] sm:$0xf] }
  0x4e   :  { %738 = vmatpush.bf16.msra.mxu0 %v1953_v13  ;;  %v1687_v13 = vld [vmem:[%s2628_s3 + $0x68] sm:$0xf]  ;;  %v1660_v50 = vor.u32 %v1962_v47, %v1657_v49  ;;  %v784_v53 = vperm.slane %v782_v52, 0 }
  0x4f   :  { %968 = vmatpush.bf16.msra.mxu2 %v1700_v5  ;;  %v1998_v47 = vld [vmem:[%s2630_s5 + $0x48] sm:$0xff] }
  0x50   :  { %981 = vmatpush.bf16.msra.mxu3 %v1704_v6  ;;  %v2004_v6 = vld [vmem:[%s2630_s5 + $0x78] sm:$0xff]  ;;  %v2006_v49 = vld [vmem:[%s2630_s5 + $0x88] sm:$0xff] }
  0x51   :  { %955 = vmatpush.bf16.msra.mxu1 %v1696_v0  ;;  %v1641_v0 = vld [vmem:[%s2628_s3 + $0x18] sm:$0xf0] }
  0x52   :  { %739 = vmatpush.bf16.msra.mxu0 %v1952_v14  ;;  %v1972_v14 = vld [vmem:[%s2628_s3 + $0x74] sm:$0xf0]  ;;  %v1644_v1 = vor.u32 %v1958_v63, %v1641_v0  ;;  %v786_v63 = vperm.slane %v782_v52, 2 }
  0x53   :  { %v1688_v20 = vor.u32 %v1972_v14, %v1687_v13  ;;  %969 = vmatpush.bf16.msra.mxu2 %v1684_v19  ;;  %v2011_v13 = vld [vmem:[%s2630_s5 + $0xb0] sm:$0xff] }
  0x55   :  { %982 = vmatpush.bf16.msra.mxu3 %v1688_v20  ;;  %v1993_v20 = vld [vmem:[%s2630_s5 + $0x20] sm:$0xff] }
  0x56   :  { %740 = vmatpush.bf16.msra.mxu0 %v1951_v15  ;;  %v1970_v15 = vld [vmem:[%s2628_s3 + $0x6c] sm:$0xf] }
  0x57   :  { %970 = vmatpush.bf16.msra.mxu2 %v1668_v34 }
  0x59   :  { %983 = vmatpush.bf16.msra.mxu3 %v1672_v35 }
  0x5a   :  { %741 = vmatpush.bf16.msra.mxu0 %v1950_v16  ;;  %v1689_v16 = vld [vmem:[%s2628_s3 + $0x78] sm:$0xf0] }
  0x5b   :  { %v1692_v24 = vor.u32 %v1970_v15, %v1689_v16  ;;  %971 = vmatpush.bf16.msra.mxu2 %v1652_v45  ;;  %v1994_v15 = vld [vmem:[%s2630_s5 + $0x28] sm:$0xff]  ;;  %v1989_v45 = vld [vmem:[%s2630_s5] sm:$0xff] }
  0x5d   :  { %984 = vmatpush.bf16.msra.mxu3 %v1656_v46  ;;  %v2013_v46 = vld [vmem:[%s2630_s5 + $0xc0] sm:$0xff] }
  0x5e   :  { %742 = vmatpush.bf16.msra.mxu0 %v1949_v17  ;;  %v1680_v17 = vor.u32 %v1971_v9, %v1679_v8  ;;  %v2019_v8 = vld [vmem:[%s2630_s5 + $0xf0] sm:$0xff] }
  0x5f   :  { %972 = vmatpush.bf16.msra.mxu2 %v1636_v61  ;;  %v785_v61 = vperm.slane %v782_v52, 1 }
  0x60   :  { %956 = vmatpush.bf16.msra.mxu1 %v1680_v17  ;;  %v2002_v17 = vld [vmem:[%s2630_s5 + $0x68] sm:$0xff] }
  0x61   :  { %743 = vmatmul.bf16.vlgmr.msra.gmra.mxu0 %v189_v18  ;;  %985 = vmatpush.bf16.msra.mxu3 %v1640_v62 }
  0x62   :  { %991 = vmatpush.bf16.msrb.mxu0 %v1756_v31  ;;  %v1673_v31 = vld [vmem:[%s2628_s3 + $0x58] sm:$0xf0] }
  0x63   :  { %v1676_v36 = vor.u32 %v1966_v29, %v1673_v31  ;;  %1285 = vmatpush.bf16.msrb.mxu2 %v2004_v6  ;;  %v2008_v29 = vld [vmem:[%s2630_s5 + $0x98] sm:$0xff]  ;;  %v1991_v31 = vld [vmem:[%s2630_s5 + $0x10] sm:$0xff] }
  0x64   :  { %957 = vmatpush.bf16.msra.mxu1 %v1664_v33  ;;  %v2015_v33 = vld [vmem:[%s2630_s5 + $0xd0] sm:$0xff] }
  0x65   :  { %1298 = vmatpush.bf16.msrb.mxu3 %v2012_v7 }
  0x66   :  { %992 = vmatpush.bf16.msrb.mxu0 %v1740_v44  ;;  %v2022_v44 = vld [vmem:[%s2627_s2] ss:$0 sm:$0xff] }
  0x67   :  { %1286 = vmatpush.bf16.msrb.mxu2 %v2003_v12 }
  0x68   :  { %958 = vmatpush.bf16.msra.mxu1 %v1648_v40 }
  0x69   :  { %1299 = vmatpush.bf16.msrb.mxu3 %v2011_v13 }
  0x6a   :  { %993 = vmatpush.bf16.msrb.mxu0 %v1724_v60 }
  0x6b   :  { %1287 = vmatpush.bf16.msrb.mxu2 %v2002_v17 }
  0x6c   :  { %959 = vmatpush.bf16.msra.mxu1 %v1632_v54  ;;  %v787_v54 = vperm.slane %v782_v52, 3 }
  0x6e   :  { %994 = vmatpush.bf16.msrb.mxu0 %v1708_v10 }
  0x6f   :  { %1288 = vmatpush.bf16.msrb.mxu2 %v2001_v23 }
  0x72   :  { %995 = vmatpush.bf16.msrb.mxu0 %v1692_v24  ;;  %v2009_v24 = vld [vmem:[%s2630_s5 + $0xa0] sm:$0xff] }
  0x76   :  { %996 = vmatpush.bf16.msrb.mxu0 %v1676_v36 }
  0x7a   :  { %997 = vmatpush.bf16.msrb.mxu0 %v1660_v50  ;;  %v1997_v50 = vld [vmem:[%s2630_s5 + $0x40] sm:$0xff] }
  0x7e   :  { %998 = vmatpush.bf16.msrb.mxu0 %v1644_v1 }
  0x9e   :  { %v2337_v30 = vpop.f32.mrf.mxu0 }
  0xa1   :  { %v2339_v32 = vpop.f32.mrf.mxu1 }
  0xa5   :  { %v2374_v48 = vpop.f32.mrf.mxu2 }
  0xa6   :  { %v2394_v58 = vpop.f32.mrf.mxu3  ;;  %v642_v59 = vpop.f32.mrf.mxu0 }
  0xa7   :  { %v641_v59 = vadd.f32 %v2022_v44, %v2337_v30  ;;  %v1996_v30 = vld [vmem:[%s2630_s5 + $0x38] sm:$0xff]  ;;  %v2007_v44 = vld [vmem:[%s2630_s5 + $0x90] sm:$0xff] }
  0xa8   :  { %1272 = vmatpush.bf16.msrb.mxu1 %v1996_v30 }
  0xa9   :  { %v655_v4 = vpop.f32.mrf.mxu1  ;;  %v654_v3 = vadd.f32 %v2339_v32, %v641_v59  ;;  %v1995_v32 = vld [vmem:[%s2630_s5 + $0x30] sm:$0xff] }
  0xaa   :  { %v2020_v4 = vld [vmem:[%s2630_s5 + $0xf8] sm:$0xff] }
  0xab   :  { %1311 = vmatpush.bf16.msra.mxu0 %v2020_v4  ;;  %v667_v9 = vadd.f32 %v2374_v48, %v654_v3  ;;  %v2018_v48 = vld [vmem:[%s2630_s5 + $0xe8] sm:$0xff] }
  0xac   :  { %1273 = vmatpush.bf16.msrb.mxu1 %v1995_v32 }
  0xad   :  { %v668_v18 = vpop.f32.mrf.mxu2  ;;  %v680_v16 = vadd.f32 %v2394_v58, %v667_v9  ;;  %v2017_v58 = vld [vmem:[%s2630_s5 + $0xe0] sm:$0xff] }
  0xae   :  { %v681_v28 = vpop.f32.mrf.mxu3  ;;  %v2010_v18 = vld [vmem:[%s2630_s5 + $0xa8] sm:$0xff] }
  0xaf   :  { %1312 = vmatpush.bf16.msra.mxu0 %v2019_v8  ;;  %1300 = vmatpush.bf16.msrb.mxu3 %v2010_v18  ;;  %v2000_v28 = vld [vmem:[%s2630_s5 + $0x58] sm:$0xff] }
  0xb0   :  { %1274 = vmatpush.bf16.msrb.mxu1 %v1994_v15  ;;  %1289 = vmatpush.bf16.msrb.mxu2 %v2000_v28 }
  0xb3   :  { %1313 = vmatpush.bf16.msra.mxu0 %v2018_v48  ;;  %1301 = vmatpush.bf16.msrb.mxu3 %v2009_v24 }
  0xb4   :  { %1275 = vmatpush.bf16.msrb.mxu1 %v1993_v20  ;;  %1290 = vmatpush.bf16.msrb.mxu2 %v1999_v43 }
  0xb7   :  { %1314 = vmatpush.bf16.msra.mxu0 %v2017_v58  ;;  %1302 = vmatpush.bf16.msrb.mxu3 %v2008_v29 }
  0xb8   :  { %1276 = vmatpush.bf16.msrb.mxu1 %v1992_v25  ;;  %1291 = vmatpush.bf16.msrb.mxu2 %v1998_v47 }
  0xbb   :  { %1315 = vmatpush.bf16.msra.mxu0 %v2016_v26  ;;  %1303 = vmatpush.bf16.msrb.mxu3 %v2007_v44 }
  0xbc   :  { %1277 = vmatpush.bf16.msrb.mxu1 %v1991_v31  ;;  %1292 = vmatpush.bf16.msrb.mxu2 %v1997_v50 }
  0xbe   :  { %v692_v60 = vpop.f32.mrf.mxu0 }
  0xbf   :  { %v693_v21 = vadd.f32 %v692_v60, %v680_v16  ;;  %1316 = vmatpush.bf16.msra.mxu0 %v2015_v33  ;;  %1304 = vmatpush.bf16.msrb.mxu3 %v2006_v49 }
  0xc0   :  { %1278 = vmatpush.bf16.msrb.mxu1 %v1990_v41 }
  0xc1   :  { %v705_v2 = vpop.f32.mrf.mxu1 }
  0xc2   :  { %v706_v27 = vadd.f32 %v705_v2, %v693_v21 }
  0xc3   :  { %1317 = vmatpush.bf16.msra.mxu0 %v2014_v42  ;;  %1305 = vmatpush.bf16.msrb.mxu3 %v2005_v51 }
  0xc4   :  { %1279 = vmatpush.bf16.msrb.mxu1 %v1989_v45 }
  0xc5   :  { %v718_v5 = vpop.f32.mrf.mxu2 }
  0xc6   :  { %v731_v10 = vpop.f32.mrf.mxu3  ;;  %v694_v11 = vpop.f32.mrf.mxu0  ;;  %v719_v34 = vadd.f32 %v718_v5, %v706_v27 }
  0xc7   :  { %1318 = vmatpush.bf16.msra.mxu0 %v2013_v46 }
  0xc8   :  { %v732_v35 = vadd.f32 %v731_v10, %v719_v34 }
  0xc9   :  { %v707_v14 = vpop.f32.mrf.mxu1 }
  0xca   :  { %v2023_v14 = vld [vmem:[%s2631_s6] ss:$0 sm:$0xff] }
  0xcd   :  { %v720_v19 = vpop.f32.mrf.mxu2 }
  0xce   :  { %v733_v22 = vpop.f32.mrf.mxu3 }
  0xde   :  { %v744_v36 = vpop.f32.mrf.mxu0 }
  0xdf   :  { %v745_v37 = vadd.f32 %v744_v36, %v732_v35 }
  0xe1   :  { %v748_v38 = vmax.f32 %v745_v37, 0.0 }
  0xe3   :  { %v749_v39 = vpack.c.bf16 %v748_v38, %v748_v38 }
  0xe5   :  { %960 = vmatmul.bf16.vlgmr.msra.gmra.mxu1 %v749_v39  ;;  %973 = vmatmul.bf16.vlgmr.msra.gmra.mxu2 %v749_v39 }
  0xe6   :  { %986 = vmatmul.bf16.vlgmr.msra.gmra.mxu3 %v749_v39  ;;  %999 = vmatmul.bf16.vlgmr.msrb.gmra.mxu0 %v749_v39  ;;  %v746_v40 = vpop.f32.mrf.mxu0 }
 0x162   :  { %v961_v55 = vpop.f32.mrf.mxu1 }
 0x163   :  { %v962_v56 = vadd.f32 %v961_v55, %v784_v53  ;;  %v1000_v57 = vpop.f32.mrf.mxu0 }
 0x164   :  { %v1001_v59 = vadd.f32 %v1000_v57, %v787_v54 }
 0x165   :  { %v1004_v60 = vmax.f32 %v962_v56, 0.0 }
 0x166   :  { %v1007_v62 = vmax.f32 %v1001_v59, 0.0 }
 0x167   :  { %v1008_v0 = vpack.c.bf16 %v1004_v60, %v1004_v60 }
 0x168   :  { %v1011_v1 = vpack.c.bf16 %v1007_v62, %v1007_v62  ;;  %v974_v2 = vpop.f32.mrf.mxu2 }
 0x169   :  { %v975_v3 = vadd.f32 %v974_v2, %v785_v61  ;;  %v987_v30 = vpop.f32.mrf.mxu3  ;;  %1280 = vmatmul.bf16.vlgmr.msrb.gmra.mxu1 %v1008_v0 }
 0x16a   :  { %v988_v4 = vadd.f32 %v987_v30, %v786_v63  ;;  %1319 = vmatmul.bf16.vlgmr.msra.gmra.mxu0 %v1011_v1  ;;  %v963_v5 = vpop.f32.mrf.mxu1 }
 0x16b   :  { %v1005_v6 = vmax.f32 %v975_v3, 0.0  ;;  %v1002_v7 = vpop.f32.mrf.mxu0 }
 0x16c   :  { %v1006_v32 = vmax.f32 %v988_v4, 0.0 }
 0x16d   :  { %v1009_v8 = vpack.c.bf16 %v1005_v6, %v1005_v6 }
 0x16e   :  { %v1010_v9 = vpack.c.bf16 %v1006_v32, %v1006_v32 }
 0x16f   :  { %1293 = vmatmul.bf16.vlgmr.msrb.gmra.mxu2 %v1009_v8 }
 0x170   :  { %1306 = vmatmul.bf16.vlgmr.msrb.gmra.mxu3 %v1010_v9  ;;  %v976_v10 = vpop.f32.mrf.mxu2 }
 0x171   :  { %v989_v11 = vpop.f32.mrf.mxu3 }
 0x1e6   :  { %v1281_v12 = vpop.f32.mrf.mxu1 }
 0x1e7   :  { %v1320_v13 = vpop.f32.mrf.mxu0  ;;  %v1282_v16 = vadd.f32 %v2023_v14, %v1281_v12 }
 0x1ee   :  { %v1283_v15 = vpop.f32.mrf.mxu1 }
 0x1ef   :  { %v1322_v48 = vpop.f32.mrf.mxu0 }
 0x1f2   :  { %v1294_v17 = vpop.f32.mrf.mxu2 }
 0x1f3   :  { %v1295_v18 = vadd.f32 %v1294_v17, %v1282_v16  ;;  %v1307_v19 = vpop.f32.mrf.mxu3 }
 0x1f5   :  { %v1308_v20 = vadd.f32 %v1307_v19, %v1295_v18 }
 0x1f7   :  { %v1321_v58 = vadd.f32 %v1320_v13, %v1308_v20 }
 0x1f9   :  { %1324 = vst [vmem:[#allocation2] sm:$0x3] %v1321_v58 }
 0x1fa   :  { %v1296_v21 = vpop.f32.mrf.mxu2  ;;  %1335 = dma.vmem_to_hbm [thread:$0]  %s1331_s23, 32, %s1333_s25, [#allocation3]  }
 0x1fb   :  { %v1309_v22 = vpop.f32.mrf.mxu3 }
 0x1fc   :  { %2048 = dma.done.wait [#allocation3], 32  }
 0x1fd   :  { %2049 = vsyncadd [#allocation3], 4294967264 }
 0x1fe   :  { %1340 = vsyncpa [#allocation3], 1 }

// kernel: dqn_cnn_forward.4
= control target key start
LH: loop header
LB: loop body
LE: loop exit
PB: predicated region body
PF: predicated region fallthrough
CT: control target
= control target key end

     0   :  { %s6209_s12 = smov 0   ;;  %s7575_s0 = inlined_call_operand.vmem [shape: bf16[2,4,4,512], index: 0, kind: input, shape index: {}]   ;;  %s7576_s1 = inlined_call_operand.vmem [shape: bf16[2048,128], index: 1, kind: input, shape index: {}]   ;;  %s7577_s2 = inlined_call_operand.vmem [shape: f32[1,128], index: 2, kind: input, shape index: {}]   ;;  %s7578_s3 = inlined_call_operand.vmem [shape: bf16[2,3,3,128], index: 3, kind: output, shape index: {}]  }
   0x1 LB: > { %s4228_s13 = sadd.s32 4294967295, %s6187_s12   ;;  %p4232_p0 = scmp.ge.s32.totalorder %s6187_s12, 1  ;;  %s6187_s12 = sphi %s6209_s12, %s13_s12  }
   0x2   : > { %p137_p1 = scmp.lt.s32.totalorder %s6187_s12, 3 }
   0x4   : > { %p138_p2 = pnand %p4232_p0, %p137_p1 }
   0x5   : > { %p161_p3 = scmp.lt.s32.totalorder (!%p138_p2), %s4228_s13, 1 }
   0x6   : > { %141 = sbr.rel (%p138_p2) target bundleno = 543 (0x21f), region = 32 }
   0xb   : > { %v5826_v0 = vld [vmem:[%s7576_s1 + $0x138] sm:$0xff]  ;;  %v5825_v4 = vld [vmem:[%s7576_s1 + $0x130] sm:$0xff]  ;;  %v5824_v8 = vld [vmem:[%s7576_s1 + $0x128] sm:$0xff]  ;;  %s7582_s13 = smov (!%p161_p3, %s4228_s13), 1  ;;  %vm1503_vm0 = vcmask 1041408  }
   0xc   : > { %v5834_v1 = vld [vmem:[%s7576_s1 + $0x178] sm:$0xff]  ;;  %527 = vmatpush.bf16.msra.mxu0 %v5826_v0  ;;  %v5833_v5 = vld [vmem:[%s7576_s1 + $0x170] sm:$0xff]  ;;  %v5832_v9 = vld [vmem:[%s7576_s1 + $0x168] sm:$0xff]  ;;  %s5786_s21 = sshll.u32 %s7582_s13, 5  ;;  %s6171_s20 = smul.u32 6, %s7582_s13 }
   0xd   : > { %v5842_v2 = vld [vmem:[%s7576_s1 + $0x1b8] sm:$0xff]  ;;  %540 = vmatpush.bf16.msra.mxu1 %v5834_v1  ;;  %v5841_v6 = vld [vmem:[%s7576_s1 + $0x1b0] sm:$0xff]  ;;  %v5840_v10 = vld [vmem:[%s7576_s1 + $0x1a8] sm:$0xff]  ;;  %s6277_s28 = scalar_lea.vmem %s7575_s0, %s5786_s21  ;;  %vm1504_vm1 = vsmask.f32 1280 }
   0xe   : > { %v5850_v3 = vld [vmem:[%s7576_s1 + $0x1f8] sm:$0xff]  ;;  %553 = vmatpush.bf16.msra.mxu2 %v5842_v2  ;;  %v5849_v7 = vld [vmem:[%s7576_s1 + $0x1f0] sm:$0xff]  ;;  %v5848_v11 = vld [vmem:[%s7576_s1 + $0x1e8] sm:$0xff]  ;;  %s7184_s29 = scalar_lea.vmem %s7578_s3, %s6171_s20 }
   0xf   : > { %566 = vmatpush.bf16.msra.mxu3 %v5850_v3  ;;  %v5823_v12 = vld [vmem:[%s7576_s1 + $0x120] sm:$0xff]  ;;  %v5822_v16 = vld [vmem:[%s7576_s1 + $0x118] sm:$0xff]  ;;  %v5821_v21 = vld [vmem:[%s7576_s1 + $0x110] sm:$0xff] }
  0x10   : > { %528 = vmatpush.bf16.msra.mxu0 %v5825_v4  ;;  %v5831_v13 = vld [vmem:[%s7576_s1 + $0x160] sm:$0xff]  ;;  %v5830_v17 = vld [vmem:[%s7576_s1 + $0x158] sm:$0xff]  ;;  %v5829_v22 = vld [vmem:[%s7576_s1 + $0x150] sm:$0xff] }
  0x11   : > { %541 = vmatpush.bf16.msra.mxu1 %v5833_v5  ;;  %v5839_v14 = vld [vmem:[%s7576_s1 + $0x1a0] sm:$0xff]  ;;  %v5838_v18 = vld [vmem:[%s7576_s1 + $0x198] sm:$0xff]  ;;  %v5837_v23 = vld [vmem:[%s7576_s1 + $0x190] sm:$0xff] }
  0x12   : > { %554 = vmatpush.bf16.msra.mxu2 %v5841_v6  ;;  %v5847_v15 = vld [vmem:[%s7576_s1 + $0x1e0] sm:$0xff]  ;;  %v5846_v19 = vld [vmem:[%s7576_s1 + $0x1d8] sm:$0xff]  ;;  %v5845_v24 = vld [vmem:[%s7576_s1 + $0x1d0] sm:$0xff] }
  0x13   : > { %567 = vmatpush.bf16.msra.mxu3 %v5849_v7  ;;  %v172_v20 = vld [vmem:[%s6277_s28] sm:$0xff]  ;;  %v5820_v25 = vld [vmem:[%s7576_s1 + $0x108] sm:$0xff]  ;;  %v5794_v35 = vld [vmem:[%s7576_s1 + $0x38] sm:$0xff] }
  0x14   : > { %529 = vmatpush.bf16.msra.mxu0 %v5824_v8  ;;  %302 = vst [vmem:[#allocation1] ss:$4 sm:$0xff] %v172_v20  ;;  %v5828_v26 = vld [vmem:[%s7576_s1 + $0x148] sm:$0xff]  ;;  %v5819_v29 = vld [vmem:[%s7576_s1 + $0x100] sm:$0xff]  ;;  %v5802_v36 = vld [vmem:[%s7576_s1 + $0x78] sm:$0xff] }
  0x15   : > { %542 = vmatpush.bf16.msra.mxu1 %v5832_v9  ;;  %v5836_v27 = vld [vmem:[%s7576_s1 + $0x188] sm:$0xff]  ;;  %v5827_v30 = vld [vmem:[%s7576_s1 + $0x140] sm:$0xff]  ;;  %v5810_v47 = vld [vmem:[%s7576_s1 + $0xb8] sm:$0xff] }
  0x16   : > { %555 = vmatpush.bf16.msra.mxu2 %v5840_v10  ;;  %v5844_v28 = vld [vmem:[%s7576_s1 + $0x1c8] sm:$0xff]  ;;  %v5835_v31 = vld [vmem:[%s7576_s1 + $0x180] sm:$0xff]  ;;  %v5818_v48 = vld [vmem:[%s7576_s1 + $0xf8] sm:$0xff] }
  0x17   : > { %568 = vmatpush.bf16.msra.mxu3 %v5848_v11  ;;  %v5843_v32 = vld [vmem:[%s7576_s1 + $0x1c0] sm:$0xff]  ;;  %v5793_v55 = vld [vmem:[%s7576_s1 + $0x30] sm:$0xff]  ;;  %v5792_v61 = vld [vmem:[%s7576_s1 + $0x28] sm:$0xff] }
  0x18   : > { %530 = vmatpush.bf16.msra.mxu0 %v5823_v12  ;;  %v5801_v56 = vld [vmem:[%s7576_s1 + $0x70] sm:$0xff]  ;;  %v5800_v62 = vld [vmem:[%s7576_s1 + $0x68] sm:$0xff]  ;;  %v5791_v1 = vld [vmem:[%s7576_s1 + $0x20] sm:$0xff] }
  0x19   : > { %543 = vmatpush.bf16.msra.mxu1 %v5831_v13  ;;  %v5809_v58 = vld [vmem:[%s7576_s1 + $0xb0] sm:$0xff]  ;;  %v5808_v63 = vld [vmem:[%s7576_s1 + $0xa8] sm:$0xff]  ;;  %v5799_v2 = vld [vmem:[%s7576_s1 + $0x60] sm:$0xff] }
  0x1a   : > { %556 = vmatpush.bf16.msra.mxu2 %v5839_v14  ;;  %v5817_v59 = vld [vmem:[%s7576_s1 + $0xf0] sm:$0xff]  ;;  %v5816_v0 = vld [vmem:[%s7576_s1 + $0xe8] sm:$0xff]  ;;  %v5807_v8 = vld [vmem:[%s7576_s1 + $0xa0] sm:$0xff] }
  0x1b   : > { %569 = vmatpush.bf16.msra.mxu3 %v5847_v15  ;;  %v305_v33 = vld.sshfl [vmem:[#allocation1 + $0x10] sm:$0xff pattern:$0x73625140]  ;;  %v303_v34 = vld.sshfl [vmem:[#allocation1] sm:$0xff pattern:$0x73625140]  ;;  %vm7201_vm2 = vmand %vm1503_vm0, %vm1504_vm1 }
  0x1c   : > { %531 = vmatpush.bf16.msra.mxu0 %v5822_v16  ;;  %v319_v37 = vshrl.u32 %v305_v33, 16  ;;  %v321_v38 = vshll.u32 %v305_v33, 16  ;;  %v307_v39 = vshrl.u32 %v303_v34, 16  ;;  %v309_v40 = vshll.u32 %v303_v34, 16  ;;  %v6365_v3 = vld [vmem:[%s6277_s28 + $0x8] sm:$0xff]  ;;  %v5815_v9 = vld [vmem:[%s7576_s1 + $0xe0] sm:$0xff] }
  0x1d   : > { %544 = vmatpush.bf16.msra.mxu1 %v5830_v17  ;;  %v306_v41 = vld.sshfl [vmem:[#allocation1 + $0x18] sm:$0xff pattern:$0x73625140]  ;;  %v304_v42 = vld.sshfl [vmem:[#allocation1 + $0x8] sm:$0xff pattern:$0x73625140] }
  0x1e   : > { %557 = vmatpush.bf16.msra.mxu2 %v5838_v18  ;;  %v323_v43 = vrot.slane %v321_v38, 1  ;;  %v311_v44 = vrot.slane %v309_v40, 1  ;;  %v325_v45 = vshrl.u32 %v306_v41, 16  ;;  %v327_v46 = vshll.u32 %v306_v41, 16  ;;  %579 = vst [vmem:[#allocation1] ss:$4 sm:$0xff] %v172_v20 }
  0x1f   : > { %570 = vmatpush.bf16.msra.mxu3 %v5846_v19  ;;  %v313_v49 = vshrl.u32 %v304_v42, 16  ;;  %v315_v50 = vshll.u32 %v304_v42, 16  ;;  %v5790_v10 = vld [vmem:[%s7576_s1 + $0x18] sm:$0xff]  ;;  %v5789_v14 = vld [vmem:[%s7576_s1 + $0x10] sm:$0xff]  ;;  %v5788_v18 = vld [vmem:[%s7576_s1 + $0x8] sm:$0xff] }
  0x20   : > { %532 = vmatpush.bf16.msra.mxu0 %v5821_v21  ;;  %v324_v51 = vor.u32 %v323_v43, %v319_v37  ;;  %v312_v52 = vor.u32 %v311_v44, %v307_v39  ;;  %v329_v53 = vrot.slane %v327_v46, 1  ;;  %v5798_v11 = vld [vmem:[%s7576_s1 + $0x58] sm:$0xff]  ;;  %v5797_v15 = vld [vmem:[%s7576_s1 + $0x50] sm:$0xff]  ;;  %v5796_v19 = vld [vmem:[%s7576_s1 + $0x48] sm:$0xff] }
  0x21   : > { %545 = vmatpush.bf16.msra.mxu1 %v5829_v22  ;;  %v317_v54 = vrot.slane %v315_v50, 1  ;;  %v5806_v12 = vld [vmem:[%s7576_s1 + $0x98] sm:$0xff]  ;;  %v5805_v16 = vld [vmem:[%s7576_s1 + $0x90] sm:$0xff]  ;;  %v5804_v20 = vld [vmem:[%s7576_s1 + $0x88] sm:$0xff] }
  0x22   : > { %558 = vmatpush.bf16.msra.mxu2 %v5837_v23  ;;  %v330_v57 = vor.u32 %v329_v53, %v325_v45  ;;  %v5814_v13 = vld [vmem:[%s7576_s1 + $0xd8] sm:$0xff]  ;;  %v5813_v17 = vld [vmem:[%s7576_s1 + $0xd0] sm:$0xff]  ;;  %v5812_v21 = vld [vmem:[%s7576_s1 + $0xc8] sm:$0xff] }
  0x23   : > { %571 = vmatpush.bf16.msra.mxu3 %v5845_v24  ;;  %v318_v60 = vor.u32 %v317_v54, %v313_v49  ;;  %v5787_v22 = vld [vmem:[%s7576_s1] sm:$0xff]  ;;  %v5881_v33 = vld [vmem:[%s7576_s1 + $0x2f0] sm:$0xff]  ;;  %v5856_v38 = vld [vmem:[%s7576_s1 + $0x228] sm:$0xff] }
  0x24   : > { %533 = vmatpush.bf16.msra.mxu0 %v5820_v25  ;;  %v5795_v23 = vld [vmem:[%s7576_s1 + $0x40] sm:$0xff]  ;;  %v5864_v39 = vld [vmem:[%s7576_s1 + $0x268] sm:$0xff]  ;;  %v5854_v46 = vld [vmem:[%s7576_s1 + $0x218] sm:$0xff] }
  0x25   : > { %546 = vmatpush.bf16.msra.mxu1 %v5828_v26  ;;  %v582_v4 = vld.sshfl [vmem:[#allocation1 + $0x10] sm:$0xff pattern:$0x73625140]  ;;  %v580_v5 = vld.sshfl [vmem:[#allocation1] sm:$0xff pattern:$0x73625140] }
  0x26   : > { %559 = vmatpush.bf16.msra.mxu2 %v5836_v27  ;;  %v583_v6 = vld.sshfl [vmem:[#allocation1 + $0x18] sm:$0xff pattern:$0x73625140]  ;;  %v581_v7 = vld.sshfl [vmem:[#allocation1 + $0x8] sm:$0xff pattern:$0x73625140] }
  0x27   : > { %572 = vmatpush.bf16.msra.mxu3 %v5844_v28  ;;  %899 = vst [vmem:[#allocation1] ss:$4 sm:$0xff] %v6365_v3  ;;  %v5803_v24 = vld [vmem:[%s7576_s1 + $0x80] sm:$0xff]  ;;  %v5858_v26 = vld [vmem:[%s7576_s1 + $0x238] sm:$0xff]  ;;  %v5872_v40 = vld [vmem:[%s7576_s1 + $0x2a8] sm:$0xff] }
  0x28   : > { %534 = vmatpush.bf16.msra.mxu0 %v5819_v29  ;;  %v5811_v25 = vld [vmem:[%s7576_s1 + $0xc0] sm:$0xff]  ;;  %v5866_v27 = vld [vmem:[%s7576_s1 + $0x278] sm:$0xff]  ;;  %v5880_v41 = vld [vmem:[%s7576_s1 + $0x2e8] sm:$0xff] }
  0x29   : > { %547 = vmatpush.bf16.msra.mxu1 %v5827_v30  ;;  %v5874_v28 = vld [vmem:[%s7576_s1 + $0x2b8] sm:$0xff]  ;;  %v5857_v30 = vld [vmem:[%s7576_s1 + $0x230] sm:$0xff]  ;;  %v5855_v42 = vld [vmem:[%s7576_s1 + $0x220] sm:$0xff] }
  0x2a   : > { %560 = vmatpush.bf16.msra.mxu2 %v5835_v31  ;;  %v5882_v29 = vld [vmem:[%s7576_s1 + $0x2f8] sm:$0xff]  ;;  %v5865_v31 = vld [vmem:[%s7576_s1 + $0x270] sm:$0xff]  ;;  %v5863_v43 = vld [vmem:[%s7576_s1 + $0x260] sm:$0xff] }
  0x2b   : > { %573 = vmatpush.bf16.msra.mxu3 %v5843_v32  ;;  %535 = vmatmul.bf16.vlgmr.msra.gmra.mxu0 %v312_v52  ;;  %v5873_v32 = vld [vmem:[%s7576_s1 + $0x2b0] sm:$0xff]  ;;  %v5871_v44 = vld [vmem:[%s7576_s1 + $0x2a0] sm:$0xff]  ;;  %v5878_v49 = vld [vmem:[%s7576_s1 + $0x2d8] sm:$0xff] }
  0x2c   : > { %780 = vmatpush.bf16.msrb.mxu0 %v5794_v35  ;;  %548 = vmatmul.bf16.vlgmr.msra.gmra.mxu1 %v318_v60  ;;  %v5879_v45 = vld [vmem:[%s7576_s1 + $0x2e0] sm:$0xff]  ;;  %v5853_v50 = vld [vmem:[%s7576_s1 + $0x210] sm:$0xff]  ;;  %v5852_v54 = vld [vmem:[%s7576_s1 + $0x208] sm:$0xff] }
  0x2d   : > { %793 = vmatpush.bf16.msrb.mxu1 %v5802_v36  ;;  %561 = vmatmul.bf16.vlgmr.msra.gmra.mxu2 %v324_v51  ;;  %v5861_v51 = vld [vmem:[%s7576_s1 + $0x250] sm:$0xff]  ;;  %v5867_v60 = vld [vmem:[%s7576_s1 + $0x280] sm:$0xff] }
  0x2e   : > { %806 = vmatpush.bf16.msrb.mxu2 %v5810_v47  ;;  %574 = vmatmul.bf16.vlgmr.msra.gmra.mxu3 %v330_v57  ;;  %v6446_v34 = vld.sshfl [vmem:[#allocation1 + $0x10] sm:$0xff pattern:$0x73625140]  ;;  %v6448_v35 = vld.sshfl [vmem:[#allocation1 + $0x18] sm:$0xff pattern:$0x73625140] }
  0x2f   : > { %819 = vmatpush.bf16.msrb.mxu3 %v5818_v48  ;;  %v6450_v36 = vld.sshfl [vmem:[#allocation1] sm:$0xff pattern:$0x73625140]  ;;  %v6452_v37 = vld.sshfl [vmem:[#allocation1 + $0x8] sm:$0xff pattern:$0x73625140] }
  0x30   : > { %781 = vmatpush.bf16.msrb.mxu0 %v5793_v55  ;;  %1219 = vst [vmem:[#allocation1] ss:$4 sm:$0xff] %v6365_v3  ;;  %v5862_v47 = vld [vmem:[%s7576_s1 + $0x258] sm:$0xff]  ;;  %v5869_v52 = vld [vmem:[%s7576_s1 + $0x290] sm:$0xff]  ;;  %v5860_v55 = vld [vmem:[%s7576_s1 + $0x248] sm:$0xff] }
  0x31   : > { %794 = vmatpush.bf16.msrb.mxu1 %v5801_v56  ;;  %v5870_v48 = vld [vmem:[%s7576_s1 + $0x298] sm:$0xff]  ;;  %v5877_v53 = vld [vmem:[%s7576_s1 + $0x2d0] sm:$0xff]  ;;  %v5868_v56 = vld [vmem:[%s7576_s1 + $0x288] sm:$0xff] }
  0x32   : > { %807 = vmatpush.bf16.msrb.mxu2 %v5809_v58  ;;  %v5876_v57 = vld [vmem:[%s7576_s1 + $0x2c8] sm:$0xff]  ;;  %v5851_v58 = vld [vmem:[%s7576_s1 + $0x200] sm:$0xff] }
  0x33   : > { %820 = vmatpush.bf16.msrb.mxu3 %v5817_v59  ;;  %v5859_v59 = vld [vmem:[%s7576_s1 + $0x240] sm:$0xff] }
  0x34   : > { %782 = vmatpush.bf16.msrb.mxu0 %v5792_v61  ;;  %v5875_v61 = vld [vmem:[%s7576_s1 + $0x2c0] sm:$0xff] }
  0x35   : > { %795 = vmatpush.bf16.msrb.mxu1 %v5800_v62  ;;  %v5890_v62 = vld [vmem:[%s7576_s1 + $0x338] sm:$0xff] }
  0x36   : > { %808 = vmatpush.bf16.msrb.mxu2 %v5808_v63  ;;  %v5898_v63 = vld [vmem:[%s7576_s1 + $0x378] sm:$0xff] }
  0x37   : > { %821 = vmatpush.bf16.msrb.mxu3 %v5816_v0  ;;  %v5906_v0 = vld [vmem:[%s7576_s1 + $0x3b8] sm:$0xff] }
  0x38   : > { %783 = vmatpush.bf16.msrb.mxu0 %v5791_v1  ;;  %v5914_v1 = vld [vmem:[%s7576_s1 + $0x3f8] sm:$0xff] }
  0x39   : > { %796 = vmatpush.bf16.msrb.mxu1 %v5799_v2  ;;  %v6539_v2 = vld.sshfl [vmem:[#allocation1 + $0x10] sm:$0xff pattern:$0x73625140] }
  0x3a   : > { %809 = vmatpush.bf16.msrb.mxu2 %v5807_v8  ;;  %v5897_v8 = vld [vmem:[%s7576_s1 + $0x370] sm:$0xff] }
  0x3b   : > { %822 = vmatpush.bf16.msrb.mxu3 %v5815_v9  ;;  %v5905_v9 = vld [vmem:[%s7576_s1 + $0x3b0] sm:$0xff] }
  0x3c   : > { %784 = vmatpush.bf16.msrb.mxu0 %v5790_v10  ;;  %v5913_v10 = vld [vmem:[%s7576_s1 + $0x3f0] sm:$0xff] }
  0x3d   : > { %797 = vmatpush.bf16.msrb.mxu1 %v5798_v11  ;;  %v5888_v11 = vld [vmem:[%s7576_s1 + $0x328] sm:$0xff] }
  0x3e   : > { %810 = vmatpush.bf16.msrb.mxu2 %v5806_v12  ;;  %v5896_v12 = vld [vmem:[%s7576_s1 + $0x368] sm:$0xff] }
  0x3f   : > { %823 = vmatpush.bf16.msrb.mxu3 %v5814_v13  ;;  %v5904_v13 = vld [vmem:[%s7576_s1 + $0x3a8] sm:$0xff] }
  0x40   : > { %785 = vmatpush.bf16.msrb.mxu0 %v5789_v14  ;;  %v5912_v14 = vld [vmem:[%s7576_s1 + $0x3e8] sm:$0xff] }
  0x41   : > { %798 = vmatpush.bf16.msrb.mxu1 %v5797_v15  ;;  %v5887_v15 = vld [vmem:[%s7576_s1 + $0x320] sm:$0xff] }
  0x42   : > { %811 = vmatpush.bf16.msrb.mxu2 %v5805_v16  ;;  %v5895_v16 = vld [vmem:[%s7576_s1 + $0x360] sm:$0xff] }
  0x43   : > { %824 = vmatpush.bf16.msrb.mxu3 %v5813_v17  ;;  %v5903_v17 = vld [vmem:[%s7576_s1 + $0x3a0] sm:$0xff] }
  0x44   : > { %786 = vmatpush.bf16.msrb.mxu0 %v5788_v18  ;;  %v5911_v18 = vld [vmem:[%s7576_s1 + $0x3e0] sm:$0xff] }
  0x45   : > { %799 = vmatpush.bf16.msrb.mxu1 %v5796_v19  ;;  %v5886_v19 = vld [vmem:[%s7576_s1 + $0x318] sm:$0xff] }
  0x46   : > { %812 = vmatpush.bf16.msrb.mxu2 %v5804_v20  ;;  %v5894_v20 = vld [vmem:[%s7576_s1 + $0x358] sm:$0xff] }
  0x47   : > { %825 = vmatpush.bf16.msrb.mxu3 %v5812_v21  ;;  %v5902_v21 = vld [vmem:[%s7576_s1 + $0x398] sm:$0xff] }
  0x48   : > { %787 = vmatpush.bf16.msrb.mxu0 %v5787_v22  ;;  %v5910_v22 = vld [vmem:[%s7576_s1 + $0x3d8] sm:$0xff] }
  0x49   : > { %800 = vmatpush.bf16.msrb.mxu1 %v5795_v23  ;;  %v5885_v23 = vld [vmem:[%s7576_s1 + $0x310] sm:$0xff] }
  0x4a   : > { %813 = vmatpush.bf16.msrb.mxu2 %v5803_v24  ;;  %v5893_v24 = vld [vmem:[%s7576_s1 + $0x350] sm:$0xff] }
  0x4b   : > { %826 = vmatpush.bf16.msrb.mxu3 %v5811_v25  ;;  %788 = vmatmul.bf16.vlgmr.msrb.gmra.mxu0 %v580_v5  ;;  %v6543_v5 = vld.sshfl [vmem:[#allocation1] sm:$0xff pattern:$0x73625140]  ;;  %v5901_v25 = vld [vmem:[%s7576_s1 + $0x390] sm:$0xff] }
  0x4c   : > { %1100 = vmatpush.bf16.msra.mxu0 %v5858_v26  ;;  %801 = vmatmul.bf16.vlgmr.msrb.gmra.mxu1 %v581_v7  ;;  %v5889_v7 = vld [vmem:[%s7576_s1 + $0x330] sm:$0xff] }
  0x4d   : > { %1113 = vmatpush.bf16.msra.mxu1 %v5866_v27  ;;  %814 = vmatmul.bf16.vlgmr.msrb.gmra.mxu2 %v582_v4  ;;  %v6541_v4 = vld.sshfl [vmem:[#allocation1 + $0x18] sm:$0xff pattern:$0x73625140]  ;;  %v5909_v26 = vld [vmem:[%s7576_s1 + $0x3d0] sm:$0xff]  ;;  %v5884_v27 = vld [vmem:[%s7576_s1 + $0x308] sm:$0xff] }
  0x4e   : > { %1126 = vmatpush.bf16.msra.mxu2 %v5874_v28  ;;  %827 = vmatmul.bf16.vlgmr.msrb.gmra.mxu3 %v583_v6  ;;  %v6545_v6 = vld.sshfl [vmem:[#allocation1 + $0x8] sm:$0xff pattern:$0x73625140] }
  0x4f   : > { %1139 = vmatpush.bf16.msra.mxu3 %v5882_v29  ;;  %1639 = vst [vmem:[#allocation1] ss:$4 sm:$0xff] %v6365_v3  ;;  %v5892_v28 = vld [vmem:[%s7576_s1 + $0x348] sm:$0xff]  ;;  %v1238_v29 = vshll.u32 %v6539_v2, 16 }
  0x50   : > { %1101 = vmatpush.bf16.msra.mxu0 %v5857_v30  ;;  %v1244_v30 = vshll.u32 %v6541_v4, 16 }
  0x51   : > { %1114 = vmatpush.bf16.msra.mxu1 %v5865_v31  ;;  %v5900_v31 = vld [vmem:[%s7576_s1 + $0x388] sm:$0xff] }
  0x52   : > { %1127 = vmatpush.bf16.msra.mxu2 %v5873_v32  ;;  %v5908_v32 = vld [vmem:[%s7576_s1 + $0x3c8] sm:$0xff] }
  0x53   : > { %1140 = vmatpush.bf16.msra.mxu3 %v5881_v33  ;;  %v1226_v33 = vshll.u32 %v6543_v5, 16 }
  0x54   : > { %1102 = vmatpush.bf16.msra.mxu0 %v5856_v38  ;;  %v1240_v38 = vrot.slane %v1238_v29, 1  ;;  %v5963_v29 = vld [vmem:[%s7576_s1 + $0x180] sm:$0xff] }
  0x55   : > { %1115 = vmatpush.bf16.msra.mxu1 %v5864_v39  ;;  %v1242_v39 = vshrl.u32 %v6541_v4, 16  ;;  %v5950_v4 = vld [vmem:[%s7576_s1 + $0x118] sm:$0xff] }
  0x56   : > { %1128 = vmatpush.bf16.msra.mxu2 %v5872_v40  ;;  %v1246_v40 = vrot.slane %v1244_v30, 1  ;;  %v5971_v30 = vld [vmem:[%s7576_s1 + $0x1c0] sm:$0xff] }
  0x57   : > { %1141 = vmatpush.bf16.msra.mxu3 %v5880_v41  ;;  %v5899_v41 = vld [vmem:[%s7576_s1 + $0x380] sm:$0xff] }
  0x58   : > { %1103 = vmatpush.bf16.msra.mxu0 %v5855_v42  ;;  %v5907_v42 = vld [vmem:[%s7576_s1 + $0x3c0] sm:$0xff] }
  0x59   : > { %1116 = vmatpush.bf16.msra.mxu1 %v5863_v43  ;;  %v1224_v43 = vshrl.u32 %v6543_v5, 16  ;;  %v5958_v5 = vld [vmem:[%s7576_s1 + $0x158] sm:$0xff] }
  0x5a   : > { %1129 = vmatpush.bf16.msra.mxu2 %v5871_v44  ;;  %v1228_v44 = vrot.slane %v1226_v33, 1 }
  0x5b   : > { %1142 = vmatpush.bf16.msra.mxu3 %v5879_v45  ;;  %v1230_v45 = vshrl.u32 %v6545_v6, 16 }
  0x5c   : > { %1104 = vmatpush.bf16.msra.mxu0 %v5854_v46 }
  0x5d   : > { %1117 = vmatpush.bf16.msra.mxu1 %v5862_v47  ;;  %v5954_v47 = vld [vmem:[%s7576_s1 + $0x138] sm:$0xff] }
  0x5e   : > { %1130 = vmatpush.bf16.msra.mxu2 %v5870_v48  ;;  %v5962_v48 = vld [vmem:[%s7576_s1 + $0x178] sm:$0xff] }
  0x5f   : > { %1143 = vmatpush.bf16.msra.mxu3 %v5878_v49  ;;  %v5970_v49 = vld [vmem:[%s7576_s1 + $0x1b8] sm:$0xff] }
  0x60   : > { %1105 = vmatpush.bf16.msra.mxu0 %v5853_v50  ;;  %v5978_v50 = vld [vmem:[%s7576_s1 + $0x1f8] sm:$0xff] }
  0x61   : > { %1118 = vmatpush.bf16.msra.mxu1 %v5861_v51 }
  0x62   : > { %1131 = vmatpush.bf16.msra.mxu2 %v5869_v52  ;;  %v1247_v52 = vor.u32 %v1246_v40, %v1242_v39 }
  0x63   : > { %1144 = vmatpush.bf16.msra.mxu3 %v5877_v53  ;;  %v1229_v53 = vor.u32 %v1228_v44, %v1224_v43  ;;  %v5921_v43 = vld [vmem:[%s7576_s1 + $0x30] sm:$0xff] }
  0x64   : > { %1106 = vmatpush.bf16.msra.mxu0 %v5852_v54  ;;  %v5929_v44 = vld [vmem:[%s7576_s1 + $0x70] sm:$0xff] }
  0x65   : > { %1119 = vmatpush.bf16.msra.mxu1 %v5860_v55  ;;  %v5953_v55 = vld [vmem:[%s7576_s1 + $0x130] sm:$0xff] }
  0x66   : > { %1132 = vmatpush.bf16.msra.mxu2 %v5868_v56  ;;  %v5961_v56 = vld [vmem:[%s7576_s1 + $0x170] sm:$0xff] }
  0x67   : > { %1145 = vmatpush.bf16.msra.mxu3 %v5876_v57  ;;  %v5969_v57 = vld [vmem:[%s7576_s1 + $0x1b0] sm:$0xff] }
  0x68   : > { %1107 = vmatpush.bf16.msra.mxu0 %v5851_v58  ;;  %v5977_v58 = vld [vmem:[%s7576_s1 + $0x1f0] sm:$0xff] }
  0x69   : > { %1120 = vmatpush.bf16.msra.mxu1 %v5859_v59  ;;  %v5952_v59 = vld [vmem:[%s7576_s1 + $0x128] sm:$0xff] }
  0x6a   : > { %1133 = vmatpush.bf16.msra.mxu2 %v5867_v60  ;;  %v5960_v60 = vld [vmem:[%s7576_s1 + $0x168] sm:$0xff] }
  0x6b   : > { %1146 = vmatpush.bf16.msra.mxu3 %v5875_v61  ;;  %1108 = vmatmul.bf16.vlgmr.msra.gmra.mxu0 %v6450_v36  ;;  %v5891_v36 = vld [vmem:[%s7576_s1 + $0x340] sm:$0xff]  ;;  %v5968_v61 = vld [vmem:[%s7576_s1 + $0x1a8] sm:$0xff] }
  0x6c   : > { %1444 = vmatpush.bf16.msrb.mxu0 %v5890_v62  ;;  %1121 = vmatmul.bf16.vlgmr.msra.gmra.mxu1 %v6452_v37  ;;  %v1236_v37 = vshrl.u32 %v6539_v2, 16  ;;  %v5976_v62 = vld [vmem:[%s7576_s1 + $0x1e8] sm:$0xff]  ;;  %v5975_v2 = vld [vmem:[%s7576_s1 + $0x1e0] sm:$0xff] }
  0x6d   : > { %1457 = vmatpush.bf16.msrb.mxu1 %v5898_v63  ;;  %1134 = vmatmul.bf16.vlgmr.msra.gmra.mxu2 %v6446_v34  ;;  %v1232_v34 = vshll.u32 %v6545_v6, 16  ;;  %v5951_v63 = vld [vmem:[%s7576_s1 + $0x120] sm:$0xff]  ;;  %v5966_v6 = vld [vmem:[%s7576_s1 + $0x198] sm:$0xff] }
  0x6e   : > { %1470 = vmatpush.bf16.msrb.mxu2 %v5906_v0  ;;  %1147 = vmatmul.bf16.vlgmr.msra.gmra.mxu3 %v6448_v35  ;;  %v5883_v35 = vld [vmem:[%s7576_s1 + $0x300] sm:$0xff]  ;;  %v1241_v51 = vor.u32 %v1240_v38, %v1236_v37  ;;  %v5938_v37 = vld [vmem:[%s7576_s1 + $0xb8] sm:$0xff] }
  0x6f   : > { %1483 = vmatpush.bf16.msrb.mxu3 %v5914_v1  ;;  %v1234_v46 = vrot.slane %v1232_v34, 1  ;;  %v5959_v0 = vld [vmem:[%s7576_s1 + $0x160] sm:$0xff]  ;;  %v5946_v38 = vld [vmem:[%s7576_s1 + $0xf8] sm:$0xff] }
  0x70   : > { %1445 = vmatpush.bf16.msrb.mxu0 %v5889_v7  ;;  %v5967_v1 = vld [vmem:[%s7576_s1 + $0x1a0] sm:$0xff]  ;;  %v5974_v7 = vld [vmem:[%s7576_s1 + $0x1d8] sm:$0xff] }
  0x71   : > { %1458 = vmatpush.bf16.msrb.mxu1 %v5897_v8  ;;  %v1235_v54 = vor.u32 %v1234_v46, %v1230_v45  ;;  %v5949_v8 = vld [vmem:[%s7576_s1 + $0x110] sm:$0xff] }
  0x72   : > { %1471 = vmatpush.bf16.msrb.mxu2 %v5905_v9  ;;  %v5957_v9 = vld [vmem:[%s7576_s1 + $0x150] sm:$0xff] }
  0x73   : > { %1484 = vmatpush.bf16.msrb.mxu3 %v5913_v10  ;;  %v5965_v10 = vld [vmem:[%s7576_s1 + $0x190] sm:$0xff] }
  0x74   : > { %1446 = vmatpush.bf16.msrb.mxu0 %v5888_v11  ;;  %v5973_v11 = vld [vmem:[%s7576_s1 + $0x1d0] sm:$0xff] }
  0x75   : > { %1459 = vmatpush.bf16.msrb.mxu1 %v5896_v12  ;;  %v1642_v12 = vld.sshfl [vmem:[#allocation1 + $0x10] sm:$0xff pattern:$0x73625140] }
  0x76   : > { %1472 = vmatpush.bf16.msrb.mxu2 %v5904_v13  ;;  %v1640_v13 = vld.sshfl [vmem:[#allocation1] sm:$0xff pattern:$0x73625140]  ;;  %v5937_v45 = vld [vmem:[%s7576_s1 + $0xb0] sm:$0xff] }
  0x77   : > { %1485 = vmatpush.bf16.msrb.mxu3 %v5912_v14  ;;  %v1643_v14 = vld.sshfl [vmem:[#allocation1 + $0x18] sm:$0xff pattern:$0x73625140]  ;;  %v5945_v46 = vld [vmem:[%s7576_s1 + $0xf0] sm:$0xff] }
  0x78   : > { %1447 = vmatpush.bf16.msrb.mxu0 %v5887_v15  ;;  %v1641_v15 = vld.sshfl [vmem:[#allocation1 + $0x8] sm:$0xff pattern:$0x73625140] }
  0x79   : > { %1460 = vmatpush.bf16.msrb.mxu1 %v5895_v16  ;;  %1916 = vst [vmem:[#allocation1] ss:$4 sm:$0xff] %v6365_v3  ;;  %v5948_v16 = vld [vmem:[%s7576_s1 + $0x108] sm:$0xff]  ;;  %v1650_v33 = vshrl.u32 %v1641_v15, 16 }
  0x7a   : > { %1473 = vmatpush.bf16.msrb.mxu2 %v5903_v17  ;;  %v5956_v17 = vld [vmem:[%s7576_s1 + $0x148] sm:$0xff] }
  0x7b   : > { %1486 = vmatpush.bf16.msrb.mxu3 %v5911_v18  ;;  %v1658_v18 = vshll.u32 %v1642_v12, 16  ;;  %v5972_v3 = vld [vmem:[%s7576_s1 + $0x1c8] sm:$0xff] }
  0x7c   : > { %1448 = vmatpush.bf16.msrb.mxu0 %v5886_v19  ;;  %v1646_v19 = vshll.u32 %v1640_v13, 16 }
  0x7d   : > { %1461 = vmatpush.bf16.msrb.mxu1 %v5894_v20  ;;  %v5964_v20 = vld [vmem:[%s7576_s1 + $0x188] sm:$0xff] }
  0x7e   : > { %1474 = vmatpush.bf16.msrb.mxu2 %v5902_v21  ;;  %v1664_v21 = vshll.u32 %v1643_v14, 16 }
  0x7f   : > { %1487 = vmatpush.bf16.msrb.mxu3 %v5910_v22  ;;  %v1652_v22 = vshll.u32 %v1641_v15, 16  ;;  %v5924_v15 = vld [vmem:[%s7576_s1 + $0x48] sm:$0xff] }
  0x80   : > { %1449 = vmatpush.bf16.msrb.mxu0 %v5885_v23  ;;  %v5947_v23 = vld [vmem:[%s7576_s1 + $0x100] sm:$0xff] }
  0x81   : > { %1462 = vmatpush.bf16.msrb.mxu1 %v5893_v24  ;;  %v5955_v24 = vld [vmem:[%s7576_s1 + $0x140] sm:$0xff]  ;;  %v1654_v34 = vrot.slane %v1652_v22, 1 }
  0x82   : > { %1475 = vmatpush.bf16.msrb.mxu2 %v5901_v25  ;;  %v1656_v25 = vshrl.u32 %v1642_v12, 16  ;;  %v5933_v12 = vld [vmem:[%s7576_s1 + $0x90] sm:$0xff]  ;;  %v5939_v22 = vld [vmem:[%s7576_s1 + $0xc0] sm:$0xff] }
  0x83   : > { %1488 = vmatpush.bf16.msrb.mxu3 %v5909_v26  ;;  %v1660_v26 = vrot.slane %v1658_v18, 1 }
  0x84   : > { %1450 = vmatpush.bf16.msrb.mxu0 %v5884_v27  ;;  %v1644_v27 = vshrl.u32 %v1640_v13, 16  ;;  %v5941_v13 = vld [vmem:[%s7576_s1 + $0xd0] sm:$0xff] }
  0x85   : > { %1463 = vmatpush.bf16.msrb.mxu1 %v5892_v28  ;;  %v1648_v28 = vrot.slane %v1646_v19, 1  ;;  %v1661_v39 = vor.u32 %v1660_v26, %v1656_v25  ;;  %v6002_v25 = vld [vmem:[%s7576_s1 + $0x2b8] sm:$0xff] }
  0x86   : > { %1476 = vmatpush.bf16.msrb.mxu2 %v5900_v31  ;;  %v1662_v31 = vshrl.u32 %v1643_v14, 16  ;;  %v5916_v14 = vld [vmem:[%s7576_s1 + $0x8] sm:$0xff]  ;;  %v6010_v26 = vld [vmem:[%s7576_s1 + $0x2f8] sm:$0xff] }
  0x87   : > { %1489 = vmatpush.bf16.msrb.mxu3 %v5908_v32  ;;  %v1666_v32 = vrot.slane %v1664_v21, 1  ;;  %v1649_v40 = vor.u32 %v1648_v28, %v1644_v27  ;;  %v5931_v21 = vld [vmem:[%s7576_s1 + $0x80] sm:$0xff]  ;;  %v5985_v27 = vld [vmem:[%s7576_s1 + $0x230] sm:$0xff] }
  0x88   : > { %1451 = vmatpush.bf16.msrb.mxu0 %v5883_v35  ;;  %v5922_v35 = vld [vmem:[%s7576_s1 + $0x38] sm:$0xff]  ;;  %v5993_v28 = vld [vmem:[%s7576_s1 + $0x270] sm:$0xff] }
  0x89   : > { %1464 = vmatpush.bf16.msrb.mxu1 %v5891_v36  ;;  %v5930_v36 = vld [vmem:[%s7576_s1 + $0x78] sm:$0xff] }
  0x8a   : > { %1477 = vmatpush.bf16.msrb.mxu2 %v5899_v41  ;;  %v1667_v41 = vor.u32 %v1666_v32, %v1662_v31 }
  0x8b   : > { %1490 = vmatpush.bf16.msrb.mxu3 %v5907_v42  ;;  %1452 = vmatmul.bf16.vlgmr.msrb.gmra.mxu0 %v1229_v53  ;;  %v1655_v42 = vor.u32 %v1654_v34, %v1650_v33  ;;  %v5927_v53 = vld [vmem:[%s7576_s1 + $0x60] sm:$0xff] }
  0x8c   : > { %1864 = vmatpush.bf16.msra.mxu0 %v5954_v47  ;;  %1465 = vmatmul.bf16.vlgmr.msrb.gmra.mxu1 %v1235_v54  ;;  %v5920_v47 = vld [vmem:[%s7576_s1 + $0x28] sm:$0xff] }
  0x8d   : > { %1877 = vmatpush.bf16.msra.mxu1 %v5962_v48  ;;  %1478 = vmatmul.bf16.vlgmr.msrb.gmra.mxu2 %v1241_v51  ;;  %v5928_v48 = vld [vmem:[%s7576_s1 + $0x68] sm:$0xff]  ;;  %v6778_v51 = vld [vmem:[%s6277_s28 + $0x10] sm:$0xff] }
  0x8e   : > { %1890 = vmatpush.bf16.msra.mxu2 %v5970_v49  ;;  %1491 = vmatmul.bf16.vlgmr.msrb.gmra.mxu3 %v1247_v52  ;;  %v5936_v49 = vld [vmem:[%s7576_s1 + $0xa8] sm:$0xff]  ;;  %v5919_v52 = vld [vmem:[%s7576_s1 + $0x20] sm:$0xff] }
  0x8f   : > { %1903 = vmatpush.bf16.msra.mxu3 %v5978_v50  ;;  %v5944_v50 = vld [vmem:[%s7576_s1 + $0xe8] sm:$0xff] }
  0x90   : > { %1865 = vmatpush.bf16.msra.mxu0 %v5953_v55  ;;  %v6786_v55 = vld.sshfl [vmem:[#allocation1 + $0x10] sm:$0xff pattern:$0x73625140] }
  0x91   : > { %1878 = vmatpush.bf16.msra.mxu1 %v5961_v56  ;;  %v6788_v56 = vld.sshfl [vmem:[#allocation1] sm:$0xff pattern:$0x73625140] }
  0x92   : > { %1891 = vmatpush.bf16.msra.mxu2 %v5969_v57 }
  0x93   : > { %1904 = vmatpush.bf16.msra.mxu3 %v5977_v58  ;;  %v6790_v58 = vld.sshfl [vmem:[#allocation1 + $0x18] sm:$0xff pattern:$0x73625140] }
  0x94   : > { %1866 = vmatpush.bf16.msra.mxu0 %v5952_v59  ;;  %v6792_v59 = vld.sshfl [vmem:[#allocation1 + $0x8] sm:$0xff pattern:$0x73625140] }
  0x95   : > { %1879 = vmatpush.bf16.msra.mxu1 %v5960_v60  ;;  %v5935_v60 = vld [vmem:[%s7576_s1 + $0xa0] sm:$0xff]  ;;  %2236 = vst [vmem:[#allocation1] ss:$4 sm:$0xff] %v6778_v51 }
  0x96   : > { %1892 = vmatpush.bf16.msra.mxu2 %v5968_v61  ;;  %v5943_v61 = vld [vmem:[%s7576_s1 + $0xe0] sm:$0xff] }
  0x97   : > { %1905 = vmatpush.bf16.msra.mxu3 %v5976_v62 }
  0x98   : > { %1867 = vmatpush.bf16.msra.mxu0 %v5951_v63  ;;  %v5918_v63 = vld [vmem:[%s7576_s1 + $0x18] sm:$0xff] }
  0x99   : > { %1880 = vmatpush.bf16.msra.mxu1 %v5959_v0  ;;  %v5926_v0 = vld [vmem:[%s7576_s1 + $0x58] sm:$0xff] }
  0x9a   : > { %1893 = vmatpush.bf16.msra.mxu2 %v5967_v1  ;;  %v5934_v1 = vld [vmem:[%s7576_s1 + $0x98] sm:$0xff] }
  0x9b   : > { %1906 = vmatpush.bf16.msra.mxu3 %v5975_v2  ;;  %v5942_v2 = vld [vmem:[%s7576_s1 + $0xd8] sm:$0xff] }
  0x9c   : > { %1868 = vmatpush.bf16.msra.mxu0 %v5950_v4  ;;  %v6877_v31 = vld.sshfl [vmem:[#allocation1 + $0x10] sm:$0xff pattern:$0x73625140]  ;;  %v6879_v32 = vld.sshfl [vmem:[#allocation1 + $0x18] sm:$0xff pattern:$0x73625140] }
  0x9d   : > { %1881 = vmatpush.bf16.msra.mxu1 %v5958_v5  ;;  %v6883_v33 = vld.sshfl [vmem:[#allocation1] sm:$0xff pattern:$0x73625140]  ;;  %v6885_v34 = vld.sshfl [vmem:[#allocation1 + $0x8] sm:$0xff pattern:$0x73625140] }
  0x9e   : > { %1894 = vmatpush.bf16.msra.mxu2 %v5966_v6  ;;  %2556 = vst [vmem:[#allocation1] ss:$4 sm:$0xff] %v6778_v51 }
  0x9f   : > { %1907 = vmatpush.bf16.msra.mxu3 %v5974_v7 }
  0xa0   : > { %1869 = vmatpush.bf16.msra.mxu0 %v5949_v8  ;;  %v5917_v8 = vld [vmem:[%s7576_s1 + $0x10] sm:$0xff] }
  0xa1   : > { %1882 = vmatpush.bf16.msra.mxu1 %v5957_v9  ;;  %v5925_v9 = vld [vmem:[%s7576_s1 + $0x50] sm:$0xff] }
  0xa2   : > { %1895 = vmatpush.bf16.msra.mxu2 %v5965_v10 }
  0xa3   : > { %1908 = vmatpush.bf16.msra.mxu3 %v5973_v11 }
  0xa4   : > { %1870 = vmatpush.bf16.msra.mxu0 %v5948_v16  ;;  %v5932_v16 = vld [vmem:[%s7576_s1 + $0x88] sm:$0xff] }
  0xa5   : > { %1883 = vmatpush.bf16.msra.mxu1 %v5956_v17  ;;  %v5940_v17 = vld [vmem:[%s7576_s1 + $0xc8] sm:$0xff] }
  0xa6   : > { %1896 = vmatpush.bf16.msra.mxu2 %v5964_v20  ;;  %v5915_v20 = vld [vmem:[%s7576_s1] sm:$0xff] }
  0xa7   : > { %1909 = vmatpush.bf16.msra.mxu3 %v5972_v3  ;;  %v5923_v3 = vld [vmem:[%s7576_s1 + $0x40] sm:$0xff] }
  0xa8   : > { %1871 = vmatpush.bf16.msra.mxu0 %v5947_v23  ;;  %v536_v54 = vpop.f32.mrf.mxu0  ;;  %v5986_v23 = vld [vmem:[%s7576_s1 + $0x238] sm:$0xff] }
  0xa9   : > { %1884 = vmatpush.bf16.msra.mxu1 %v5955_v24  ;;  %v549_v57 = vpop.f32.mrf.mxu1  ;;  %v5994_v24 = vld [vmem:[%s7576_s1 + $0x278] sm:$0xff] }
  0xaa   : > { %1897 = vmatpush.bf16.msra.mxu2 %v5963_v29  ;;  %v550_v62 = vadd.f32 %v549_v57, %v536_v54  ;;  %v6001_v29 = vld [vmem:[%s7576_s1 + $0x2b0] sm:$0xff] }
  0xab   : > { %1910 = vmatpush.bf16.msra.mxu3 %v5971_v30  ;;  %1872 = vmatmul.bf16.vlgmr.msra.gmra.mxu0 %v1649_v40  ;;  %v6009_v30 = vld [vmem:[%s7576_s1 + $0x2f0] sm:$0xff]  ;;  %v5983_v40 = vld [vmem:[%s7576_s1 + $0x220] sm:$0xff] }
  0xac   : > { %2117 = vmatpush.bf16.msrb.mxu0 %v5922_v35  ;;  %1885 = vmatmul.bf16.vlgmr.msra.gmra.mxu1 %v1655_v42  ;;  %v5984_v35 = vld [vmem:[%s7576_s1 + $0x228] sm:$0xff]  ;;  %v5989_v54 = vld [vmem:[%s7576_s1 + $0x250] sm:$0xff] }
  0xad   : > { %2130 = vmatpush.bf16.msrb.mxu1 %v5930_v36  ;;  %1898 = vmatmul.bf16.vlgmr.msra.gmra.mxu2 %v1661_v39  ;;  %v5992_v36 = vld [vmem:[%s7576_s1 + $0x268] sm:$0xff]  ;;  %v6005_v57 = vld [vmem:[%s7576_s1 + $0x2d0] sm:$0xff] }
  0xae   : > { %2143 = vmatpush.bf16.msrb.mxu2 %v5938_v37  ;;  %1911 = vmatmul.bf16.vlgmr.msra.gmra.mxu3 %v1667_v41  ;;  %v6000_v37 = vld [vmem:[%s7576_s1 + $0x2a8] sm:$0xff]  ;;  %v5991_v41 = vld [vmem:[%s7576_s1 + $0x260] sm:$0xff] }
  0xaf   : > { %2156 = vmatpush.bf16.msrb.mxu3 %v5946_v38  ;;  %v6008_v38 = vld [vmem:[%s7576_s1 + $0x2e8] sm:$0xff] }
  0xb0   : > { %2118 = vmatpush.bf16.msrb.mxu0 %v5921_v43  ;;  %v562_v4 = vpop.f32.mrf.mxu2  ;;  %v538_v7 = vpop.f32.mrf.mxu0  ;;  %v5999_v43 = vld [vmem:[%s7576_s1 + $0x2a0] sm:$0xff] }
  0xb1   : > { %2131 = vmatpush.bf16.msrb.mxu1 %v5929_v44  ;;  %v563_v5 = vadd.f32 %v562_v4, %v550_v62  ;;  %v575_v6 = vpop.f32.mrf.mxu3  ;;  %v551_v11 = vpop.f32.mrf.mxu1  ;;  %v6007_v44 = vld [vmem:[%s7576_s1 + $0x2e0] sm:$0xff]  ;;  %v6034_v7 = vld [vmem:[%s7576_s1 + $0x3b8] sm:$0xff] }
  0xb2   : > { %2144 = vmatpush.bf16.msrb.mxu2 %v5937_v45  ;;  %v5982_v45 = vld [vmem:[%s7576_s1 + $0x218] sm:$0xff]  ;;  %v6003_v4 = vld [vmem:[%s7576_s1 + $0x2c0] sm:$0xff] }
  0xb3   : > { %2157 = vmatpush.bf16.msrb.mxu3 %v5945_v46  ;;  %v6819_v10 = vadd.f32 %v575_v6, %v563_v5  ;;  %v5990_v46 = vld [vmem:[%s7576_s1 + $0x258] sm:$0xff] }
  0xb4   : > { %2119 = vmatpush.bf16.msrb.mxu0 %v5920_v47  ;;  %v5998_v47 = vld [vmem:[%s7576_s1 + $0x298] sm:$0xff] }
  0xb5   : > { %2132 = vmatpush.bf16.msrb.mxu1 %v5928_v48  ;;  %v6006_v48 = vld [vmem:[%s7576_s1 + $0x2d8] sm:$0xff] }
  0xb6   : > { %2145 = vmatpush.bf16.msrb.mxu2 %v5936_v49  ;;  %v6018_v5 = vld [vmem:[%s7576_s1 + $0x338] sm:$0xff] }
  0xb7   : > { %2158 = vmatpush.bf16.msrb.mxu3 %v5944_v50  ;;  %v6026_v6 = vld [vmem:[%s7576_s1 + $0x378] sm:$0xff] }
  0xb8   : > { %2120 = vmatpush.bf16.msrb.mxu0 %v5919_v52  ;;  %v564_v18 = vpop.f32.mrf.mxu2  ;;  %v6982_v11 = vld.sshfl [vmem:[#allocation1 + $0x18] sm:$0xff pattern:$0x73625140] }
  0xb9   : > { %2133 = vmatpush.bf16.msrb.mxu1 %v5927_v53  ;;  %v577_v19 = vpop.f32.mrf.mxu3  ;;  %v5981_v53 = vld [vmem:[%s7576_s1 + $0x210] sm:$0xff]  ;;  %v6016_v18 = vld [vmem:[%s7576_s1 + $0x328] sm:$0xff] }
  0xba   : > { %2146 = vmatpush.bf16.msrb.mxu2 %v5935_v60  ;;  %v5996_v60 = vld [vmem:[%s7576_s1 + $0x288] sm:$0xff] }
  0xbb   : > { %2159 = vmatpush.bf16.msrb.mxu3 %v5943_v61  ;;  %v6004_v61 = vld [vmem:[%s7576_s1 + $0x2c8] sm:$0xff] }
  0xbc   : > { %2121 = vmatpush.bf16.msrb.mxu0 %v5918_v63  ;;  %v6024_v19 = vld [vmem:[%s7576_s1 + $0x368] sm:$0xff] }
  0xbd   : > { %2134 = vmatpush.bf16.msrb.mxu1 %v5926_v0  ;;  %v5979_v0 = vld [vmem:[%s7576_s1 + $0x200] sm:$0xff] }
  0xbe   : > { %2147 = vmatpush.bf16.msrb.mxu2 %v5934_v1  ;;  %v5987_v1 = vld [vmem:[%s7576_s1 + $0x240] sm:$0xff] }
  0xbf   : > { %2160 = vmatpush.bf16.msrb.mxu3 %v5942_v2  ;;  %v5995_v2 = vld [vmem:[%s7576_s1 + $0x280] sm:$0xff] }
  0xc0   : > { %2122 = vmatpush.bf16.msrb.mxu0 %v5917_v8  ;;  %v6042_v8 = vld [vmem:[%s7576_s1 + $0x3f8] sm:$0xff] }
  0xc1   : > { %2135 = vmatpush.bf16.msrb.mxu1 %v5925_v9  ;;  %v6980_v9 = vld.sshfl [vmem:[#allocation1 + $0x10] sm:$0xff pattern:$0x73625140] }
  0xc2   : > { %2148 = vmatpush.bf16.msrb.mxu2 %v5933_v12  ;;  %v6984_v12 = vld.sshfl [vmem:[#allocation1] sm:$0xff pattern:$0x73625140] }
  0xc3   : > { %2161 = vmatpush.bf16.msrb.mxu3 %v5941_v13  ;;  %v6986_v13 = vld.sshfl [vmem:[#allocation1 + $0x8] sm:$0xff pattern:$0x73625140] }
  0xc4   : > { %2123 = vmatpush.bf16.msrb.mxu0 %v5916_v14  ;;  %v6017_v14 = vld [vmem:[%s7576_s1 + $0x330] sm:$0xff]  ;;  %2971 = vst [vmem:[#allocation1] ss:$4 sm:$0xff] %v6778_v51 }
  0xc5   : > { %2136 = vmatpush.bf16.msrb.mxu1 %v5924_v15  ;;  %v6025_v15 = vld [vmem:[%s7576_s1 + $0x370] sm:$0xff] }
  0xc6   : > { %2149 = vmatpush.bf16.msrb.mxu2 %v5932_v16  ;;  %v6033_v16 = vld [vmem:[%s7576_s1 + $0x3b0] sm:$0xff] }
  0xc7   : > { %2162 = vmatpush.bf16.msrb.mxu3 %v5940_v17  ;;  %v6041_v17 = vld [vmem:[%s7576_s1 + $0x3f0] sm:$0xff] }
  0xc8   : > { %2124 = vmatpush.bf16.msrb.mxu0 %v5915_v20  ;;  %v6900_v39 = vpop.f32.mrf.mxu0  ;;  %v6032_v20 = vld [vmem:[%s7576_s1 + $0x3a8] sm:$0xff] }
  0xc9   : > { %2137 = vmatpush.bf16.msrb.mxu1 %v5923_v3  ;;  %v6908_v42 = vpop.f32.mrf.mxu1  ;;  %v6040_v3 = vld [vmem:[%s7576_s1 + $0x3e8] sm:$0xff] }
  0xca   : > { %2150 = vmatpush.bf16.msrb.mxu2 %v5931_v21  ;;  %v6015_v21 = vld [vmem:[%s7576_s1 + $0x320] sm:$0xff] }
  0xcb   : > { %2163 = vmatpush.bf16.msrb.mxu3 %v5939_v22  ;;  %2125 = vmatmul.bf16.vlgmr.msrb.gmra.mxu0 %v6788_v56  ;;  %v5997_v56 = vld [vmem:[%s7576_s1 + $0x290] sm:$0xff]  ;;  %v6023_v22 = vld [vmem:[%s7576_s1 + $0x360] sm:$0xff] }
  0xcc   : > { %2437 = vmatpush.bf16.msra.mxu0 %v5986_v23  ;;  %2138 = vmatmul.bf16.vlgmr.msrb.gmra.mxu1 %v6792_v59  ;;  %v5988_v59 = vld [vmem:[%s7576_s1 + $0x248] sm:$0xff] }
  0xcd   : > { %2450 = vmatpush.bf16.msra.mxu1 %v5994_v24  ;;  %2151 = vmatmul.bf16.vlgmr.msrb.gmra.mxu2 %v6786_v55 }
  0xce   : > { %2463 = vmatpush.bf16.msra.mxu2 %v6002_v25  ;;  %2164 = vmatmul.bf16.vlgmr.msrb.gmra.mxu3 %v6790_v58  ;;  %v5980_v58 = vld [vmem:[%s7576_s1 + $0x208] sm:$0xff]  ;;  %v6031_v25 = vld [vmem:[%s7576_s1 + $0x3a0] sm:$0xff] }
  0xcf   : > { %2476 = vmatpush.bf16.msra.mxu3 %v6010_v26  ;;  %v6039_v26 = vld [vmem:[%s7576_s1 + $0x3e0] sm:$0xff] }
  0xd0   : > { %2438 = vmatpush.bf16.msra.mxu0 %v5985_v27  ;;  %v6928_v49 = vpop.f32.mrf.mxu2  ;;  %v791_v52 = vpop.f32.mrf.mxu0  ;;  %v6014_v27 = vld [vmem:[%s7576_s1 + $0x318] sm:$0xff] }
  0xd1   : > { %2451 = vmatpush.bf16.msra.mxu1 %v5993_v28  ;;  %v6930_v50 = vpop.f32.mrf.mxu3  ;;  %v804_v55 = vpop.f32.mrf.mxu1  ;;  %v6022_v28 = vld [vmem:[%s7576_s1 + $0x358] sm:$0xff] }
  0xd2   : > { %2464 = vmatpush.bf16.msra.mxu2 %v6001_v29  ;;  %v6030_v29 = vld [vmem:[%s7576_s1 + $0x398] sm:$0xff]  ;;  %v6019_v55 = vld [vmem:[%s7576_s1 + $0x340] sm:$0xff] }
  0xd3   : > { %2477 = vmatpush.bf16.msra.mxu3 %v6009_v30  ;;  %v6038_v30 = vld [vmem:[%s7576_s1 + $0x3d8] sm:$0xff] }
  0xd4   : > { %2439 = vmatpush.bf16.msra.mxu0 %v5984_v35 }
  0xd5   : > { %2452 = vmatpush.bf16.msra.mxu1 %v5992_v36 }
  0xd6   : > { %2465 = vmatpush.bf16.msra.mxu2 %v6000_v37  ;;  %v6029_v37 = vld [vmem:[%s7576_s1 + $0x390] sm:$0xff] }
  0xd7   : > { %2478 = vmatpush.bf16.msra.mxu3 %v6008_v38  ;;  %v6037_v38 = vld [vmem:[%s7576_s1 + $0x3d0] sm:$0xff] }
  0xd8   : > { %2440 = vmatpush.bf16.msra.mxu0 %v5983_v40  ;;  %v817_v62 = vpop.f32.mrf.mxu2  ;;  %v6012_v40 = vld [vmem:[%s7576_s1 + $0x308] sm:$0xff] }
  0xd9   : > { %2453 = vmatpush.bf16.msra.mxu1 %v5991_v41  ;;  %v830_v63 = vpop.f32.mrf.mxu3  ;;  %v6020_v41 = vld [vmem:[%s7576_s1 + $0x348] sm:$0xff]  ;;  %v2561_v62 = vshrl.u32 %v6984_v12, 16 }
  0xda   : > { %2466 = vmatpush.bf16.msra.mxu2 %v5999_v43  ;;  %v2575_v43 = vshll.u32 %v6980_v9, 16 }
  0xdb   : > { %2479 = vmatpush.bf16.msra.mxu3 %v6007_v44  ;;  %v2581_v44 = vshll.u32 %v6982_v11, 16 }
  0xdc   : > { %2441 = vmatpush.bf16.msra.mxu0 %v5982_v45  ;;  %v6028_v45 = vld [vmem:[%s7576_s1 + $0x388] sm:$0xff] }
  0xdd   : > { %2454 = vmatpush.bf16.msra.mxu1 %v5990_v46  ;;  %v6036_v46 = vld [vmem:[%s7576_s1 + $0x3c8] sm:$0xff] }
  0xde   : > { %2467 = vmatpush.bf16.msra.mxu2 %v5998_v47  ;;  %v2563_v47 = vshll.u32 %v6984_v12, 16  ;;  %v6081_v12 = vld [vmem:[%s7576_s1 + $0x130] sm:$0xff] }
  0xdf   : > { %2480 = vmatpush.bf16.msra.mxu3 %v6006_v48  ;;  %v2569_v48 = vshll.u32 %v6986_v13, 16 }
  0xe0   : > { %2442 = vmatpush.bf16.msra.mxu0 %v5981_v53  ;;  %v2565_v63 = vrot.slane %v2563_v47, 1  ;;  %v2972_v47 = vld.sshfl [vmem:[#allocation1] sm:$0xff pattern:$0x73625140] }
  0xe1   : > { %2455 = vmatpush.bf16.msra.mxu1 %v5989_v54  ;;  %v6011_v54 = vld [vmem:[%s7576_s1 + $0x300] sm:$0xff] }
  0xe2   : > { %2468 = vmatpush.bf16.msra.mxu2 %v5997_v56  ;;  %v2573_v56 = vshrl.u32 %v6980_v9, 16  ;;  %v2566_v9 = vor.u32 %v2565_v63, %v2561_v62 }
  0xe3   : > { %2481 = vmatpush.bf16.msra.mxu3 %v6005_v57  ;;  %v2577_v57 = vrot.slane %v2575_v43, 1  ;;  %v6101_v43 = vld [vmem:[%s7576_s1 + $0x1d0] sm:$0xff] }
  0xe4   : > { %2443 = vmatpush.bf16.msra.mxu0 %v5980_v58  ;;  %v2579_v58 = vshrl.u32 %v6982_v11, 16 }
  0xe5   : > { %2456 = vmatpush.bf16.msra.mxu1 %v5988_v59  ;;  %v2583_v59 = vrot.slane %v2581_v44, 1 }
  0xe6   : > { %2469 = vmatpush.bf16.msra.mxu2 %v5996_v60  ;;  %v6027_v60 = vld [vmem:[%s7576_s1 + $0x380] sm:$0xff] }
  0xe7   : > { %2482 = vmatpush.bf16.msra.mxu3 %v6004_v61  ;;  %v6035_v61 = vld [vmem:[%s7576_s1 + $0x3c0] sm:$0xff] }
  0xe8   : > { %2444 = vmatpush.bf16.msra.mxu0 %v5979_v0  ;;  %v7023_v23 = vpop.f32.mrf.mxu0  ;;  %v2567_v0 = vshrl.u32 %v6986_v13, 16  ;;  %v6089_v13 = vld [vmem:[%s7576_s1 + $0x170] sm:$0xff] }
  0xe9   : > { %2457 = vmatpush.bf16.msra.mxu1 %v5987_v1  ;;  %v7025_v24 = vpop.f32.mrf.mxu1  ;;  %v2571_v1 = vrot.slane %v2569_v48, 1 }
  0xea   : > { %2470 = vmatpush.bf16.msra.mxu2 %v5995_v2  ;;  %v6082_v2 = vld [vmem:[%s7576_s1 + $0x138] sm:$0xff] }
  0xeb   : > { %2483 = vmatpush.bf16.msra.mxu3 %v6003_v4  ;;  %2445 = vmatmul.bf16.vlgmr.msra.gmra.mxu0 %v6883_v33  ;;  %v6013_v33 = vld [vmem:[%s7576_s1 + $0x310] sm:$0xff]  ;;  %v6090_v4 = vld [vmem:[%s7576_s1 + $0x178] sm:$0xff]  ;;  %v2572_v11 = vor.u32 %v2571_v1, %v2567_v0 }
  0xec   : > { %2781 = vmatpush.bf16.msrb.mxu0 %v6018_v5  ;;  %2458 = vmatmul.bf16.vlgmr.msra.gmra.mxu1 %v6885_v34  ;;  %v6021_v34 = vld [vmem:[%s7576_s1 + $0x350] sm:$0xff]  ;;  %v6098_v5 = vld [vmem:[%s7576_s1 + $0x1b8] sm:$0xff] }
  0xed   : > { %2794 = vmatpush.bf16.msrb.mxu1 %v6026_v6  ;;  %2471 = vmatmul.bf16.vlgmr.msra.gmra.mxu2 %v6877_v31  ;;  %v6106_v6 = vld [vmem:[%s7576_s1 + $0x1f8] sm:$0xff] }
  0xee   : > { %2807 = vmatpush.bf16.msrb.mxu2 %v6034_v7  ;;  %2484 = vmatmul.bf16.vlgmr.msra.gmra.mxu3 %v6879_v32  ;;  %v2578_v7 = vor.u32 %v2577_v57, %v2573_v56  ;;  %v6084_v56 = vld [vmem:[%s7576_s1 + $0x148] sm:$0xff]  ;;  %v2978_v57 = vshll.u32 %v2972_v47, 16 }
  0xef   : > { %2820 = vmatpush.bf16.msrb.mxu3 %v6042_v8  ;;  %v2584_v8 = vor.u32 %v2583_v59, %v2579_v58  ;;  %v6092_v58 = vld [vmem:[%s7576_s1 + $0x188] sm:$0xff] }
  0xf0   : > { %2782 = vmatpush.bf16.msrb.mxu0 %v6017_v14  ;;  %v7045_v31 = vpop.f32.mrf.mxu2  ;;  %v1111_v35 = vpop.f32.mrf.mxu0  ;;  %v6097_v14 = vld [vmem:[%s7576_s1 + $0x1b0] sm:$0xff]  ;;  %v6100_v59 = vld [vmem:[%s7576_s1 + $0x1c8] sm:$0xff] }
  0xf1   : > { %2795 = vmatpush.bf16.msrb.mxu1 %v6025_v15  ;;  %v7047_v32 = vpop.f32.mrf.mxu3  ;;  %v1124_v36 = vpop.f32.mrf.mxu1  ;;  %v6105_v15 = vld [vmem:[%s7576_s1 + $0x1f0] sm:$0xff] }
  0xf2   : > { %2808 = vmatpush.bf16.msrb.mxu2 %v6033_v16  ;;  %v790_v16 = vadd.f32 %v6900_v39, %v6819_v10  ;;  %v6096_v10 = vld [vmem:[%s7576_s1 + $0x1a8] sm:$0xff]  ;;  %v7165_v36 = vld [vmem:[%s7577_s2] ss:$0 sm:$0xff] }
  0xf3   : > { %2821 = vmatpush.bf16.msrb.mxu3 %v6041_v17  ;;  %v1123_v17 = vadd.f32 %v7025_v24, %v7023_v23  ;;  %v6104_v39 = vld [vmem:[%s7576_s1 + $0x1e8] sm:$0xff] }
  0xf4   : > { %2783 = vmatpush.bf16.msrb.mxu0 %v6016_v18  ;;  %v6080_v18 = vld [vmem:[%s7576_s1 + $0x128] sm:$0xff] }
  0xf5   : > { %2796 = vmatpush.bf16.msrb.mxu1 %v6024_v19  ;;  %v6088_v19 = vld [vmem:[%s7576_s1 + $0x168] sm:$0xff] }
  0xf6   : > { %2809 = vmatpush.bf16.msrb.mxu2 %v6032_v20  ;;  %v803_v20 = vadd.f32 %v6908_v42, %v790_v16  ;;  %v6095_v42 = vld [vmem:[%s7576_s1 + $0x1a0] sm:$0xff] }
  0xf7   : > { %2822 = vmatpush.bf16.msrb.mxu3 %v6040_v3  ;;  %v1136_v3 = vadd.f32 %v7045_v31, %v1123_v17  ;;  %v6102_v31 = vld [vmem:[%s7576_s1 + $0x1d8] sm:$0xff] }
  0xf8   : > { %2784 = vmatpush.bf16.msrb.mxu0 %v6015_v21  ;;  %v1137_v52 = vpop.f32.mrf.mxu2  ;;  %v6079_v21 = vld [vmem:[%s7576_s1 + $0x120] sm:$0xff] }
  0xf9   : > { %2797 = vmatpush.bf16.msrb.mxu1 %v6023_v22  ;;  %v1150_v53 = vpop.f32.mrf.mxu3  ;;  %v6087_v22 = vld [vmem:[%s7576_s1 + $0x160] sm:$0xff]  ;;  %v2975_v52 = vld.sshfl [vmem:[#allocation1 + $0x18] sm:$0xff pattern:$0x73625140] }
  0xfa   : > { %2810 = vmatpush.bf16.msrb.mxu2 %v6031_v25  ;;  %v6103_v25 = vld [vmem:[%s7576_s1 + $0x1e0] sm:$0xff]  ;;  %v2973_v53 = vld.sshfl [vmem:[#allocation1 + $0x8] sm:$0xff pattern:$0x73625140]  ;;  %v2996_v62 = vshll.u32 %v2975_v52, 16 }
  0xfb   : > { %2823 = vmatpush.bf16.msrb.mxu3 %v6039_v26  ;;  %v816_v26 = vadd.f32 %v6928_v49, %v803_v20  ;;  %v6094_v49 = vld [vmem:[%s7576_s1 + $0x198] sm:$0xff]  ;;  %v2984_v63 = vshll.u32 %v2973_v53, 16  ;;  %v2982_v16 = vshrl.u32 %v2973_v53, 16 }
  0xfc   : > { %2785 = vmatpush.bf16.msrb.mxu0 %v6014_v27  ;;  %v6074_v20 = vld [vmem:[%s7576_s1 + $0xf8] sm:$0xff] }
  0xfd   : > { %2798 = vmatpush.bf16.msrb.mxu1 %v6022_v28  ;;  %v1149_v28 = vadd.f32 %v7047_v32, %v1136_v3  ;;  %v2986_v17 = vrot.slane %v2984_v63, 1  ;;  %v6068_v63 = vld [vmem:[%s7576_s1 + $0xc8] sm:$0xff] }
  0xfe   : > { %2811 = vmatpush.bf16.msrb.mxu2 %v6030_v29  ;;  %v6078_v29 = vld [vmem:[%s7576_s1 + $0x118] sm:$0xff] }
  0xff   : > { %2824 = vmatpush.bf16.msrb.mxu3 %v6038_v30  ;;  %v6086_v30 = vld [vmem:[%s7576_s1 + $0x158] sm:$0xff] }
 0x100   : > { %2786 = vmatpush.bf16.msrb.mxu0 %v6013_v33 }
 0x101   : > { %2799 = vmatpush.bf16.msrb.mxu1 %v6021_v34  ;;  %v829_v34 = vadd.f32 %v6930_v50, %v816_v26  ;;  %v6093_v50 = vld [vmem:[%s7576_s1 + $0x190] sm:$0xff] }
 0x102   : > { %2812 = vmatpush.bf16.msrb.mxu2 %v6029_v37  ;;  %v6077_v37 = vld [vmem:[%s7576_s1 + $0x110] sm:$0xff] }
 0x103   : > { %2825 = vmatpush.bf16.msrb.mxu3 %v6037_v38  ;;  %v1152_v38 = vadd.f32 %v1149_v28, %v829_v34  ;;  %v6073_v26 = vld [vmem:[%s7576_s1 + $0xf0] sm:$0xff]  ;;  %v6056_v28 = vld [vmem:[%s7576_s1 + $0x68] sm:$0xff] }
 0x104   : > { %2787 = vmatpush.bf16.msrb.mxu0 %v6012_v40 }
 0x105   : > { %2800 = vmatpush.bf16.msrb.mxu1 %v6020_v41  ;;  %v6085_v41 = vld [vmem:[%s7576_s1 + $0x150] sm:$0xff] }
 0x106   : > { %2813 = vmatpush.bf16.msrb.mxu2 %v6028_v45 }
 0x107   : > { %2826 = vmatpush.bf16.msrb.mxu3 %v6036_v46  ;;  %v2974_v46 = vld.sshfl [vmem:[#allocation1 + $0x10] sm:$0xff pattern:$0x73625140] }
 0x108   : > { %2788 = vmatpush.bf16.msrb.mxu0 %v6011_v54  ;;  %v1453_v23 = vpop.f32.mrf.mxu0  ;;  %3248 = vst [vmem:[#allocation1] ss:$4 sm:$0xff] %v6778_v51  ;;  %v2990_v51 = vshll.u32 %v2974_v46, 16 }
 0x109   : > { %2801 = vmatpush.bf16.msrb.mxu1 %v6019_v55  ;;  %v1466_v24 = vpop.f32.mrf.mxu1  ;;  %v6076_v55 = vld [vmem:[%s7576_s1 + $0x108] sm:$0xff] }
 0x10a   : > { %2814 = vmatpush.bf16.msrb.mxu2 %v6027_v60  ;;  %v1467_v27 = vadd.f32 %v1466_v24, %v1453_v23  ;;  %v2987_v23 = vor.u32 %v2986_v17, %v2982_v16  ;;  %v6049_v24 = vld [vmem:[%s7576_s1 + $0x30] sm:$0xff] }
 0x10b   : > { %2827 = vmatpush.bf16.msrb.mxu3 %v6035_v61  ;;  %2789 = vmatmul.bf16.vlgmr.msrb.gmra.mxu0 %v2566_v9  ;;  %v2976_v9 = vshrl.u32 %v2972_v47, 16  ;;  %v6070_v47 = vld [vmem:[%s7576_s1 + $0xd8] sm:$0xff]  ;;  %v6137_v16 = vld [vmem:[%s7576_s1 + $0x2f0] sm:$0xff] }
 0x10c   : > { %3196 = vmatpush.bf16.msra.mxu0 %v6082_v2  ;;  %2802 = vmatmul.bf16.vlgmr.msrb.gmra.mxu1 %v2572_v11  ;;  %v1506_v2 = vld [vmem:[%s7184_s29] sm:$0x3]  ;;  %v2980_v11 = vrot.slane %v2978_v57, 1 }
 0x10d   : > { %3209 = vmatpush.bf16.msra.mxu1 %v6090_v4  ;;  %2815 = vmatmul.bf16.vlgmr.msrb.gmra.mxu2 %v2578_v7  ;;  %v2988_v4 = vshrl.u32 %v2974_v46, 16  ;;  %v6083_v7 = vld [vmem:[%s7576_s1 + $0x140] sm:$0xff]  ;;  %v6062_v46 = vld [vmem:[%s7576_s1 + $0x98] sm:$0xff] }
 0x10e   : > { %3222 = vmatpush.bf16.msra.mxu2 %v6098_v5  ;;  %2828 = vmatmul.bf16.vlgmr.msrb.gmra.mxu3 %v2584_v8  ;;  %v2992_v8 = vrot.slane %v2990_v51, 1 }
 0x10f   : > { %3235 = vmatpush.bf16.msra.mxu3 %v6106_v6  ;;  %v6075_v6 = vld [vmem:[%s7576_s1 + $0x100] sm:$0xff]  ;;  %v7266_v34 = vld.sshfl [vmem:[#allocation1 + $0x10] sm:$0xff pattern:$0x73625140] }
 0x110   : > { %3197 = vmatpush.bf16.msra.mxu0 %v6081_v12  ;;  %v1479_v32 = vpop.f32.mrf.mxu2  ;;  %v1455_v44 = vpop.f32.mrf.mxu0  ;;  %v6091_v12 = vld [vmem:[%s7576_s1 + $0x180] sm:$0xff]  ;;  %v2993_v3 = vor.u32 %v2992_v8, %v2988_v4  ;;  %v6114_v8 = vld [vmem:[%s7576_s1 + $0x238] sm:$0xff] }
 0x111   : > { %3210 = vmatpush.bf16.msra.mxu1 %v6089_v13  ;;  %v1492_v33 = vpop.f32.mrf.mxu3  ;;  %v1480_v35 = vadd.f32 %v1479_v32, %v1467_v27  ;;  %v1468_v45 = vpop.f32.mrf.mxu1  ;;  %v6099_v13 = vld [vmem:[%s7576_s1 + $0x1c0] sm:$0xff]  ;;  %v6048_v27 = vld [vmem:[%s7576_s1 + $0x28] sm:$0xff]  ;;  %v6046_v44 = vld [vmem:[%s7576_s1 + $0x18] sm:$0xff] }
 0x112   : > { %3223 = vmatpush.bf16.msra.mxu2 %v6097_v14  ;;  %v2994_v14 = vshrl.u32 %v2975_v52, 16  ;;  %v6055_v32 = vld [vmem:[%s7576_s1 + $0x60] sm:$0xff]  ;;  %v6054_v45 = vld [vmem:[%s7576_s1 + $0x58] sm:$0xff] }
 0x113   : > { %3236 = vmatpush.bf16.msra.mxu3 %v6105_v15  ;;  %v1493_v40 = vadd.f32 %v1492_v33, %v1480_v35  ;;  %v2998_v15 = vrot.slane %v2996_v62, 1  ;;  %v7268_v35 = vld.sshfl [vmem:[#allocation1] sm:$0xff pattern:$0x73625140]  ;;  %v6060_v62 = vld [vmem:[%s7576_s1 + $0x88] sm:$0xff] }
 0x114   : > { %3198 = vmatpush.bf16.msra.mxu0 %v6080_v18  ;;  %v6043_v4 = vld [vmem:[%s7576_s1] sm:$0xff] }
 0x115   : > { %3211 = vmatpush.bf16.msra.mxu1 %v6088_v19  ;;  %v1496_v48 = vadd.f32 %v1493_v40, %v1152_v38  ;;  %v6050_v19 = vld [vmem:[%s7576_s1 + $0x38] sm:$0xff]  ;;  %v7272_v40 = vld.sshfl [vmem:[#allocation1 + $0x8] sm:$0xff pattern:$0x73625140] }
 0x116   : > { %3224 = vmatpush.bf16.msra.mxu2 %v6096_v10  ;;  %v6058_v10 = vld [vmem:[%s7576_s1 + $0x78] sm:$0xff] }
 0x117   : > { %3237 = vmatpush.bf16.msra.mxu3 %v6104_v39  ;;  %v1500_v54 = vadd.f32 %v7165_v36, %v1496_v48  ;;  %v6066_v39 = vld [vmem:[%s7576_s1 + $0xb8] sm:$0xff] }
 0x118   : > { %3199 = vmatpush.bf16.msra.mxu0 %v6079_v21  ;;  %v1481_v60 = vpop.f32.mrf.mxu2  ;;  %v2981_v21 = vor.u32 %v2980_v11, %v2976_v9  ;;  %v7270_v38 = vld.sshfl [vmem:[#allocation1 + $0x18] sm:$0xff pattern:$0x73625140] }
 0x119   : > { %3212 = vmatpush.bf16.msra.mxu1 %v6087_v22  ;;  %v1494_v61 = vpop.f32.mrf.mxu3  ;;  %v1501_v0 = vmax.f32 %v1500_v54, 0.0  ;;  %v2999_v22 = vor.u32 %v2998_v15, %v2994_v14  ;;  %v6044_v60 = vld [vmem:[%s7576_s1 + $0x8] sm:$0xff]  ;;  %v6122_v9 = vld [vmem:[%s7576_s1 + $0x278] sm:$0xff]  ;;  %v6121_v14 = vld [vmem:[%s7576_s1 + $0x270] sm:$0xff] }
 0x11a   : > { %3225 = vmatpush.bf16.msra.mxu2 %v6095_v42  ;;  %v6057_v42 = vld [vmem:[%s7576_s1 + $0x70] sm:$0xff]  ;;  %v6052_v61 = vld [vmem:[%s7576_s1 + $0x48] sm:$0xff]  ;;  %v6130_v11 = vld [vmem:[%s7576_s1 + $0x2b8] sm:$0xff] }
 0x11b   : > { %3238 = vmatpush.bf16.msra.mxu3 %v6103_v25  ;;  %v1502_v5 = vpack.c.bf16 %v1501_v0, %v1501_v0  ;;  %v6065_v25 = vld [vmem:[%s7576_s1 + $0xb0] sm:$0xff] }
 0x11c   : > { %3200 = vmatpush.bf16.msra.mxu0 %v6078_v29  ;;  %v6064_v29 = vld [vmem:[%s7576_s1 + $0xa8] sm:$0xff]  ;;  %v6129_v15 = vld [vmem:[%s7576_s1 + $0x2b0] sm:$0xff] }
 0x11d   : > { %3213 = vmatpush.bf16.msra.mxu1 %v6086_v30  ;;  %v1507_v18 = vsel %vm7201_vm2, %v1502_v5, %v1506_v2  ;;  %v6072_v30 = vld [vmem:[%s7576_s1 + $0xe8] sm:$0xff]  ;;  %v6051_v5 = vld [vmem:[%s7576_s1 + $0x40] sm:$0xff] }
 0x11e   : > { %3226 = vmatpush.bf16.msra.mxu2 %v6094_v49  ;;  %1508 = vst [vmem:[%s7184_s29] sm:$0x3] %v1507_v18  ;;  %v7258_v49 = vld [vmem:[%s6277_s28 + $0x18] sm:$0xff] }
 0x11f   : > { %3239 = vmatpush.bf16.msra.mxu3 %v6102_v31  ;;  %v6047_v31 = vld [vmem:[%s7576_s1 + $0x20] sm:$0xff]  ;;  %3568 = vst [vmem:[#allocation1] ss:$4 sm:$0xff] %v7258_v49 }
 0x120   : > { %3201 = vmatpush.bf16.msra.mxu0 %v6077_v37 }
 0x121   : > { %3214 = vmatpush.bf16.msra.mxu1 %v6085_v41  ;;  %v6063_v41 = vld [vmem:[%s7576_s1 + $0xa0] sm:$0xff] }
 0x122   : > { %3227 = vmatpush.bf16.msra.mxu2 %v6093_v50  ;;  %v6071_v50 = vld [vmem:[%s7576_s1 + $0xe0] sm:$0xff] }
 0x123   : > { %3240 = vmatpush.bf16.msra.mxu3 %v6101_v43 }
 0x124   : > { %3202 = vmatpush.bf16.msra.mxu0 %v6076_v55  ;;  %v6045_v55 = vld [vmem:[%s7576_s1 + $0x10] sm:$0xff] }
 0x125   : > { %3215 = vmatpush.bf16.msra.mxu1 %v6084_v56  ;;  %v6053_v56 = vld [vmem:[%s7576_s1 + $0x50] sm:$0xff] }
 0x126   : > { %3228 = vmatpush.bf16.msra.mxu2 %v6092_v58  ;;  %v6061_v58 = vld [vmem:[%s7576_s1 + $0x90] sm:$0xff]  ;;  %v7359_v18 = vld.sshfl [vmem:[#allocation1 + $0x18] sm:$0xff pattern:$0x73625140] }
 0x127   : > { %3241 = vmatpush.bf16.msra.mxu3 %v6100_v59  ;;  %v6069_v59 = vld [vmem:[%s7576_s1 + $0xd0] sm:$0xff] }
 0x128   : > { %3203 = vmatpush.bf16.msra.mxu0 %v6075_v6  ;;  %v1873_v33 = vpop.f32.mrf.mxu0  ;;  %v6059_v6 = vld [vmem:[%s7576_s1 + $0x80] sm:$0xff]  ;;  %v7357_v17 = vld.sshfl [vmem:[#allocation1 + $0x10] sm:$0xff pattern:$0x73625140] }
 0x129   : > { %3216 = vmatpush.bf16.msra.mxu1 %v6083_v7  ;;  %v1886_v37 = vpop.f32.mrf.mxu1  ;;  %v6067_v7 = vld [vmem:[%s7576_s1 + $0xc0] sm:$0xff] }
 0x12a   : > { %3229 = vmatpush.bf16.msra.mxu2 %v6091_v12  ;;  %v1887_v43 = vadd.f32 %v1886_v37, %v1873_v33  ;;  %v6138_v12 = vld [vmem:[%s7576_s1 + $0x2f8] sm:$0xff]  ;;  %v6109_v33 = vld [vmem:[%s7576_s1 + $0x210] sm:$0xff] }
 0x12b   : > { %3242 = vmatpush.bf16.msra.mxu3 %v6099_v13  ;;  %3204 = vmatmul.bf16.vlgmr.msra.gmra.mxu0 %v2981_v21  ;;  %v6113_v13 = vld [vmem:[%s7576_s1 + $0x230] sm:$0xff]  ;;  %v6136_v21 = vld [vmem:[%s7576_s1 + $0x2e8] sm:$0xff] }
 0x12c   : > { %3449 = vmatpush.bf16.msrb.mxu0 %v6050_v19  ;;  %3217 = vmatmul.bf16.vlgmr.msra.gmra.mxu1 %v2987_v23  ;;  %v7363_v19 = vld.sshfl [vmem:[#allocation1] sm:$0xff pattern:$0x73625140]  ;;  %v6125_v37 = vld [vmem:[%s7576_s1 + $0x290] sm:$0xff] }
 0x12d   : > { %3462 = vmatpush.bf16.msrb.mxu1 %v6058_v10  ;;  %3230 = vmatmul.bf16.vlgmr.msra.gmra.mxu2 %v2993_v3  ;;  %v7365_v10 = vld.sshfl [vmem:[#allocation1 + $0x8] sm:$0xff pattern:$0x73625140]  ;;  %v6111_v23 = vld [vmem:[%s7576_s1 + $0x220] sm:$0xff] }
 0x12e   : > { %3475 = vmatpush.bf16.msrb.mxu2 %v6066_v39  ;;  %3243 = vmatmul.bf16.vlgmr.msra.gmra.mxu3 %v2999_v22  ;;  %v6112_v39 = vld [vmem:[%s7576_s1 + $0x228] sm:$0xff]  ;;  %3888 = vst [vmem:[#allocation1] ss:$4 sm:$0xff] %v7258_v49 }
 0x12f   : > { %3488 = vmatpush.bf16.msrb.mxu3 %v6074_v20  ;;  %v6120_v20 = vld [vmem:[%s7576_s1 + $0x268] sm:$0xff] }
 0x130   : > { %3450 = vmatpush.bf16.msrb.mxu0 %v6049_v24  ;;  %v1899_v48 = vpop.f32.mrf.mxu2  ;;  %v1875_v54 = vpop.f32.mrf.mxu0  ;;  %v6128_v3 = vld [vmem:[%s7576_s1 + $0x2a8] sm:$0xff]  ;;  %v6119_v24 = vld [vmem:[%s7576_s1 + $0x260] sm:$0xff] }
 0x131   : > { %3463 = vmatpush.bf16.msrb.mxu1 %v6057_v42  ;;  %v1900_v52 = vadd.f32 %v1899_v48, %v1887_v43  ;;  %v1912_v53 = vpop.f32.mrf.mxu3  ;;  %v1888_v57 = vpop.f32.mrf.mxu1  ;;  %v6132_v43 = vld [vmem:[%s7576_s1 + $0x2c8] sm:$0xff]  ;;  %v6123_v48 = vld [vmem:[%s7576_s1 + $0x280] sm:$0xff]  ;;  %v6154_v54 = vld [vmem:[%s7576_s1 + $0x378] sm:$0xff] }
 0x132   : > { %3476 = vmatpush.bf16.msrb.mxu2 %v6065_v25  ;;  %v6127_v25 = vld [vmem:[%s7576_s1 + $0x2a0] sm:$0xff]  ;;  %v6145_v57 = vld [vmem:[%s7576_s1 + $0x330] sm:$0xff] }
 0x133   : > { %3489 = vmatpush.bf16.msrb.mxu3 %v6073_v26  ;;  %v7299_v51 = vadd.f32 %v1912_v53, %v1900_v52  ;;  %v6135_v26 = vld [vmem:[%s7576_s1 + $0x2e0] sm:$0xff]  ;;  %v6146_v53 = vld [vmem:[%s7576_s1 + $0x338] sm:$0xff] }
 0x134   : > { %3451 = vmatpush.bf16.msrb.mxu0 %v6048_v27  ;;  %v6110_v27 = vld [vmem:[%s7576_s1 + $0x218] sm:$0xff]  ;;  %v6131_v52 = vld [vmem:[%s7576_s1 + $0x2c0] sm:$0xff] }
 0x135   : > { %3464 = vmatpush.bf16.msrb.mxu1 %v6056_v28  ;;  %v6118_v28 = vld [vmem:[%s7576_s1 + $0x258] sm:$0xff] }
 0x136   : > { %3477 = vmatpush.bf16.msrb.mxu2 %v6064_v29  ;;  %v6126_v29 = vld [vmem:[%s7576_s1 + $0x298] sm:$0xff] }
 0x137   : > { %3490 = vmatpush.bf16.msrb.mxu3 %v6072_v30  ;;  %v6134_v30 = vld [vmem:[%s7576_s1 + $0x2d8] sm:$0xff] }
 0x138   : > { %3452 = vmatpush.bf16.msrb.mxu0 %v6047_v31  ;;  %v1901_v0 = vpop.f32.mrf.mxu2 }
 0x139   : > { %3465 = vmatpush.bf16.msrb.mxu1 %v6055_v32  ;;  %v1914_v2 = vpop.f32.mrf.mxu3  ;;  %v6168_v0 = vld [vmem:[%s7576_s1 + $0x3e8] sm:$0xff] }
 0x13a   : > { %3478 = vmatpush.bf16.msrb.mxu2 %v6063_v41  ;;  %v6116_v41 = vld [vmem:[%s7576_s1 + $0x248] sm:$0xff]  ;;  %v6143_v2 = vld [vmem:[%s7576_s1 + $0x320] sm:$0xff] }
 0x13b   : > { %3491 = vmatpush.bf16.msrb.mxu3 %v6071_v50  ;;  %v6124_v50 = vld [vmem:[%s7576_s1 + $0x288] sm:$0xff] }
 0x13c   : > { %3453 = vmatpush.bf16.msrb.mxu0 %v6046_v44 }
 0x13d   : > { %3466 = vmatpush.bf16.msrb.mxu1 %v6054_v45 }
 0x13e   : > { %3479 = vmatpush.bf16.msrb.mxu2 %v6062_v46  ;;  %v6107_v46 = vld [vmem:[%s7576_s1 + $0x200] sm:$0xff] }
 0x13f   : > { %3492 = vmatpush.bf16.msrb.mxu3 %v6070_v47  ;;  %v6115_v47 = vld [vmem:[%s7576_s1 + $0x240] sm:$0xff] }
 0x140   : > { %3454 = vmatpush.bf16.msrb.mxu0 %v6045_v55  ;;  %v6162_v55 = vld [vmem:[%s7576_s1 + $0x3b8] sm:$0xff] }
 0x141   : > { %3467 = vmatpush.bf16.msrb.mxu1 %v6053_v56  ;;  %v6170_v56 = vld [vmem:[%s7576_s1 + $0x3f8] sm:$0xff] }
 0x142   : > { %3480 = vmatpush.bf16.msrb.mxu2 %v6061_v58  ;;  %v6153_v58 = vld [vmem:[%s7576_s1 + $0x370] sm:$0xff] }
 0x143   : > { %3493 = vmatpush.bf16.msrb.mxu3 %v6069_v59  ;;  %v6161_v59 = vld [vmem:[%s7576_s1 + $0x3b0] sm:$0xff] }
 0x144   : > { %3455 = vmatpush.bf16.msrb.mxu0 %v6044_v60  ;;  %v6169_v60 = vld [vmem:[%s7576_s1 + $0x3f0] sm:$0xff] }
 0x145   : > { %3468 = vmatpush.bf16.msrb.mxu1 %v6052_v61  ;;  %v6144_v61 = vld [vmem:[%s7576_s1 + $0x328] sm:$0xff] }
 0x146   : > { %3481 = vmatpush.bf16.msrb.mxu2 %v6060_v62  ;;  %v6152_v62 = vld [vmem:[%s7576_s1 + $0x368] sm:$0xff] }
 0x147   : > { %3494 = vmatpush.bf16.msrb.mxu3 %v6068_v63  ;;  %v6160_v63 = vld [vmem:[%s7576_s1 + $0x3a8] sm:$0xff] }
 0x148   : > { %3456 = vmatpush.bf16.msrb.mxu0 %v6043_v4  ;;  %v7380_v22 = vpop.f32.mrf.mxu0  ;;  %v6151_v4 = vld [vmem:[%s7576_s1 + $0x360] sm:$0xff] }
 0x149   : > { %3469 = vmatpush.bf16.msrb.mxu1 %v6051_v5  ;;  %v7388_v42 = vpop.f32.mrf.mxu1 }
 0x14a   : > { %3482 = vmatpush.bf16.msrb.mxu2 %v6059_v6 }
 0x14b   : > { %3495 = vmatpush.bf16.msrb.mxu3 %v6067_v7  ;;  %3457 = vmatmul.bf16.vlgmr.msrb.gmra.mxu0 %v7268_v35  ;;  %v6159_v7 = vld [vmem:[%s7576_s1 + $0x3a0] sm:$0xff] }
 0x14c   : > { %3769 = vmatpush.bf16.msra.mxu0 %v6114_v8  ;;  %3470 = vmatmul.bf16.vlgmr.msrb.gmra.mxu1 %v7272_v40  ;;  %v6108_v40 = vld [vmem:[%s7576_s1 + $0x208] sm:$0xff]  ;;  %v6167_v8 = vld [vmem:[%s7576_s1 + $0x3e0] sm:$0xff] }
 0x14d   : > { %3782 = vmatpush.bf16.msra.mxu1 %v6122_v9  ;;  %3483 = vmatmul.bf16.vlgmr.msrb.gmra.mxu2 %v7266_v34  ;;  %v6117_v34 = vld [vmem:[%s7576_s1 + $0x250] sm:$0xff]  ;;  %v6142_v9 = vld [vmem:[%s7576_s1 + $0x318] sm:$0xff] }
 0x14e   : > { %3795 = vmatpush.bf16.msra.mxu2 %v6130_v11  ;;  %3496 = vmatmul.bf16.vlgmr.msrb.gmra.mxu3 %v7270_v38  ;;  %v6133_v38 = vld [vmem:[%s7576_s1 + $0x2d0] sm:$0xff]  ;;  %v6150_v11 = vld [vmem:[%s7576_s1 + $0x358] sm:$0xff] }
 0x14f   : > { %3808 = vmatpush.bf16.msra.mxu3 %v6138_v12  ;;  %v6158_v12 = vld [vmem:[%s7576_s1 + $0x398] sm:$0xff] }
 0x150   : > { %3770 = vmatpush.bf16.msra.mxu0 %v6113_v13  ;;  %v7408_v49 = vpop.f32.mrf.mxu2  ;;  %v2128_v32 = vpop.f32.mrf.mxu0  ;;  %v6166_v13 = vld [vmem:[%s7576_s1 + $0x3d8] sm:$0xff] }
 0x151   : > { %3783 = vmatpush.bf16.msra.mxu1 %v6121_v14  ;;  %v7410_v31 = vpop.f32.mrf.mxu3  ;;  %v2141_v35 = vpop.f32.mrf.mxu1  ;;  %v6164_v32 = vld [vmem:[%s7576_s1 + $0x3c8] sm:$0xff] }
 0x152   : > { %3796 = vmatpush.bf16.msra.mxu2 %v6129_v15 }
 0x153   : > { %3809 = vmatpush.bf16.msra.mxu3 %v6137_v16  ;;  %v6141_v16 = vld [vmem:[%s7576_s1 + $0x310] sm:$0xff] }
 0x154   : > { %3771 = vmatpush.bf16.msra.mxu0 %v6112_v39  ;;  %v3890_v39 = vld.sshfl [vmem:[#allocation1 + $0x8] sm:$0xff pattern:$0x73625140] }
 0x155   : > { %3784 = vmatpush.bf16.msra.mxu1 %v6120_v20 }
 0x156   : > { %3797 = vmatpush.bf16.msra.mxu2 %v6128_v3 }
 0x157   : > { %3810 = vmatpush.bf16.msra.mxu3 %v6136_v21  ;;  %v3891_v21 = vld.sshfl [vmem:[#allocation1 + $0x10] sm:$0xff pattern:$0x73625140] }
 0x158   : > { %3772 = vmatpush.bf16.msra.mxu0 %v6111_v23  ;;  %v2154_v44 = vpop.f32.mrf.mxu2  ;;  %v3892_v23 = vld.sshfl [vmem:[#allocation1 + $0x18] sm:$0xff pattern:$0x73625140] }
 0x159   : > { %3785 = vmatpush.bf16.msra.mxu1 %v6119_v24  ;;  %v2167_v45 = vpop.f32.mrf.mxu3 }
 0x15a   : > { %3798 = vmatpush.bf16.msra.mxu2 %v6127_v25  ;;  %v3901_v25 = vshll.u32 %v3890_v39, 16  ;;  %v3911_v45 = vshrl.u32 %v3892_v23, 16 }
 0x15b   : > { %3811 = vmatpush.bf16.msra.mxu3 %v6135_v26  ;;  %v6140_v26 = vld [vmem:[%s7576_s1 + $0x308] sm:$0xff] }
 0x15c   : > { %3773 = vmatpush.bf16.msra.mxu0 %v6110_v27  ;;  %v6148_v27 = vld [vmem:[%s7576_s1 + $0x348] sm:$0xff] }
 0x15d   : > { %3786 = vmatpush.bf16.msra.mxu1 %v6118_v28  ;;  %v3907_v28 = vshll.u32 %v3891_v21, 16 }
 0x15e   : > { %3799 = vmatpush.bf16.msra.mxu2 %v6126_v29  ;;  %v3913_v29 = vshll.u32 %v3892_v23, 16 }
 0x15f   : > { %3812 = vmatpush.bf16.msra.mxu3 %v6134_v30  ;;  %v6156_v30 = vld [vmem:[%s7576_s1 + $0x388] sm:$0xff]  ;;  %v3909_v44 = vrot.slane %v3907_v28, 1 }
 0x160   : > { %3774 = vmatpush.bf16.msra.mxu0 %v6109_v33 }
 0x161   : > { %3787 = vmatpush.bf16.msra.mxu1 %v6117_v34 }
 0x162   : > { %3800 = vmatpush.bf16.msra.mxu2 %v6125_v37 }
 0x163   : > { %3813 = vmatpush.bf16.msra.mxu3 %v6133_v38  ;;  %v3899_v38 = vshrl.u32 %v3890_v39, 16 }
 0x164   : > { %3775 = vmatpush.bf16.msra.mxu0 %v6108_v40  ;;  %v3903_v40 = vrot.slane %v3901_v25, 1 }
 0x165   : > { %3788 = vmatpush.bf16.msra.mxu1 %v6116_v41  ;;  %v6139_v41 = vld [vmem:[%s7576_s1 + $0x300] sm:$0xff] }
 0x166   : > { %3801 = vmatpush.bf16.msra.mxu2 %v6124_v50  ;;  %v6147_v50 = vld [vmem:[%s7576_s1 + $0x340] sm:$0xff] }
 0x167   : > { %3814 = vmatpush.bf16.msra.mxu3 %v6132_v43  ;;  %v3905_v43 = vshrl.u32 %v3891_v21, 16 }
 0x168   : > { %3776 = vmatpush.bf16.msra.mxu0 %v6107_v46  ;;  %v7494_v5 = vpop.f32.mrf.mxu0  ;;  %v3915_v46 = vrot.slane %v3913_v29, 1 }
 0x169   : > { %3789 = vmatpush.bf16.msra.mxu1 %v6115_v47  ;;  %v7496_v6 = vpop.f32.mrf.mxu1  ;;  %v6155_v47 = vld [vmem:[%s7576_s1 + $0x380] sm:$0xff] }
 0x16a   : > { %3802 = vmatpush.bf16.msra.mxu2 %v6123_v48  ;;  %v6163_v48 = vld [vmem:[%s7576_s1 + $0x3c0] sm:$0xff] }
 0x16b   : > { %3815 = vmatpush.bf16.msra.mxu3 %v6131_v52  ;;  %3777 = vmatmul.bf16.vlgmr.msra.gmra.mxu0 %v7363_v19  ;;  %v6165_v19 = vld [vmem:[%s7576_s1 + $0x3d0] sm:$0xff] }
 0x16c   : > { %4113 = vmatpush.bf16.msrb.mxu0 %v6146_v53  ;;  %3790 = vmatmul.bf16.vlgmr.msra.gmra.mxu1 %v7365_v10  ;;  %v3889_v10 = vld.sshfl [vmem:[#allocation1] sm:$0xff pattern:$0x73625140]  ;;  %v3904_v53 = vor.u32 %v3903_v40, %v3899_v38 }
 0x16d   : > { %4126 = vmatpush.bf16.msrb.mxu1 %v6154_v54  ;;  %3803 = vmatmul.bf16.vlgmr.msra.gmra.mxu2 %v7357_v17  ;;  %v6149_v17 = vld [vmem:[%s7576_s1 + $0x350] sm:$0xff]  ;;  %v3895_v24 = vshll.u32 %v3889_v10, 16  ;;  %v3893_v35 = vshrl.u32 %v3889_v10, 16  ;;  %v3910_v54 = vor.u32 %v3909_v44, %v3905_v43 }
 0x16e   : > { %4139 = vmatpush.bf16.msrb.mxu2 %v6162_v55  ;;  %3816 = vmatmul.bf16.vlgmr.msra.gmra.mxu3 %v7359_v18  ;;  %v6157_v18 = vld [vmem:[%s7576_s1 + $0x390] sm:$0xff]  ;;  %v3916_v55 = vor.u32 %v3915_v46, %v3911_v45 }
 0x16f   : > { %4152 = vmatpush.bf16.msrb.mxu3 %v6170_v56  ;;  %v3897_v37 = vrot.slane %v3895_v24, 1  ;;  %v2127_v56 = vadd.f32 %v7380_v22, %v7299_v51 }
 0x170   : > { %4114 = vmatpush.bf16.msrb.mxu0 %v6145_v57  ;;  %v2472_v14 = vpop.f32.mrf.mxu2  ;;  %v2448_v20 = vpop.f32.mrf.mxu0  ;;  %v2460_v57 = vadd.f32 %v7496_v6, %v7494_v5 }
 0x171   : > { %4127 = vmatpush.bf16.msrb.mxu1 %v6153_v58  ;;  %v7516_v15 = vpop.f32.mrf.mxu3  ;;  %v2461_v3 = vpop.f32.mrf.mxu1  ;;  %v3898_v52 = vor.u32 %v3897_v37, %v3893_v35  ;;  %v2140_v58 = vadd.f32 %v7388_v42, %v2127_v56 }
 0x172   : > { %4140 = vmatpush.bf16.msrb.mxu2 %v6161_v59  ;;  %v2473_v59 = vadd.f32 %v2472_v14, %v2460_v57 }
 0x173   : > { %4153 = vmatpush.bf16.msrb.mxu3 %v6169_v60 }
 0x174   : > { %4115 = vmatpush.bf16.msrb.mxu0 %v6144_v61 }
 0x175   : > { %4128 = vmatpush.bf16.msrb.mxu1 %v6152_v62  ;;  %v2153_v62 = vadd.f32 %v7408_v49, %v2140_v58 }
 0x176   : > { %4141 = vmatpush.bf16.msrb.mxu2 %v6160_v63 }
 0x177   : > { %4154 = vmatpush.bf16.msrb.mxu3 %v6168_v0  ;;  %v2486_v0 = vadd.f32 %v7516_v15, %v2473_v59  ;;  %v2166_v51 = vadd.f32 %v7410_v31, %v2153_v62 }
 0x178   : > { %4116 = vmatpush.bf16.msrb.mxu0 %v6143_v2  ;;  %v2474_v33 = vpop.f32.mrf.mxu2 }
 0x179   : > { %4129 = vmatpush.bf16.msrb.mxu1 %v6151_v4  ;;  %v2487_v34 = vpop.f32.mrf.mxu3 }
 0x17a   : > { %4142 = vmatpush.bf16.msrb.mxu2 %v6159_v7  ;;  %v2489_v7 = vadd.f32 %v2486_v0, %v2166_v51 }
 0x17b   : > { %4155 = vmatpush.bf16.msrb.mxu3 %v6167_v8 }
 0x17c   : > { %4117 = vmatpush.bf16.msrb.mxu0 %v6142_v9 }
 0x17d   : > { %4130 = vmatpush.bf16.msrb.mxu1 %v6150_v11 }
 0x17e   : > { %4143 = vmatpush.bf16.msrb.mxu2 %v6158_v12 }
 0x17f   : > { %4156 = vmatpush.bf16.msrb.mxu3 %v6166_v13  ;;  %v5265_v13 = vld [vmem:[%s7184_s29 + $0x2] sm:$0x3] }
 0x180   : > { %4118 = vmatpush.bf16.msrb.mxu0 %v6141_v16 }
 0x181   : > { %4131 = vmatpush.bf16.msrb.mxu1 %v6149_v17 }
 0x182   : > { %4144 = vmatpush.bf16.msrb.mxu2 %v6157_v18 }
 0x183   : > { %4157 = vmatpush.bf16.msrb.mxu3 %v6165_v19 }
 0x184   : > { %4119 = vmatpush.bf16.msrb.mxu0 %v6140_v26 }
 0x185   : > { %4132 = vmatpush.bf16.msrb.mxu1 %v6148_v27 }
 0x186   : > { %4145 = vmatpush.bf16.msrb.mxu2 %v6156_v30 }
 0x187   : > { %4158 = vmatpush.bf16.msrb.mxu3 %v6164_v32 }
 0x188   : > { %4120 = vmatpush.bf16.msrb.mxu0 %v6139_v41  ;;  %v2790_v60 = vpop.f32.mrf.mxu0 }
 0x189   : > { %4133 = vmatpush.bf16.msrb.mxu1 %v6147_v50  ;;  %v2803_v61 = vpop.f32.mrf.mxu1 }
 0x18a   : > { %4146 = vmatpush.bf16.msrb.mxu2 %v6155_v47  ;;  %v2804_v63 = vadd.f32 %v2803_v61, %v2790_v60 }
 0x18b   : > { %4159 = vmatpush.bf16.msrb.mxu3 %v6163_v48  ;;  %4121 = vmatmul.bf16.vlgmr.msrb.gmra.mxu0 %v3898_v52 }
 0x18c   : > { %4134 = vmatmul.bf16.vlgmr.msrb.gmra.mxu1 %v3904_v53 }
 0x18d   : > { %4147 = vmatmul.bf16.vlgmr.msrb.gmra.mxu2 %v3910_v54 }
 0x18e   : > { %4160 = vmatmul.bf16.vlgmr.msrb.gmra.mxu3 %v3916_v55 }
 0x190   : > { %v2816_v2 = vpop.f32.mrf.mxu2  ;;  %v2792_v5 = vpop.f32.mrf.mxu0 }
 0x191   : > { %v2829_v4 = vpop.f32.mrf.mxu3  ;;  %v2817_v22 = vadd.f32 %v2816_v2, %v2804_v63  ;;  %v2805_v6 = vpop.f32.mrf.mxu1 }
 0x193   : > { %v2830_v8 = vadd.f32 %v2829_v4, %v2817_v22  ;;  %v5782_v22 = vld [vmem:[%s7184_s29 + $0x4] sm:$0x3] }
 0x195   : > { %v2833_v42 = vadd.f32 %v2830_v8, %v2489_v7 }
 0x197   : > { %v2834_v9 = vadd.f32 %v7165_v36, %v2833_v42 }
 0x198   : > { %v2818_v11 = vpop.f32.mrf.mxu2 }
 0x199   : > { %v2831_v12 = vpop.f32.mrf.mxu3  ;;  %v2835_v49 = vmax.f32 %v2834_v9, 0.0 }
 0x19b   : > { %v2836_v14 = vpack.c.bf16 %v2835_v49, %v2835_v49 }
 0x19d   : > { %v2839_v15 = vsel %vm7201_vm2, %v2836_v14, %v5265_v13 }
 0x19e   : > { %5266 = vst [vmem:[%s7184_s29 + $0x2] sm:$0x3] %v2839_v15 }
 0x1a8   : > { %v3205_v16 = vpop.f32.mrf.mxu0 }
 0x1a9   : > { %v3218_v17 = vpop.f32.mrf.mxu1 }
 0x1aa   : > { %v3219_v31 = vadd.f32 %v3218_v17, %v3205_v16 }
 0x1b0   : > { %v3231_v18 = vpop.f32.mrf.mxu2  ;;  %v3207_v39 = vpop.f32.mrf.mxu0 }
 0x1b1   : > { %v3232_v19 = vadd.f32 %v3231_v18, %v3219_v31  ;;  %v3244_v10 = vpop.f32.mrf.mxu3  ;;  %v3220_v3 = vpop.f32.mrf.mxu1 }
 0x1b3   : > { %v3245_v20 = vadd.f32 %v3244_v10, %v3232_v19 }
 0x1b8   : > { %v3233_v21 = vpop.f32.mrf.mxu2 }
 0x1b9   : > { %v3246_v23 = vpop.f32.mrf.mxu3 }
 0x1c8   : > { %v3458_v24 = vpop.f32.mrf.mxu0 }
 0x1c9   : > { %v3471_v25 = vpop.f32.mrf.mxu1  ;;  %v3459_v43 = vadd.f32 %v3458_v24, %v3245_v20 }
 0x1cb   : > { %v3472_v45 = vadd.f32 %v3471_v25, %v3459_v43 }
 0x1d0   : > { %v3484_v26 = vpop.f32.mrf.mxu2  ;;  %v3460_v28 = vpop.f32.mrf.mxu0 }
 0x1d1   : > { %v3497_v27 = vpop.f32.mrf.mxu3  ;;  %v3473_v29 = vpop.f32.mrf.mxu1  ;;  %v3485_v52 = vadd.f32 %v3484_v26, %v3472_v45 }
 0x1d3   : > { %v3498_v57 = vadd.f32 %v3497_v27, %v3485_v52 }
 0x1d8   : > { %v3486_v30 = vpop.f32.mrf.mxu2 }
 0x1d9   : > { %v3499_v32 = vpop.f32.mrf.mxu3 }
 0x1e8   : > { %v3778_v33 = vpop.f32.mrf.mxu0 }
 0x1e9   : > { %v3791_v34 = vpop.f32.mrf.mxu1 }
 0x1ea   : > { %v3792_v44 = vadd.f32 %v3791_v34, %v3778_v33 }
 0x1f0   : > { %v3804_v35 = vpop.f32.mrf.mxu2  ;;  %v3780_v38 = vpop.f32.mrf.mxu0 }
 0x1f1   : > { %v3817_v37 = vpop.f32.mrf.mxu3  ;;  %v3793_v40 = vpop.f32.mrf.mxu1  ;;  %v3805_v48 = vadd.f32 %v3804_v35, %v3792_v44 }
 0x1f3   : > { %v3818_v54 = vadd.f32 %v3817_v37, %v3805_v48 }
 0x1f5   : > { %v3821_v61 = vadd.f32 %v3818_v54, %v3498_v57 }
 0x1f8   : > { %v3806_v41 = vpop.f32.mrf.mxu2 }
 0x1f9   : > { %v3819_v50 = vpop.f32.mrf.mxu3 }
 0x208   : > { %v4122_v46 = vpop.f32.mrf.mxu0 }
 0x209   : > { %v4135_v47 = vpop.f32.mrf.mxu1 }
 0x20a   : > { %v4136_v53 = vadd.f32 %v4135_v47, %v4122_v46 }
 0x210   : > { %v4148_v55 = vpop.f32.mrf.mxu2  ;;  %v4124_v59 = vpop.f32.mrf.mxu0 }
 0x211   : > { %v4161_v56 = vpop.f32.mrf.mxu3  ;;  %v4149_v58 = vadd.f32 %v4148_v55, %v4136_v53  ;;  %v4137_v60 = vpop.f32.mrf.mxu1 }
 0x213   : > { %v4162_v62 = vadd.f32 %v4161_v56, %v4149_v58 }
 0x215   : > { %v4165_v63 = vadd.f32 %v4162_v62, %v3821_v61 }
 0x217   : > { %v4166_v0 = vadd.f32 %v7165_v36, %v4165_v63 }
 0x218   : > { %v4150_v2 = vpop.f32.mrf.mxu2 }
 0x219   : > { %v4163_v4 = vpop.f32.mrf.mxu3  ;;  %v4167_v51 = vmax.f32 %v4166_v0, 0.0 }
 0x21b   : > { %v4168_v7 = vpack.c.bf16 %v4167_v51, %v4167_v51 }
 0x21d   : > { %v4171_v8 = vsel %vm7201_vm2, %v4168_v7, %v5782_v22 }
 0x21e   : > { %5783 = vst [vmem:[%s7184_s29 + $0x4] sm:$0x3] %v4171_v8 }
 0x21f PF: > { %s13_s12 = sadd.s32 1, %s6187_s12  }
 0x220   : > { %p10_p4 = scmp.ge.s32.totalorder %s13_s12, 4  }
 0x222   :  { %12 = sbr.rel (!%p10_p4) target bundleno = 1 (0x1), region = 67 }

</bundles_post_ra>
